<compile_context>
chip_gen: v5e
topology: v5e:2x2
jax: 0.10.0
libtpu: 0.0.40
codegen_flags: <defaults>
</compile_context>

<pallas_src>
import jax
import jax.numpy as jnp
from jax import lax
from jax.experimental import pallas as pl
from jax.experimental.pallas import tpu as pltpu

HIGHEST = jax.lax.Precision.HIGHEST   # used only by the pure-JAX reference


# ----------------------------- shared math ---------------------------------
def _mish_ref(x):
    # Reference formulation: x * tanh(softplus(x)), stable softplus.
    sp = jnp.maximum(x, 0.0) + jnp.log(1.0 + jnp.exp(-jnp.abs(x)))
    return x * jnp.tanh(sp)


def _mish_kernel(x):
    # EUP-light rewrite: with t = e^x, u = (1+t)^2,
    #   tanh(softplus(x)) = (u - 1) / (u + 1).
    # Clamp at 20 (PyTorch softplus threshold); there (u-1)/(u+1) rounds to 1.
    # One exp + one approx reciprocal instead of exp + log + tanh.
    t = jnp.exp(jnp.minimum(x, 20.0))
    u = (1.0 + t) * (1.0 + t)
    return x * (u - 1.0) * pl.reciprocal(u + 1.0, approx=True)


# ------------------------------ the kernel ----------------------------------
def speaker_encoder_kernel(mels_ref, mask_ref,
                           w_in0_ref, b_in0_ref, w_in1_ref, b_in1_ref,
                           w_in2_ref, b_in2_ref,
                           w_wn_ref, b_wn_ref, w_rs_ref, b_rs_ref,
                           w_out_ref, b_out_ref, out_ref, pad_ref):
    x = mels_ref[0]                       # (T, Cin) bf16
    mask = mask_ref[0]                    # (T, 1)  f32
    T = x.shape[0]
    hid = pad_ref.shape[1]
    n_layers = w_wn_ref.shape[0]

    # Persistent zero-padded activation buffer: rows [0,2) and [T+2,T+4) are
    # halo zeros (written once per grid step); rows [2,T+2) are overwritten by
    # every conv.  Avoids re-materializing a padded copy per conv call.
    halo = jnp.zeros((2, hid), jnp.float32)
    pad_ref[0:2, :] = halo
    pad_ref[T + 2:T + 4, :] = halo

    def conv(h, w, b, pad, K):
        # h: (T, hid) f32; w: (K*hid, Cout) bf16 packed tap-major;
        # b: (1, Cout) f32.  Stride 1, dilation 1, zero padding `pad`.
        pad_ref[2:2 + T, :] = h
        start = 2 - pad
        if hid < 128:
            # im2col along lanes -> one matmul, contraction = K*hid.
            xcol = jnp.concatenate(
                [pad_ref[start + k:start + k + T, :] for k in range(K)],
                axis=1).astype(jnp.bfloat16)
            acc = jnp.dot(xcol, w, preferred_element_type=jnp.float32)
        else:
            # hid already saturates the 128-row MXU contraction: per-tap dots.
            acc = jnp.zeros((T, w.shape[-1]), jnp.float32)
            for k in range(K):
                xk = pad_ref[start + k:start + k + T, :].astype(jnp.bfloat16)
                acc = acc + jnp.dot(xk, w[k * hid:(k + 1) * hid, :],
                                    preferred_element_type=jnp.float32)
        return acc + b

    # ---- in_proj: Conv1d(k=1) -> Mish -> Conv1d(k=5,p=2) -> Mish
    #               -> Conv1d(k=5,p=2) -> Mish, then * mel_masks
    h = _mish_kernel(jnp.dot(x, w_in0_ref[...],
                             preferred_element_type=jnp.float32)
                     + b_in0_ref[...])
    h = _mish_kernel(conv(h, w_in1_ref[...], b_in1_ref[...], pad=2, K=5))
    h = _mish_kernel(conv(h, w_in2_ref[...], b_in2_ref[...], pad=2, K=5))
    h = h * mask

    # ---- WN encoder (kernel_size=3, dilation_rate=1), fully unrolled (L static).
    # Gate conv weights fused [3*hid, 2*hid] (tanh half | sigmoid half);
    # res/skip 1x1 weights fused [hid, 2*hid] (res half | skip half; res half
    # is zero on the last layer so that update is a no-op there).
    output = jnp.zeros((T, hid), jnp.float32)
    for i in range(n_layers):
        gate = conv(h, w_wn_ref[i], b_wn_ref[i], pad=1, K=3)       # (T, 2*hid)
        acts = jnp.tanh(gate[:, :hid]) * jax.nn.sigmoid(gate[:, hid:])
        rs = jnp.dot(acts.astype(jnp.bfloat16), w_rs_ref[i],
                     preferred_element_type=jnp.float32) + b_rs_ref[i]
        h = (h + rs[:, :hid]) * mask
        output = output + rs[:, hid:]

    # ---- out_proj (1x1 conv) + masked temporal mean, with the conv commuted
    # past the temporal sum:  sum_t (y[t] @ W + b) = (sum_t y[t]) @ W + T * b.
    # (Bias is added at every timestep, masked or not, exactly as in PyTorch.)
    h_sum = jnp.sum(output * mask, axis=0, keepdims=True)          # (1, hid)
    num = jnp.dot(h_sum, w_out_ref[...],
                  preferred_element_type=jnp.float32) + float(T) * b_out_ref[...]
    den = jnp.sum(mask, axis=0, keepdims=True)                     # (1, 1)
    # Exact divide (no approx reciprocal) + guard against an all-padded row.
    out_ref[0] = (num / jnp.maximum(den, 1.0)).astype(out_ref.dtype)


# ------------------------------ wrapper --------------------------------------
def speaker_encoder_pallas(mels_nct, mask_n1t, kp):
    B, Cin, T = mels_nct.shape
    hid, Cout = kp["w_out"].shape
    Cpad = ((Cout + 127) // 128) * 128            # lane-dense output store

    mels_btc = jnp.transpose(mels_nct, (0, 2, 1)).astype(jnp.bfloat16)  # [B,T,Cin]
    mask_bt1 = jnp.transpose(mask_n1t, (0, 2, 1)).astype(jnp.float32)   # [B,T,1]

    w_out = jnp.pad(kp["w_out"], ((0, 0), (0, Cpad - Cout)))
    b_out = jnp.pad(kp["b_out"], ((0, 0), (0, Cpad - Cout)))

    weights = [kp["w_in0"], kp["b_in0"], kp["w_in1"], kp["b_in1"],
               kp["w_in2"], kp["b_in2"], kp["w_wn"], kp["b_wn"],
               kp["w_rs"], kp["b_rs"], w_out, b_out]

    data_specs = [pl.BlockSpec((1, T, Cin), lambda b: (b, 0, 0)),
                  pl.BlockSpec((1, T, 1), lambda b: (b, 0, 0))]

    def run(single_buffered_weights):
        weight_specs = []
        for a in weights:
            kwargs = {}
            if single_buffered_weights:
                # Constant index map across the grid -> double-buffering the
                # weights buys nothing; single-buffer to halve weight VMEM.
                kwargs["pipeline_mode"] = pl.Buffered(1)
            weight_specs.append(
                pl.BlockSpec(a.shape, (lambda b, _n=a.ndim: (0,) * _n), **kwargs))
        out = pl.pallas_call(
            speaker_encoder_kernel,
            out_shape=jax.ShapeDtypeStruct((B, 1, Cpad), jnp.float32),
            grid=(B,),
            in_specs=data_specs + weight_specs,
            out_specs=pl.BlockSpec((1, 1, Cpad), lambda b: (b, 0, 0)),
            scratch_shapes=[pltpu.VMEM((T + 4, hid), jnp.float32)],
            compiler_params=pltpu.CompilerParams(
                dimension_semantics=("parallel",),
                vmem_limit_bytes=32 * 1024 * 1024),
        )(mels_btc, mask_bt1, *weights)
        return jax.block_until_ready(out)

    try:
        out = run(True)
    except Exception:
        # pl.Buffered(1) not supported by this jax/Mosaic build -> fall back
        # to default (double-buffered) weight specs.
        out = run(False)

    return jnp.transpose(out[:, :, :Cout], (0, 2, 1))       # [B, Cout, 1]


# --------------------- synthetic params (PyTorch shapes) ---------------------
def make_params(key, in_ch, hid, out_ch, n_layers, k_wn=3):
    ks = iter(jax.random.split(key, 64))

    def nrm(shape, std=0.02):
        return std * jax.random.normal(next(ks), shape, jnp.float32)

    p = {}
    p["in0_w"] = nrm((hid, in_ch, 1)); p["in0_b"] = jnp.zeros((hid,), jnp.float32)
    p["in1_w"] = nrm((hid, hid, 5));   p["in1_b"] = jnp.zeros((hid,), jnp.float32)
    p["in2_w"] = nrm((hid, hid, 5));   p["in2_b"] = jnp.zeros((hid,), jnp.float32)
    p["wn_in_w"] = [nrm((2 * hid, hid, k_wn)) for _ in range(n_layers)]
    p["wn_in_b"] = [nrm((2 * hid,), 0.01) for _ in range(n_layers)]
    p["rs_w"] = [nrm((2 * hid if i < n_layers - 1 else hid, hid, 1))
                 for i in range(n_layers)]
    p["rs_b"] = [nrm((2 * hid if i < n_layers - 1 else hid,), 0.01)
                 for i in range(n_layers)]
    p["out_w"] = nrm((out_ch, hid, 1)); p["out_b"] = jnp.zeros((out_ch,), jnp.float32)
    return p


def to_kernel_params(p, hid, n_layers):
    f32, bf16 = jnp.float32, jnp.bfloat16

    def pack_conv(w):                    # torch (Cout, Cin, K) -> (K*Cin, Cout)
        K, cin, cout = w.shape[2], w.shape[1], w.shape[0]
        return jnp.transpose(w, (2, 1, 0)).reshape(K * cin, cout)

    kp = {}
    kp["w_in0"] = p["in0_w"][:, :, 0].T.astype(bf16)          # (Cin, hid)
    kp["b_in0"] = p["in0_b"][None, :].astype(f32)
    kp["w_in1"] = pack_conv(p["in1_w"]).astype(bf16)          # (5*hid, hid)
    kp["b_in1"] = p["in1_b"][None, :].astype(f32)
    kp["w_in2"] = pack_conv(p["in2_w"]).astype(bf16)
    kp["b_in2"] = p["in2_b"][None, :].astype(f32)

    # WN gate convs kept fused: (L, 3*hid, 2*hid), output = [tanh | sigmoid].
    kp["w_wn"] = jnp.stack([pack_conv(w) for w in p["wn_in_w"]]).astype(bf16)
    kp["b_wn"] = jnp.stack([b[None, :] for b in p["wn_in_b"]]).astype(f32)

    # res/skip 1x1 convs kept fused: (L, hid, 2*hid), output = [res | skip];
    # last layer has no res path -> zero res half.
    w_rs, b_rs = [], []
    for i in range(n_layers):
        w = p["rs_w"][i][:, :, 0].T       # (hid, out_ch)
        b = p["rs_b"][i][None, :]         # (1, out_ch)
        if i == n_layers - 1:
            w = jnp.concatenate([jnp.zeros((hid, hid), f32), w], axis=1)
            b = jnp.concatenate([jnp.zeros((1, hid), f32), b], axis=1)
        w_rs.append(w); b_rs.append(b)
    kp["w_rs"] = jnp.stack(w_rs).astype(bf16)                 # (L, hid, 2*hid)
    kp["b_rs"] = jnp.stack(b_rs).astype(f32)                  # (L, 1, 2*hid)

    kp["w_out"] = p["out_w"][:, :, 0].T.astype(f32)           # (hid, Cout)
    kp["b_out"] = p["out_b"][None, :].astype(f32)
    return kp


# --------------------------- pure-JAX reference ------------------------------
def reference_forward(mels, mask, p, hid, n_layers):
    def conv(x, w, b, pad):
        y = lax.conv_general_dilated(x, w, (1,), [(pad, pad)],
                                     dimension_numbers=("NCH", "OIH", "NCH"),
                                     precision=HIGHEST)
        return y + b[None, :, None]

    x = _mish_ref(conv(mels, p["in0_w"], p["in0_b"], 0))
    x = _mish_ref(conv(x, p["in1_w"], p["in1_b"], 2))
    x = _mish_ref(conv(x, p["in2_w"], p["in2_b"], 2))
    x = x * mask
    output = jnp.zeros_like(x)
    for i in range(n_layers):
        x_in = conv(x, p["wn_in_w"][i], p["wn_in_b"][i], 1)
        acts = jnp.tanh(x_in[:, :hid]) * jax.nn.sigmoid(x_in[:, hid:])
        rs = conv(acts, p["rs_w"][i], p["rs_b"][i], 0)
        if i < n_layers - 1:
            x = (x + rs[:, :hid]) * mask
            output = output + rs[:, hid:]
        else:
            output = output + rs
    x = output * mask
    x = x * mask
    x = conv(x, p["out_w"], p["out_b"], 0)
    x = jnp.sum(x, axis=-1) / jnp.sum(mask, axis=-1)
    return x[..., None]


# ---------------------------------- main -------------------------------------
if __name__ == "__main__":
    B, Cin, H, Cout, T, L = 2, 16, 32, 64, 32, 4

    key = jax.random.PRNGKey(0)
    k_mel, k_par = jax.random.split(key)
    mels = jax.random.normal(k_mel, (B, Cin, T), jnp.float32)          # [B, C, T]
    lengths = jnp.array([T, (3 * T) // 4], jnp.int32)
    mask = (jnp.arange(T)[None, None, :] < lengths[:, None, None]).astype(jnp.float32)  # [B, 1, T]

    p = make_params(k_par, Cin, H, Cout, L)
    kp = to_kernel_params(p, H, L)

    out = speaker_encoder_pallas(mels, mask, kp)
    out = jax.block_until_ready(out)

    ref = jax.block_until_ready(reference_forward(mels, mask, p, H, L))

    assert out.shape == (B, Cout, 1), out.shape
    max_diff = float(jnp.max(jnp.abs(out - ref)))
    scale = float(jnp.max(jnp.abs(ref)))
    assert max_diff <= 1e-6 + 5e-2 * scale, (max_diff, scale)

    print("KERNEL_OK")
</pallas_src>

<mosaic_0001>
module attributes {stable_mosaic.version = 11 : i64} {
  func.func @speaker_encoder_kernel(%arg0: i32, %arg1: memref<1x32x16xbf16, #tpu.memory_space<vmem>>, %arg2: memref<1x32x1xf32, #tpu.memory_space<vmem>>, %arg3: memref<16x32xbf16, #tpu.memory_space<vmem>>, %arg4: memref<1x32xf32, #tpu.memory_space<vmem>>, %arg5: memref<160x32xbf16, #tpu.memory_space<vmem>>, %arg6: memref<1x32xf32, #tpu.memory_space<vmem>>, %arg7: memref<160x32xbf16, #tpu.memory_space<vmem>>, %arg8: memref<1x32xf32, #tpu.memory_space<vmem>>, %arg9: memref<4x96x64xbf16, #tpu.memory_space<vmem>>, %arg10: memref<4x1x64xf32, #tpu.memory_space<vmem>>, %arg11: memref<4x32x64xbf16, #tpu.memory_space<vmem>>, %arg12: memref<4x1x64xf32, #tpu.memory_space<vmem>>, %arg13: memref<32x128xf32, #tpu.memory_space<vmem>>, %arg14: memref<1x128xf32, #tpu.memory_space<vmem>>, %arg15: memref<1x1x128xf32, #tpu.memory_space<vmem>>, %arg16: memref<36x32xf32, #tpu.memory_space<vmem>>) attributes {dimension_semantics = [#tpu.dimension_semantics<parallel>], iteration_bounds = array<i64: 2>, scalar_prefetch = 0 : i64, scratch_operands = 1 : i64, tpu.core_type = #tpu.core_type<tc>, window_params = [{transform_indices = @transform_0, window_bounds = array<i64: 1, 32, 16>}, {transform_indices = @transform_1, window_bounds = array<i64: 1, 32, 1>}, {pipeline_mode = #tpu.pipeline_mode<synchronous>, transform_indices = @transform_2, window_bounds = array<i64: 16, 32>}, {pipeline_mode = #tpu.pipeline_mode<synchronous>, transform_indices = @transform_3, window_bounds = array<i64: 1, 32>}, {pipeline_mode = #tpu.pipeline_mode<synchronous>, transform_indices = @transform_4, window_bounds = array<i64: 160, 32>}, {pipeline_mode = #tpu.pipeline_mode<synchronous>, transform_indices = @transform_5, window_bounds = array<i64: 1, 32>}, {pipeline_mode = #tpu.pipeline_mode<synchronous>, transform_indices = @transform_6, window_bounds = array<i64: 160, 32>}, {pipeline_mode = #tpu.pipeline_mode<synchronous>, transform_indices = @transform_7, window_bounds = array<i64: 1, 32>}, {pipeline_mode = #tpu.pipeline_mode<synchronous>, transform_indices = @transform_8, window_bounds = array<i64: 4, 96, 64>}, {pipeline_mode = #tpu.pipeline_mode<synchronous>, transform_indices = @transform_9, window_bounds = array<i64: 4, 1, 64>}, {pipeline_mode = #tpu.pipeline_mode<synchronous>, transform_indices = @transform_10, window_bounds = array<i64: 4, 32, 64>}, {pipeline_mode = #tpu.pipeline_mode<synchronous>, transform_indices = @transform_11, window_bounds = array<i64: 4, 1, 64>}, {pipeline_mode = #tpu.pipeline_mode<synchronous>, transform_indices = @transform_12, window_bounds = array<i64: 32, 128>}, {pipeline_mode = #tpu.pipeline_mode<synchronous>, transform_indices = @transform_13, window_bounds = array<i64: 1, 128>}, {transform_indices = @transform_14, window_bounds = array<i64: 1, 1, 128>}]} {
    %c0 = arith.constant 0 : index
    %c0_0 = arith.constant 0 : index
    %c0_1 = arith.constant 0 : index
    %0 = vector.load %arg1[%c0, %c0_0, %c0_1] : memref<1x32x16xbf16, #tpu.memory_space<vmem>>, vector<1x32x16xbf16>
    %1 = vector.shape_cast %0 : vector<1x32x16xbf16> to vector<32x16xbf16>
    %c0_2 = arith.constant 0 : index
    %c0_3 = arith.constant 0 : index
    %c0_4 = arith.constant 0 : index
    %2 = vector.load %arg2[%c0_2, %c0_3, %c0_4] : memref<1x32x1xf32, #tpu.memory_space<vmem>>, vector<1x32x1xf32>
    %3 = vector.shape_cast %2 : vector<1x32x1xf32> to vector<32x1xf32>
    %cst = arith.constant 0.000000e+00 : f32
    %4 = vector.broadcast %cst : f32 to vector<2x32xf32>
    %c0_5 = arith.constant 0 : index
    %c0_6 = arith.constant 0 : index
    %5 = vector.load %arg16[%c0_5, %c0_6] : memref<36x32xf32, #tpu.memory_space<vmem>>, vector<2x32xf32>
    tpu.vector_store %arg16[%c0_5, %c0_6], %4 {strides = array<i32>} : memref<36x32xf32, #tpu.memory_space<vmem>>, vector<2x32xf32>,
    %c34 = arith.constant 34 : index
    %c0_7 = arith.constant 0 : index
    %6 = vector.load %arg16[%c34, %c0_7] : memref<36x32xf32, #tpu.memory_space<vmem>>, vector<2x32xf32>
    tpu.vector_store %arg16[%c34, %c0_7], %4 {strides = array<i32>} : memref<36x32xf32, #tpu.memory_space<vmem>>, vector<2x32xf32>,
    %c0_8 = arith.constant 0 : index
    %c0_9 = arith.constant 0 : index
    %7 = vector.load %arg3[%c0_8, %c0_9] : memref<16x32xbf16, #tpu.memory_space<vmem>>, vector<16x32xbf16>
    %cst_10 = arith.constant dense<0.000000e+00> : vector<32x32xf32>
    %8 = tpu.matmul %1, %7, %cst_10 {dimension_numbers = #tpu.dot_dimension_numbers<[1], [0], [0], [1], [0, 0, 1, 1], [], []>} : vector<32x16xbf16>, vector<16x32xbf16>, vector<32x32xf32> -> vector<32x32xf32>
    %c0_11 = arith.constant 0 : index
    %c0_12 = arith.constant 0 : index
    %9 = vector.load %arg4[%c0_11, %c0_12] : memref<1x32xf32, #tpu.memory_space<vmem>>, vector<1x32xf32>
    %10 = vector.broadcast %9 : vector<1x32xf32> to vector<32x32xf32>
    %11 = arith.addf %8, %10 : vector<32x32xf32>
    %cst_13 = arith.constant 2.000000e+01 : f32
    %12 = vector.broadcast %cst_13 : f32 to vector<32x32xf32>
    %13 = arith.minimumf %11, %12 : vector<32x32xf32>
    %14 = math.exp %13 : vector<32x32xf32>
    %cst_14 = arith.constant 1.000000e+00 : f32
    %15 = vector.broadcast %cst_14 : f32 to vector<32x32xf32>
    %16 = arith.addf %15, %14 : vector<32x32xf32>
    %cst_15 = arith.constant 1.000000e+00 : f32
    %17 = vector.broadcast %cst_15 : f32 to vector<32x32xf32>
    %18 = arith.addf %17, %14 : vector<32x32xf32>
    %19 = arith.mulf %16, %18 : vector<32x32xf32>
    %cst_16 = arith.constant 1.000000e+00 : f32
    %20 = vector.broadcast %cst_16 : f32 to vector<32x32xf32>
    %21 = arith.subf %19, %20 : vector<32x32xf32>
    %22 = arith.mulf %11, %21 : vector<32x32xf32>
    %cst_17 = arith.constant 1.000000e+00 : f32
    %23 = vector.broadcast %cst_17 : f32 to vector<32x32xf32>
    %24 = arith.addf %19, %23 : vector<32x32xf32>
    %25 = tpu.reciprocal %24 {approx = true} : vector<32x32xf32> -> vector<32x32xf32>
    %26 = arith.mulf %22, %25 : vector<32x32xf32>
    %c0_18 = arith.constant 0 : index
    %c0_19 = arith.constant 0 : index
    %27 = vector.load %arg5[%c0_18, %c0_19] : memref<160x32xbf16, #tpu.memory_space<vmem>>, vector<160x32xbf16>
    %c0_20 = arith.constant 0 : index
    %c0_21 = arith.constant 0 : index
    %28 = vector.load %arg6[%c0_20, %c0_21] : memref<1x32xf32, #tpu.memory_space<vmem>>, vector<1x32xf32>
    %c2 = arith.constant 2 : index
    %c0_22 = arith.constant 0 : index
    %29 = vector.load %arg16[%c2, %c0_22] : memref<36x32xf32, #tpu.memory_space<vmem>>, vector<32x32xf32>
    tpu.vector_store %arg16[%c2, %c0_22], %26 {strides = array<i32>} : memref<36x32xf32, #tpu.memory_space<vmem>>, vector<32x32xf32>,
    %c0_23 = arith.constant 0 : index
    %c0_24 = arith.constant 0 : index
    %30 = vector.load %arg16[%c0_23, %c0_24] : memref<36x32xf32, #tpu.memory_space<vmem>>, vector<32x32xf32>
    %c1 = arith.constant 1 : index
    %c0_25 = arith.constant 0 : index
    %31 = vector.load %arg16[%c1, %c0_25] : memref<36x32xf32, #tpu.memory_space<vmem>>, vector<32x32xf32>
    %c2_26 = arith.constant 2 : index
    %c0_27 = arith.constant 0 : index
    %32 = vector.load %arg16[%c2_26, %c0_27] : memref<36x32xf32, #tpu.memory_space<vmem>>, vector<32x32xf32>
    %c3 = arith.constant 3 : index
    %c0_28 = arith.constant 0 : index
    %33 = vector.load %arg16[%c3, %c0_28] : memref<36x32xf32, #tpu.memory_space<vmem>>, vector<32x32xf32>
    %c4 = arith.constant 4 : index
    %c0_29 = arith.constant 0 : index
    %34 = vector.load %arg16[%c4, %c0_29] : memref<36x32xf32, #tpu.memory_space<vmem>>, vector<32x32xf32>
    %35 = tpu.concatenate %30, %31, %32, %33, %34 in 1 : vector<32x32xf32>, vector<32x32xf32>, vector<32x32xf32>, vector<32x32xf32>, vector<32x32xf32> -> vector<32x160xf32>
    %36 = arith.truncf %35 : vector<32x160xf32> to vector<32x160xbf16>
    %cst_30 = arith.constant dense<0.000000e+00> : vector<32x32xf32>
    %37 = tpu.matmul %36, %27, %cst_30 {dimension_numbers = #tpu.dot_dimension_numbers<[1], [0], [0], [1], [0, 0, 1, 1], [], []>} : vector<32x160xbf16>, vector<160x32xbf16>, vector<32x32xf32> -> vector<32x32xf32>
    %38 = vector.broadcast %28 : vector<1x32xf32> to vector<32x32xf32>
    %39 = arith.addf %37, %38 : vector<32x32xf32>
    %cst_31 = arith.constant 2.000000e+01 : f32
    %40 = vector.broadcast %cst_31 : f32 to vector<32x32xf32>
    %41 = arith.minimumf %39, %40 : vector<32x32xf32>
    %42 = math.exp %41 : vector<32x32xf32>
    %cst_32 = arith.constant 1.000000e+00 : f32
    %43 = vector.broadcast %cst_32 : f32 to vector<32x32xf32>
    %44 = arith.addf %43, %42 : vector<32x32xf32>
    %cst_33 = arith.constant 1.000000e+00 : f32
    %45 = vector.broadcast %cst_33 : f32 to vector<32x32xf32>
    %46 = arith.addf %45, %42 : vector<32x32xf32>
    %47 = arith.mulf %44, %46 : vector<32x32xf32>
    %cst_34 = arith.constant 1.000000e+00 : f32
    %48 = vector.broadcast %cst_34 : f32 to vector<32x32xf32>
    %49 = arith.subf %47, %48 : vector<32x32xf32>
    %50 = arith.mulf %39, %49 : vector<32x32xf32>
    %cst_35 = arith.constant 1.000000e+00 : f32
    %51 = vector.broadcast %cst_35 : f32 to vector<32x32xf32>
    %52 = arith.addf %47, %51 : vector<32x32xf32>
    %53 = tpu.reciprocal %52 {approx = true} : vector<32x32xf32> -> vector<32x32xf32>
    %54 = arith.mulf %50, %53 : vector<32x32xf32>
    %c0_36 = arith.constant 0 : index
    %c0_37 = arith.constant 0 : index
    %55 = vector.load %arg7[%c0_36, %c0_37] : memref<160x32xbf16, #tpu.memory_space<vmem>>, vector<160x32xbf16>
    %c0_38 = arith.constant 0 : index
    %c0_39 = arith.constant 0 : index
    %56 = vector.load %arg8[%c0_38, %c0_39] : memref<1x32xf32, #tpu.memory_space<vmem>>, vector<1x32xf32>
    %c2_40 = arith.constant 2 : index
    %c0_41 = arith.constant 0 : index
    %57 = vector.load %arg16[%c2_40, %c0_41] : memref<36x32xf32, #tpu.memory_space<vmem>>, vector<32x32xf32>
    tpu.vector_store %arg16[%c2_40, %c0_41], %54 {strides = array<i32>} : memref<36x32xf32, #tpu.memory_space<vmem>>, vector<32x32xf32>,
    %c0_42 = arith.constant 0 : index
    %c0_43 = arith.constant 0 : index
    %58 = vector.load %arg16[%c0_42, %c0_43] : memref<36x32xf32, #tpu.memory_space<vmem>>, vector<32x32xf32>
    %c1_44 = arith.constant 1 : index
    %c0_45 = arith.constant 0 : index
    %59 = vector.load %arg16[%c1_44, %c0_45] : memref<36x32xf32, #tpu.memory_space<vmem>>, vector<32x32xf32>
    %c2_46 = arith.constant 2 : index
    %c0_47 = arith.constant 0 : index
    %60 = vector.load %arg16[%c2_46, %c0_47] : memref<36x32xf32, #tpu.memory_space<vmem>>, vector<32x32xf32>
    %c3_48 = arith.constant 3 : index
    %c0_49 = arith.constant 0 : index
    %61 = vector.load %arg16[%c3_48, %c0_49] : memref<36x32xf32, #tpu.memory_space<vmem>>, vector<32x32xf32>
    %c4_50 = arith.constant 4 : index
    %c0_51 = arith.constant 0 : index
    %62 = vector.load %arg16[%c4_50, %c0_51] : memref<36x32xf32, #tpu.memory_space<vmem>>, vector<32x32xf32>
    %63 = tpu.concatenate %58, %59, %60, %61, %62 in 1 : vector<32x32xf32>, vector<32x32xf32>, vector<32x32xf32>, vector<32x32xf32>, vector<32x32xf32> -> vector<32x160xf32>
    %64 = arith.truncf %63 : vector<32x160xf32> to vector<32x160xbf16>
    %cst_52 = arith.constant dense<0.000000e+00> : vector<32x32xf32>
    %65 = tpu.matmul %64, %55, %cst_52 {dimension_numbers = #tpu.dot_dimension_numbers<[1], [0], [0], [1], [0, 0, 1, 1], [], []>} : vector<32x160xbf16>, vector<160x32xbf16>, vector<32x32xf32> -> vector<32x32xf32>
    %66 = vector.broadcast %56 : vector<1x32xf32> to vector<32x32xf32>
    %67 = arith.addf %65, %66 : vector<32x32xf32>
    %cst_53 = arith.constant 2.000000e+01 : f32
    %68 = vector.broadcast %cst_53 : f32 to vector<32x32xf32>
    %69 = arith.minimumf %67, %68 : vector<32x32xf32>
    %70 = math.exp %69 : vector<32x32xf32>
    %cst_54 = arith.constant 1.000000e+00 : f32
    %71 = vector.broadcast %cst_54 : f32 to vector<32x32xf32>
    %72 = arith.addf %71, %70 : vector<32x32xf32>
    %cst_55 = arith.constant 1.000000e+00 : f32
    %73 = vector.broadcast %cst_55 : f32 to vector<32x32xf32>
    %74 = arith.addf %73, %70 : vector<32x32xf32>
    %75 = arith.mulf %72, %74 : vector<32x32xf32>
    %cst_56 = arith.constant 1.000000e+00 : f32
    %76 = vector.broadcast %cst_56 : f32 to vector<32x32xf32>
    %77 = arith.subf %75, %76 : vector<32x32xf32>
    %78 = arith.mulf %67, %77 : vector<32x32xf32>
    %cst_57 = arith.constant 1.000000e+00 : f32
    %79 = vector.broadcast %cst_57 : f32 to vector<32x32xf32>
    %80 = arith.addf %75, %79 : vector<32x32xf32>
    %81 = tpu.reciprocal %80 {approx = true} : vector<32x32xf32> -> vector<32x32xf32>
    %82 = arith.mulf %78, %81 : vector<32x32xf32>
    %83 = vector.broadcast %3 : vector<32x1xf32> to vector<32x32xf32>
    %84 = arith.mulf %82, %83 : vector<32x32xf32>
    %cst_58 = arith.constant 0.000000e+00 : f32
    %85 = vector.broadcast %cst_58 : f32 to vector<32x32xf32>
    %c0_59 = arith.constant 0 : index
    %c0_60 = arith.constant 0 : index
    %c0_61 = arith.constant 0 : index
    %86 = vector.load %arg9[%c0_59, %c0_60, %c0_61] : memref<4x96x64xbf16, #tpu.memory_space<vmem>>, vector<1x96x64xbf16>
    %87 = vector.shape_cast %86 : vector<1x96x64xbf16> to vector<96x64xbf16>
    %c0_62 = arith.constant 0 : index
    %c0_63 = arith.constant 0 : index
    %c0_64 = arith.constant 0 : index
    %88 = vector.load %arg10[%c0_62, %c0_63, %c0_64] : memref<4x1x64xf32, #tpu.memory_space<vmem>>, vector<1x1x64xf32>
    %89 = vector.shape_cast %88 : vector<1x1x64xf32> to vector<1x64xf32>
    %c2_65 = arith.constant 2 : index
    %c0_66 = arith.constant 0 : index
    %90 = vector.load %arg16[%c2_65, %c0_66] : memref<36x32xf32, #tpu.memory_space<vmem>>, vector<32x32xf32>
    tpu.vector_store %arg16[%c2_65, %c0_66], %84 {strides = array<i32>} : memref<36x32xf32, #tpu.memory_space<vmem>>, vector<32x32xf32>,
    %c1_67 = arith.constant 1 : index
    %c0_68 = arith.constant 0 : index
    %91 = vector.load %arg16[%c1_67, %c0_68] : memref<36x32xf32, #tpu.memory_space<vmem>>, vector<32x32xf32>
    %c2_69 = arith.constant 2 : index
    %c0_70 = arith.constant 0 : index
    %92 = vector.load %arg16[%c2_69, %c0_70] : memref<36x32xf32, #tpu.memory_space<vmem>>, vector<32x32xf32>
    %c3_71 = arith.constant 3 : index
    %c0_72 = arith.constant 0 : index
    %93 = vector.load %arg16[%c3_71, %c0_72] : memref<36x32xf32, #tpu.memory_space<vmem>>, vector<32x32xf32>
    %94 = tpu.concatenate %91, %92, %93 in 1 : vector<32x32xf32>, vector<32x32xf32>, vector<32x32xf32> -> vector<32x96xf32>
    %95 = arith.truncf %94 : vector<32x96xf32> to vector<32x96xbf16>
    %cst_73 = arith.constant dense<0.000000e+00> : vector<32x64xf32>
    %96 = tpu.matmul %95, %87, %cst_73 {dimension_numbers = #tpu.dot_dimension_numbers<[1], [0], [0], [1], [0, 0, 1, 1], [], []>} : vector<32x96xbf16>, vector<96x64xbf16>, vector<32x64xf32> -> vector<32x64xf32>
    %97 = vector.broadcast %89 : vector<1x64xf32> to vector<32x64xf32>
    %98 = arith.addf %96, %97 : vector<32x64xf32>
    %99 = vector.extract_strided_slice %98 {offsets = [0, 0], sizes = [32, 32], strides = [1, 1]} : vector<32x64xf32> to vector<32x32xf32>
    %100 = math.tanh %99 : vector<32x32xf32>
    %101 = vector.extract_strided_slice %98 {offsets = [0, 32], sizes = [32, 32], strides = [1, 1]} : vector<32x64xf32> to vector<32x32xf32>
    %102 = arith.negf %101 : vector<32x32xf32>
    %103 = math.exp %102 : vector<32x32xf32>
    %cst_74 = arith.constant 1.000000e+00 : f32
    %104 = vector.broadcast %cst_74 : f32 to vector<32x32xf32>
    %105 = arith.addf %104, %103 : vector<32x32xf32>
    %106 = arith.divf %104, %105 : vector<32x32xf32>
    %107 = arith.mulf %100, %106 : vector<32x32xf32>
    %108 = arith.truncf %107 : vector<32x32xf32> to vector<32x32xbf16>
    %c0_75 = arith.constant 0 : index
    %c0_76 = arith.constant 0 : index
    %c0_77 = arith.constant 0 : index
    %109 = vector.load %arg11[%c0_75, %c0_76, %c0_77] : memref<4x32x64xbf16, #tpu.memory_space<vmem>>, vector<1x32x64xbf16>
    %110 = vector.shape_cast %109 : vector<1x32x64xbf16> to vector<32x64xbf16>
    %cst_78 = arith.constant dense<0.000000e+00> : vector<32x64xf32>
    %111 = tpu.matmul %108, %110, %cst_78 {dimension_numbers = #tpu.dot_dimension_numbers<[1], [0], [0], [1], [0, 0, 1, 1], [], []>} : vector<32x32xbf16>, vector<32x64xbf16>, vector<32x64xf32> -> vector<32x64xf32>
    %c0_79 = arith.constant 0 : index
    %c0_80 = arith.constant 0 : index
    %c0_81 = arith.constant 0 : index
    %112 = vector.load %arg12[%c0_79, %c0_80, %c0_81] : memref<4x1x64xf32, #tpu.memory_space<vmem>>, vector<1x1x64xf32>
    %113 = vector.shape_cast %112 : vector<1x1x64xf32> to vector<1x64xf32>
    %114 = vector.broadcast %113 : vector<1x64xf32> to vector<32x64xf32>
    %115 = arith.addf %111, %114 : vector<32x64xf32>
    %116 = vector.extract_strided_slice %115 {offsets = [0, 0], sizes = [32, 32], strides = [1, 1]} : vector<32x64xf32> to vector<32x32xf32>
    %117 = arith.addf %84, %116 : vector<32x32xf32>
    %118 = vector.broadcast %3 : vector<32x1xf32> to vector<32x32xf32>
    %119 = arith.mulf %117, %118 : vector<32x32xf32>
    %120 = vector.extract_strided_slice %115 {offsets = [0, 32], sizes = [32, 32], strides = [1, 1]} : vector<32x64xf32> to vector<32x32xf32>
    %121 = arith.addf %85, %120 : vector<32x32xf32>
    %c1_82 = arith.constant 1 : index
    %c0_83 = arith.constant 0 : index
    %c0_84 = arith.constant 0 : index
    %122 = vector.load %arg9[%c1_82, %c0_83, %c0_84] : memref<4x96x64xbf16, #tpu.memory_space<vmem>>, vector<1x96x64xbf16>
    %123 = vector.shape_cast %122 : vector<1x96x64xbf16> to vector<96x64xbf16>
    %c1_85 = arith.constant 1 : index
    %c0_86 = arith.constant 0 : index
    %c0_87 = arith.constant 0 : index
    %124 = vector.load %arg10[%c1_85, %c0_86, %c0_87] : memref<4x1x64xf32, #tpu.memory_space<vmem>>, vector<1x1x64xf32>
    %125 = vector.shape_cast %124 : vector<1x1x64xf32> to vector<1x64xf32>
    %c2_88 = arith.constant 2 : index
    %c0_89 = arith.constant 0 : index
    %126 = vector.load %arg16[%c2_88, %c0_89] : memref<36x32xf32, #tpu.memory_space<vmem>>, vector<32x32xf32>
    tpu.vector_store %arg16[%c2_88, %c0_89], %119 {strides = array<i32>} : memref<36x32xf32, #tpu.memory_space<vmem>>, vector<32x32xf32>,
    %c1_90 = arith.constant 1 : index
    %c0_91 = arith.constant 0 : index
    %127 = vector.load %arg16[%c1_90, %c0_91] : memref<36x32xf32, #tpu.memory_space<vmem>>, vector<32x32xf32>
    %c2_92 = arith.constant 2 : index
    %c0_93 = arith.constant 0 : index
    %128 = vector.load %arg16[%c2_92, %c0_93] : memref<36x32xf32, #tpu.memory_space<vmem>>, vector<32x32xf32>
    %c3_94 = arith.constant 3 : index
    %c0_95 = arith.constant 0 : index
    %129 = vector.load %arg16[%c3_94, %c0_95] : memref<36x32xf32, #tpu.memory_space<vmem>>, vector<32x32xf32>
    %130 = tpu.concatenate %127, %128, %129 in 1 : vector<32x32xf32>, vector<32x32xf32>, vector<32x32xf32> -> vector<32x96xf32>
    %131 = arith.truncf %130 : vector<32x96xf32> to vector<32x96xbf16>
    %cst_96 = arith.constant dense<0.000000e+00> : vector<32x64xf32>
    %132 = tpu.matmul %131, %123, %cst_96 {dimension_numbers = #tpu.dot_dimension_numbers<[1], [0], [0], [1], [0, 0, 1, 1], [], []>} : vector<32x96xbf16>, vector<96x64xbf16>, vector<32x64xf32> -> vector<32x64xf32>
    %133 = vector.broadcast %125 : vector<1x64xf32> to vector<32x64xf32>
    %134 = arith.addf %132, %133 : vector<32x64xf32>
    %135 = vector.extract_strided_slice %134 {offsets = [0, 0], sizes = [32, 32], strides = [1, 1]} : vector<32x64xf32> to vector<32x32xf32>
    %136 = math.tanh %135 : vector<32x32xf32>
    %137 = vector.extract_strided_slice %134 {offsets = [0, 32], sizes = [32, 32], strides = [1, 1]} : vector<32x64xf32> to vector<32x32xf32>
    %138 = arith.negf %137 : vector<32x32xf32>
    %139 = math.exp %138 : vector<32x32xf32>
    %cst_97 = arith.constant 1.000000e+00 : f32
    %140 = vector.broadcast %cst_97 : f32 to vector<32x32xf32>
    %141 = arith.addf %140, %139 : vector<32x32xf32>
    %142 = arith.divf %140, %141 : vector<32x32xf32>
    %143 = arith.mulf %136, %142 : vector<32x32xf32>
    %144 = arith.truncf %143 : vector<32x32xf32> to vector<32x32xbf16>
    %c1_98 = arith.constant 1 : index
    %c0_99 = arith.constant 0 : index
    %c0_100 = arith.constant 0 : index
    %145 = vector.load %arg11[%c1_98, %c0_99, %c0_100] : memref<4x32x64xbf16, #tpu.memory_space<vmem>>, vector<1x32x64xbf16>
    %146 = vector.shape_cast %145 : vector<1x32x64xbf16> to vector<32x64xbf16>
    %cst_101 = arith.constant dense<0.000000e+00> : vector<32x64xf32>
    %147 = tpu.matmul %144, %146, %cst_101 {dimension_numbers = #tpu.dot_dimension_numbers<[1], [0], [0], [1], [0, 0, 1, 1], [], []>} : vector<32x32xbf16>, vector<32x64xbf16>, vector<32x64xf32> -> vector<32x64xf32>
    %c1_102 = arith.constant 1 : index
    %c0_103 = arith.constant 0 : index
    %c0_104 = arith.constant 0 : index
    %148 = vector.load %arg12[%c1_102, %c0_103, %c0_104] : memref<4x1x64xf32, #tpu.memory_space<vmem>>, vector<1x1x64xf32>
    %149 = vector.shape_cast %148 : vector<1x1x64xf32> to vector<1x64xf32>
    %150 = vector.broadcast %149 : vector<1x64xf32> to vector<32x64xf32>
    %151 = arith.addf %147, %150 : vector<32x64xf32>
    %152 = vector.extract_strided_slice %151 {offsets = [0, 0], sizes = [32, 32], strides = [1, 1]} : vector<32x64xf32> to vector<32x32xf32>
    %153 = arith.addf %119, %152 : vector<32x32xf32>
    %154 = vector.broadcast %3 : vector<32x1xf32> to vector<32x32xf32>
    %155 = arith.mulf %153, %154 : vector<32x32xf32>
    %156 = vector.extract_strided_slice %151 {offsets = [0, 32], sizes = [32, 32], strides = [1, 1]} : vector<32x64xf32> to vector<32x32xf32>
    %157 = arith.addf %121, %156 : vector<32x32xf32>
    %c2_105 = arith.constant 2 : index
    %c0_106 = arith.constant 0 : index
    %c0_107 = arith.constant 0 : index
    %158 = vector.load %arg9[%c2_105, %c0_106, %c0_107] : memref<4x96x64xbf16, #tpu.memory_space<vmem>>, vector<1x96x64xbf16>
    %159 = vector.shape_cast %158 : vector<1x96x64xbf16> to vector<96x64xbf16>
    %c2_108 = arith.constant 2 : index
    %c0_109 = arith.constant 0 : index
    %c0_110 = arith.constant 0 : index
    %160 = vector.load %arg10[%c2_108, %c0_109, %c0_110] : memref<4x1x64xf32, #tpu.memory_space<vmem>>, vector<1x1x64xf32>
    %161 = vector.shape_cast %160 : vector<1x1x64xf32> to vector<1x64xf32>
    %c2_111 = arith.constant 2 : index
    %c0_112 = arith.constant 0 : index
    %162 = vector.load %arg16[%c2_111, %c0_112] : memref<36x32xf32, #tpu.memory_space<vmem>>, vector<32x32xf32>
    tpu.vector_store %arg16[%c2_111, %c0_112], %155 {strides = array<i32>} : memref<36x32xf32, #tpu.memory_space<vmem>>, vector<32x32xf32>,
    %c1_113 = arith.constant 1 : index
    %c0_114 = arith.constant 0 : index
    %163 = vector.load %arg16[%c1_113, %c0_114] : memref<36x32xf32, #tpu.memory_space<vmem>>, vector<32x32xf32>
    %c2_115 = arith.constant 2 : index
    %c0_116 = arith.constant 0 : index
    %164 = vector.load %arg16[%c2_115, %c0_116] : memref<36x32xf32, #tpu.memory_space<vmem>>, vector<32x32xf32>
    %c3_117 = arith.constant 3 : index
    %c0_118 = arith.constant 0 : index
    %165 = vector.load %arg16[%c3_117, %c0_118] : memref<36x32xf32, #tpu.memory_space<vmem>>, vector<32x32xf32>
    %166 = tpu.concatenate %163, %164, %165 in 1 : vector<32x32xf32>, vector<32x32xf32>, vector<32x32xf32> -> vector<32x96xf32>
    %167 = arith.truncf %166 : vector<32x96xf32> to vector<32x96xbf16>
    %cst_119 = arith.constant dense<0.000000e+00> : vector<32x64xf32>
    %168 = tpu.matmul %167, %159, %cst_119 {dimension_numbers = #tpu.dot_dimension_numbers<[1], [0], [0], [1], [0, 0, 1, 1], [], []>} : vector<32x96xbf16>, vector<96x64xbf16>, vector<32x64xf32> -> vector<32x64xf32>
    %169 = vector.broadcast %161 : vector<1x64xf32> to vector<32x64xf32>
    %170 = arith.addf %168, %169 : vector<32x64xf32>
    %171 = vector.extract_strided_slice %170 {offsets = [0, 0], sizes = [32, 32], strides = [1, 1]} : vector<32x64xf32> to vector<32x32xf32>
    %172 = math.tanh %171 : vector<32x32xf32>
    %173 = vector.extract_strided_slice %170 {offsets = [0, 32], sizes = [32, 32], strides = [1, 1]} : vector<32x64xf32> to vector<32x32xf32>
    %174 = arith.negf %173 : vector<32x32xf32>
    %175 = math.exp %174 : vector<32x32xf32>
    %cst_120 = arith.constant 1.000000e+00 : f32
    %176 = vector.broadcast %cst_120 : f32 to vector<32x32xf32>
    %177 = arith.addf %176, %175 : vector<32x32xf32>
    %178 = arith.divf %176, %177 : vector<32x32xf32>
    %179 = arith.mulf %172, %178 : vector<32x32xf32>
    %180 = arith.truncf %179 : vector<32x32xf32> to vector<32x32xbf16>
    %c2_121 = arith.constant 2 : index
    %c0_122 = arith.constant 0 : index
    %c0_123 = arith.constant 0 : index
    %181 = vector.load %arg11[%c2_121, %c0_122, %c0_123] : memref<4x32x64xbf16, #tpu.memory_space<vmem>>, vector<1x32x64xbf16>
    %182 = vector.shape_cast %181 : vector<1x32x64xbf16> to vector<32x64xbf16>
    %cst_124 = arith.constant dense<0.000000e+00> : vector<32x64xf32>
    %183 = tpu.matmul %180, %182, %cst_124 {dimension_numbers = #tpu.dot_dimension_numbers<[1], [0], [0], [1], [0, 0, 1, 1], [], []>} : vector<32x32xbf16>, vector<32x64xbf16>, vector<32x64xf32> -> vector<32x64xf32>
    %c2_125 = arith.constant 2 : index
    %c0_126 = arith.constant 0 : index
    %c0_127 = arith.constant 0 : index
    %184 = vector.load %arg12[%c2_125, %c0_126, %c0_127] : memref<4x1x64xf32, #tpu.memory_space<vmem>>, vector<1x1x64xf32>
    %185 = vector.shape_cast %184 : vector<1x1x64xf32> to vector<1x64xf32>
    %186 = vector.broadcast %185 : vector<1x64xf32> to vector<32x64xf32>
    %187 = arith.addf %183, %186 : vector<32x64xf32>
    %188 = vector.extract_strided_slice %187 {offsets = [0, 0], sizes = [32, 32], strides = [1, 1]} : vector<32x64xf32> to vector<32x32xf32>
    %189 = arith.addf %155, %188 : vector<32x32xf32>
    %190 = vector.broadcast %3 : vector<32x1xf32> to vector<32x32xf32>
    %191 = arith.mulf %189, %190 : vector<32x32xf32>
    %192 = vector.extract_strided_slice %187 {offsets = [0, 32], sizes = [32, 32], strides = [1, 1]} : vector<32x64xf32> to vector<32x32xf32>
    %193 = arith.addf %157, %192 : vector<32x32xf32>
    %c3_128 = arith.constant 3 : index
    %c0_129 = arith.constant 0 : index
    %c0_130 = arith.constant 0 : index
    %194 = vector.load %arg9[%c3_128, %c0_129, %c0_130] : memref<4x96x64xbf16, #tpu.memory_space<vmem>>, vector<1x96x64xbf16>
    %195 = vector.shape_cast %194 : vector<1x96x64xbf16> to vector<96x64xbf16>
    %c3_131 = arith.constant 3 : index
    %c0_132 = arith.constant 0 : index
    %c0_133 = arith.constant 0 : index
    %196 = vector.load %arg10[%c3_131, %c0_132, %c0_133] : memref<4x1x64xf32, #tpu.memory_space<vmem>>, vector<1x1x64xf32>
    %197 = vector.shape_cast %196 : vector<1x1x64xf32> to vector<1x64xf32>
    %c2_134 = arith.constant 2 : index
    %c0_135 = arith.constant 0 : index
    %198 = vector.load %arg16[%c2_134, %c0_135] : memref<36x32xf32, #tpu.memory_space<vmem>>, vector<32x32xf32>
    tpu.vector_store %arg16[%c2_134, %c0_135], %191 {strides = array<i32>} : memref<36x32xf32, #tpu.memory_space<vmem>>, vector<32x32xf32>,
    %c1_136 = arith.constant 1 : index
    %c0_137 = arith.constant 0 : index
    %199 = vector.load %arg16[%c1_136, %c0_137] : memref<36x32xf32, #tpu.memory_space<vmem>>, vector<32x32xf32>
    %c2_138 = arith.constant 2 : index
    %c0_139 = arith.constant 0 : index
    %200 = vector.load %arg16[%c2_138, %c0_139] : memref<36x32xf32, #tpu.memory_space<vmem>>, vector<32x32xf32>
    %c3_140 = arith.constant 3 : index
    %c0_141 = arith.constant 0 : index
    %201 = vector.load %arg16[%c3_140, %c0_141] : memref<36x32xf32, #tpu.memory_space<vmem>>, vector<32x32xf32>
    %202 = tpu.concatenate %199, %200, %201 in 1 : vector<32x32xf32>, vector<32x32xf32>, vector<32x32xf32> -> vector<32x96xf32>
    %203 = arith.truncf %202 : vector<32x96xf32> to vector<32x96xbf16>
    %cst_142 = arith.constant dense<0.000000e+00> : vector<32x64xf32>
    %204 = tpu.matmul %203, %195, %cst_142 {dimension_numbers = #tpu.dot_dimension_numbers<[1], [0], [0], [1], [0, 0, 1, 1], [], []>} : vector<32x96xbf16>, vector<96x64xbf16>, vector<32x64xf32> -> vector<32x64xf32>
    %205 = vector.broadcast %197 : vector<1x64xf32> to vector<32x64xf32>
    %206 = arith.addf %204, %205 : vector<32x64xf32>
    %207 = vector.extract_strided_slice %206 {offsets = [0, 0], sizes = [32, 32], strides = [1, 1]} : vector<32x64xf32> to vector<32x32xf32>
    %208 = math.tanh %207 : vector<32x32xf32>
    %209 = vector.extract_strided_slice %206 {offsets = [0, 32], sizes = [32, 32], strides = [1, 1]} : vector<32x64xf32> to vector<32x32xf32>
    %210 = arith.negf %209 : vector<32x32xf32>
    %211 = math.exp %210 : vector<32x32xf32>
    %cst_143 = arith.constant 1.000000e+00 : f32
    %212 = vector.broadcast %cst_143 : f32 to vector<32x32xf32>
    %213 = arith.addf %212, %211 : vector<32x32xf32>
    %214 = arith.divf %212, %213 : vector<32x32xf32>
    %215 = arith.mulf %208, %214 : vector<32x32xf32>
    %216 = arith.truncf %215 : vector<32x32xf32> to vector<32x32xbf16>
    %c3_144 = arith.constant 3 : index
    %c0_145 = arith.constant 0 : index
    %c0_146 = arith.constant 0 : index
    %217 = vector.load %arg11[%c3_144, %c0_145, %c0_146] : memref<4x32x64xbf16, #tpu.memory_space<vmem>>, vector<1x32x64xbf16>
    %218 = vector.shape_cast %217 : vector<1x32x64xbf16> to vector<32x64xbf16>
    %cst_147 = arith.constant dense<0.000000e+00> : vector<32x64xf32>
    %219 = tpu.matmul %216, %218, %cst_147 {dimension_numbers = #tpu.dot_dimension_numbers<[1], [0], [0], [1], [0, 0, 1, 1], [], []>} : vector<32x32xbf16>, vector<32x64xbf16>, vector<32x64xf32> -> vector<32x64xf32>
    %c3_148 = arith.constant 3 : index
    %c0_149 = arith.constant 0 : index
    %c0_150 = arith.constant 0 : index
    %220 = vector.load %arg12[%c3_148, %c0_149, %c0_150] : memref<4x1x64xf32, #tpu.memory_space<vmem>>, vector<1x1x64xf32>
    %221 = vector.shape_cast %220 : vector<1x1x64xf32> to vector<1x64xf32>
    %222 = vector.broadcast %221 : vector<1x64xf32> to vector<32x64xf32>
    %223 = arith.addf %219, %222 : vector<32x64xf32>
    %224 = vector.extract_strided_slice %223 {offsets = [0, 32], sizes = [32, 32], strides = [1, 1]} : vector<32x64xf32> to vector<32x32xf32>
    %225 = arith.addf %193, %224 : vector<32x32xf32>
    %226 = vector.broadcast %3 : vector<32x1xf32> to vector<32x32xf32>
    %227 = arith.mulf %225, %226 : vector<32x32xf32>
    %cst_151 = arith.constant dense<0.000000e+00> : vector<32xf32>
    %228 = vector.multi_reduction <add>, %227, %cst_151 [0] : vector<32x32xf32> to vector<32xf32>
    %229 = vector.shape_cast %228 : vector<32xf32> to vector<1x32xf32>
    %c0_152 = arith.constant 0 : index
    %c0_153 = arith.constant 0 : index
    %230 = vector.load %arg13[%c0_152, %c0_153] : memref<32x128xf32, #tpu.memory_space<vmem>>, vector<32x128xf32>
    %cst_154 = arith.constant dense<0.000000e+00> : vector<1x128xf32>
    %231 = tpu.matmul %229, %230, %cst_154 {dimension_numbers = #tpu.dot_dimension_numbers<[1], [0], [0], [1], [0, 0, 1, 1], [], []>} : vector<1x32xf32>, vector<32x128xf32>, vector<1x128xf32> -> vector<1x128xf32>
    %c0_155 = arith.constant 0 : index
    %c0_156 = arith.constant 0 : index
    %232 = vector.load %arg14[%c0_155, %c0_156] : memref<1x128xf32, #tpu.memory_space<vmem>>, vector<1x128xf32>
    %cst_157 = arith.constant 3.200000e+01 : f32
    %233 = vector.broadcast %cst_157 : f32 to vector<1x128xf32>
    %234 = arith.mulf %233, %232 : vector<1x128xf32>
    %235 = arith.addf %231, %234 : vector<1x128xf32>
    %cst_158 = arith.constant dense<0.000000e+00> : vector<1xf32>
    %236 = vector.multi_reduction <add>, %3, %cst_158 [0] : vector<32x1xf32> to vector<1xf32>
    %237 = vector.shape_cast %236 : vector<1xf32> to vector<1x1xf32>
    %cst_159 = arith.constant 1.000000e+00 : f32
    %238 = vector.broadcast %cst_159 : f32 to vector<1x1xf32>
    %239 = arith.maximumf %237, %238 : vector<1x1xf32>
    %240 = vector.broadcast %239 : vector<1x1xf32> to vector<1x128xf32>
    %241 = arith.divf %235, %240 : vector<1x128xf32>
    %c0_160 = arith.constant 0 : index
    %c0_161 = arith.constant 0 : index
    %c0_162 = arith.constant 0 : index
    %242 = vector.load %arg15[%c0_160, %c0_161, %c0_162] : memref<1x1x128xf32, #tpu.memory_space<vmem>>, vector<1x1x128xf32>
    %243 = vector.shape_cast %242 : vector<1x1x128xf32> to vector<1x128xf32>
    %244 = vector.shape_cast %241 : vector<1x128xf32> to vector<1x1x128xf32>
    tpu.vector_store %arg15[%c0_160, %c0_161, %c0_162], %244 {strides = array<i32>} : memref<1x1x128xf32, #tpu.memory_space<vmem>>, vector<1x1x128xf32>,
    return
  }
  func.func @transform_0(%arg0: i32) -> (i32, i32, i32) {
    %c0_i32 = arith.constant 0 : i32
    %c0_i32_0 = arith.constant 0 : i32
    %c0_i32_1 = arith.constant 0 : i32
    return %arg0, %c0_i32, %c0_i32_0 : i32, i32, i32
  }
  func.func @transform_1(%arg0: i32) -> (i32, i32, i32) {
    %c0_i32 = arith.constant 0 : i32
    %c0_i32_0 = arith.constant 0 : i32
    %c0_i32_1 = arith.constant 0 : i32
    return %arg0, %c0_i32, %c0_i32_0 : i32, i32, i32
  }
  func.func @transform_2(%arg0: i32) -> (i32, i32) {
    %c0_i32 = arith.constant 0 : i32
    %c0_i32_0 = arith.constant 0 : i32
    %c0_i32_1 = arith.constant 0 : i32
    return %c0_i32, %c0_i32_0 : i32, i32
  }
  func.func @transform_3(%arg0: i32) -> (i32, i32) {
    %c0_i32 = arith.constant 0 : i32
    %c0_i32_0 = arith.constant 0 : i32
    %c0_i32_1 = arith.constant 0 : i32
    return %c0_i32, %c0_i32_0 : i32, i32
  }
  func.func @transform_4(%arg0: i32) -> (i32, i32) {
    %c0_i32 = arith.constant 0 : i32
    %c0_i32_0 = arith.constant 0 : i32
    %c0_i32_1 = arith.constant 0 : i32
    return %c0_i32, %c0_i32_0 : i32, i32
  }
  func.func @transform_5(%arg0: i32) -> (i32, i32) {
    %c0_i32 = arith.constant 0 : i32
    %c0_i32_0 = arith.constant 0 : i32
    %c0_i32_1 = arith.constant 0 : i32
    return %c0_i32, %c0_i32_0 : i32, i32
  }
  func.func @transform_6(%arg0: i32) -> (i32, i32) {
    %c0_i32 = arith.constant 0 : i32
    %c0_i32_0 = arith.constant 0 : i32
    %c0_i32_1 = arith.constant 0 : i32
    return %c0_i32, %c0_i32_0 : i32, i32
  }
  func.func @transform_7(%arg0: i32) -> (i32, i32) {
    %c0_i32 = arith.constant 0 : i32
    %c0_i32_0 = arith.constant 0 : i32
    %c0_i32_1 = arith.constant 0 : i32
    return %c0_i32, %c0_i32_0 : i32, i32
  }
  func.func @transform_8(%arg0: i32) -> (i32, i32, i32) {
    %c0_i32 = arith.constant 0 : i32
    %c0_i32_0 = arith.constant 0 : i32
    %c0_i32_1 = arith.constant 0 : i32
    %c0_i32_2 = arith.constant 0 : i32
    return %c0_i32, %c0_i32_0, %c0_i32_1 : i32, i32, i32
  }
  func.func @transform_9(%arg0: i32) -> (i32, i32, i32) {
    %c0_i32 = arith.constant 0 : i32
    %c0_i32_0 = arith.constant 0 : i32
    %c0_i32_1 = arith.constant 0 : i32
    %c0_i32_2 = arith.constant 0 : i32
    return %c0_i32, %c0_i32_0, %c0_i32_1 : i32, i32, i32
  }
  func.func @transform_10(%arg0: i32) -> (i32, i32, i32) {
    %c0_i32 = arith.constant 0 : i32
    %c0_i32_0 = arith.constant 0 : i32
    %c0_i32_1 = arith.constant 0 : i32
    %c0_i32_2 = arith.constant 0 : i32
    return %c0_i32, %c0_i32_0, %c0_i32_1 : i32, i32, i32
  }
  func.func @transform_11(%arg0: i32) -> (i32, i32, i32) {
    %c0_i32 = arith.constant 0 : i32
    %c0_i32_0 = arith.constant 0 : i32
    %c0_i32_1 = arith.constant 0 : i32
    %c0_i32_2 = arith.constant 0 : i32
    return %c0_i32, %c0_i32_0, %c0_i32_1 : i32, i32, i32
  }
  func.func @transform_12(%arg0: i32) -> (i32, i32) {
    %c0_i32 = arith.constant 0 : i32
    %c0_i32_0 = arith.constant 0 : i32
    %c0_i32_1 = arith.constant 0 : i32
    return %c0_i32, %c0_i32_0 : i32, i32
  }
  func.func @transform_13(%arg0: i32) -> (i32, i32) {
    %c0_i32 = arith.constant 0 : i32
    %c0_i32_0 = arith.constant 0 : i32
    %c0_i32_1 = arith.constant 0 : i32
    return %c0_i32, %c0_i32_0 : i32, i32
  }
  func.func @transform_14(%arg0: i32) -> (i32, i32, i32) {
    %c0_i32 = arith.constant 0 : i32
    %c0_i32_0 = arith.constant 0 : i32
    %c0_i32_1 = arith.constant 0 : i32
    return %arg0, %c0_i32, %c0_i32_0 : i32, i32, i32
  }
}

module attributes {stable_mosaic.version = 11 : i64} {
  func.func @speaker_encoder_kernel(%arg0: i32, %arg1: memref<1x32x16xbf16, #tpu.memory_space<vmem>>, %arg2: memref<1x32x1xf32, #tpu.memory_space<vmem>>, %arg3: memref<16x32xbf16, #tpu.memory_space<vmem>>, %arg4: memref<1x32xf32, #tpu.memory_space<vmem>>, %arg5: memref<160x32xbf16, #tpu.memory_space<vmem>>, %arg6: memref<1x32xf32, #tpu.memory_space<vmem>>, %arg7: memref<160x32xbf16, #tpu.memory_space<vmem>>, %arg8: memref<1x32xf32, #tpu.memory_space<vmem>>, %arg9: memref<4x96x64xbf16, #tpu.memory_space<vmem>>, %arg10: memref<4x1x64xf32, #tpu.memory_space<vmem>>, %arg11: memref<4x32x64xbf16, #tpu.memory_space<vmem>>, %arg12: memref<4x1x64xf32, #tpu.memory_space<vmem>>, %arg13: memref<32x128xf32, #tpu.memory_space<vmem>>, %arg14: memref<1x128xf32, #tpu.memory_space<vmem>>, %arg15: memref<1x1x128xf32, #tpu.memory_space<vmem>>, %arg16: memref<36x32xf32, #tpu.memory_space<vmem>>) attributes {dimension_semantics = [#tpu.dimension_semantics<parallel>], iteration_bounds = array<i64: 2>, scalar_prefetch = 0 : i64, scratch_operands = 1 : i64, tpu.core_type = #tpu.core_type<tc>, window_params = [{transform_indices = @transform_0, window_bounds = array<i64: 1, 32, 16>}, {transform_indices = @transform_1, window_bounds = array<i64: 1, 32, 1>}, {pipeline_mode = #tpu.pipeline_mode<synchronous>, transform_indices = @transform_2, window_bounds = array<i64: 16, 32>}, {pipeline_mode = #tpu.pipeline_mode<synchronous>, transform_indices = @transform_3, window_bounds = array<i64: 1, 32>}, {pipeline_mode = #tpu.pipeline_mode<synchronous>, transform_indices = @transform_4, window_bounds = array<i64: 160, 32>}, {pipeline_mode = #tpu.pipeline_mode<synchronous>, transform_indices = @transform_5, window_bounds = array<i64: 1, 32>}, {pipeline_mode = #tpu.pipeline_mode<synchronous>, transform_indices = @transform_6, window_bounds = array<i64: 160, 32>}, {pipeline_mode = #tpu.pipeline_mode<synchronous>, transform_indices = @transform_7, window_bounds = array<i64: 1, 32>}, {pipeline_mode = #tpu.pipeline_mode<synchronous>, transform_indices = @transform_8, window_bounds = array<i64: 4, 96, 64>}, {pipeline_mode = #tpu.pipeline_mode<synchronous>, transform_indices = @transform_9, window_bounds = array<i64: 4, 1, 64>}, {pipeline_mode = #tpu.pipeline_mode<synchronous>, transform_indices = @transform_10, window_bounds = array<i64: 4, 32, 64>}, {pipeline_mode = #tpu.pipeline_mode<synchronous>, transform_indices = @transform_11, window_bounds = array<i64: 4, 1, 64>}, {pipeline_mode = #tpu.pipeline_mode<synchronous>, transform_indices = @transform_12, window_bounds = array<i64: 32, 128>}, {pipeline_mode = #tpu.pipeline_mode<synchronous>, transform_indices = @transform_13, window_bounds = array<i64: 1, 128>}, {transform_indices = @transform_14, window_bounds = array<i64: 1, 1, 128>}]} {
    %c0 = arith.constant 0 : index
    %c0_0 = arith.constant 0 : index
    %c0_1 = arith.constant 0 : index
    %0 = vector.load %arg1[%c0, %c0_0, %c0_1] : memref<1x32x16xbf16, #tpu.memory_space<vmem>>, vector<1x32x16xbf16>
    %1 = vector.shape_cast %0 : vector<1x32x16xbf16> to vector<32x16xbf16>
    %c0_2 = arith.constant 0 : index
    %c0_3 = arith.constant 0 : index
    %c0_4 = arith.constant 0 : index
    %2 = vector.load %arg2[%c0_2, %c0_3, %c0_4] : memref<1x32x1xf32, #tpu.memory_space<vmem>>, vector<1x32x1xf32>
    %3 = vector.shape_cast %2 : vector<1x32x1xf32> to vector<32x1xf32>
    %cst = arith.constant 0.000000e+00 : f32
    %4 = vector.broadcast %cst : f32 to vector<2x32xf32>
    %c0_5 = arith.constant 0 : index
    %c0_6 = arith.constant 0 : index
    %5 = vector.load %arg16[%c0_5, %c0_6] : memref<36x32xf32, #tpu.memory_space<vmem>>, vector<2x32xf32>
    tpu.vector_store %arg16[%c0_5, %c0_6], %4 {strides = array<i32>} : memref<36x32xf32, #tpu.memory_space<vmem>>, vector<2x32xf32>,
    %c34 = arith.constant 34 : index
    %c0_7 = arith.constant 0 : index
    %6 = vector.load %arg16[%c34, %c0_7] : memref<36x32xf32, #tpu.memory_space<vmem>>, vector<2x32xf32>
    tpu.vector_store %arg16[%c34, %c0_7], %4 {strides = array<i32>} : memref<36x32xf32, #tpu.memory_space<vmem>>, vector<2x32xf32>,
    %c0_8 = arith.constant 0 : index
    %c0_9 = arith.constant 0 : index
    %7 = vector.load %arg3[%c0_8, %c0_9] : memref<16x32xbf16, #tpu.memory_space<vmem>>, vector<16x32xbf16>
    %cst_10 = arith.constant dense<0.000000e+00> : vector<32x32xf32>
    %8 = tpu.matmul %1, %7, %cst_10 {dimension_numbers = #tpu.dot_dimension_numbers<[1], [0], [0], [1], [0, 0, 1, 1], [], []>} : vector<32x16xbf16>, vector<16x32xbf16>, vector<32x32xf32> -> vector<32x32xf32>
    %c0_11 = arith.constant 0 : index
    %c0_12 = arith.constant 0 : index
    %9 = vector.load %arg4[%c0_11, %c0_12] : memref<1x32xf32, #tpu.memory_space<vmem>>, vector<1x32xf32>
    %10 = vector.broadcast %9 : vector<1x32xf32> to vector<32x32xf32>
    %11 = arith.addf %8, %10 : vector<32x32xf32>
    %cst_13 = arith.constant 2.000000e+01 : f32
    %12 = vector.broadcast %cst_13 : f32 to vector<32x32xf32>
    %13 = arith.minimumf %11, %12 : vector<32x32xf32>
    %14 = math.exp %13 : vector<32x32xf32>
    %cst_14 = arith.constant 1.000000e+00 : f32
    %15 = vector.broadcast %cst_14 : f32 to vector<32x32xf32>
    %16 = arith.addf %15, %14 : vector<32x32xf32>
    %cst_15 = arith.constant 1.000000e+00 : f32
    %17 = vector.broadcast %cst_15 : f32 to vector<32x32xf32>
    %18 = arith.addf %17, %14 : vector<32x32xf32>
    %19 = arith.mulf %16, %18 : vector<32x32xf32>
    %cst_16 = arith.constant 1.000000e+00 : f32
    %20 = vector.broadcast %cst_16 : f32 to vector<32x32xf32>
    %21 = arith.subf %19, %20 : vector<32x32xf32>
    %22 = arith.mulf %11, %21 : vector<32x32xf32>
    %cst_17 = arith.constant 1.000000e+00 : f32
    %23 = vector.broadcast %cst_17 : f32 to vector<32x32xf32>
    %24 = arith.addf %19, %23 : vector<32x32xf32>
    %25 = tpu.reciprocal %24 {approx = true} : vector<32x32xf32> -> vector<32x32xf32>
    %26 = arith.mulf %22, %25 : vector<32x32xf32>
    %c0_18 = arith.constant 0 : index
    %c0_19 = arith.constant 0 : index
    %27 = vector.load %arg5[%c0_18, %c0_19] : memref<160x32xbf16, #tpu.memory_space<vmem>>, vector<160x32xbf16>
    %c0_20 = arith.constant 0 : index
    %c0_21 = arith.constant 0 : index
    %28 = vector.load %arg6[%c0_20, %c0_21] : memref<1x32xf32, #tpu.memory_space<vmem>>, vector<1x32xf32>
    %c2 = arith.constant 2 : index
    %c0_22 = arith.constant 0 : index
    %29 = vector.load %arg16[%c2, %c0_22] : memref<36x32xf32, #tpu.memory_space<vmem>>, vector<32x32xf32>
    tpu.vector_store %arg16[%c2, %c0_22], %26 {strides = array<i32>} : memref<36x32xf32, #tpu.memory_space<vmem>>, vector<32x32xf32>,
    %c0_23 = arith.constant 0 : index
    %c0_24 = arith.constant 0 : index
    %30 = vector.load %arg16[%c0_23, %c0_24] : memref<36x32xf32, #tpu.memory_space<vmem>>, vector<32x32xf32>
    %c1 = arith.constant 1 : index
    %c0_25 = arith.constant 0 : index
    %31 = vector.load %arg16[%c1, %c0_25] : memref<36x32xf32, #tpu.memory_space<vmem>>, vector<32x32xf32>
    %c2_26 = arith.constant 2 : index
    %c0_27 = arith.constant 0 : index
    %32 = vector.load %arg16[%c2_26, %c0_27] : memref<36x32xf32, #tpu.memory_space<vmem>>, vector<32x32xf32>
    %c3 = arith.constant 3 : index
    %c0_28 = arith.constant 0 : index
    %33 = vector.load %arg16[%c3, %c0_28] : memref<36x32xf32, #tpu.memory_space<vmem>>, vector<32x32xf32>
    %c4 = arith.constant 4 : index
    %c0_29 = arith.constant 0 : index
    %34 = vector.load %arg16[%c4, %c0_29] : memref<36x32xf32, #tpu.memory_space<vmem>>, vector<32x32xf32>
    %35 = tpu.concatenate %30, %31, %32, %33, %34 in 1 : vector<32x32xf32>, vector<32x32xf32>, vector<32x32xf32>, vector<32x32xf32>, vector<32x32xf32> -> vector<32x160xf32>
    %36 = arith.truncf %35 : vector<32x160xf32> to vector<32x160xbf16>
    %cst_30 = arith.constant dense<0.000000e+00> : vector<32x32xf32>
    %37 = tpu.matmul %36, %27, %cst_30 {dimension_numbers = #tpu.dot_dimension_numbers<[1], [0], [0], [1], [0, 0, 1, 1], [], []>} : vector<32x160xbf16>, vector<160x32xbf16>, vector<32x32xf32> -> vector<32x32xf32>
    %38 = vector.broadcast %28 : vector<1x32xf32> to vector<32x32xf32>
    %39 = arith.addf %37, %38 : vector<32x32xf32>
    %cst_31 = arith.constant 2.000000e+01 : f32
    %40 = vector.broadcast %cst_31 : f32 to vector<32x32xf32>
    %41 = arith.minimumf %39, %40 : vector<32x32xf32>
    %42 = math.exp %41 : vector<32x32xf32>
    %cst_32 = arith.constant 1.000000e+00 : f32
    %43 = vector.broadcast %cst_32 : f32 to vector<32x32xf32>
    %44 = arith.addf %43, %42 : vector<32x32xf32>
    %cst_33 = arith.constant 1.000000e+00 : f32
    %45 = vector.broadcast %cst_33 : f32 to vector<32x32xf32>
    %46 = arith.addf %45, %42 : vector<32x32xf32>
    %47 = arith.mulf %44, %46 : vector<32x32xf32>
    %cst_34 = arith.constant 1.000000e+00 : f32
    %48 = vector.broadcast %cst_34 : f32 to vector<32x32xf32>
    %49 = arith.subf %47, %48 : vector<32x32xf32>
    %50 = arith.mulf %39, %49 : vector<32x32xf32>
    %cst_35 = arith.constant 1.000000e+00 : f32
    %51 = vector.broadcast %cst_35 : f32 to vector<32x32xf32>
    %52 = arith.addf %47, %51 : vector<32x32xf32>
    %53 = tpu.reciprocal %52 {approx = true} : vector<32x32xf32> -> vector<32x32xf32>
    %54 = arith.mulf %50, %53 : vector<32x32xf32>
    %c0_36 = arith.constant 0 : index
    %c0_37 = arith.constant 0 : index
    %55 = vector.load %arg7[%c0_36, %c0_37] : memref<160x32xbf16, #tpu.memory_space<vmem>>, vector<160x32xbf16>
    %c0_38 = arith.constant 0 : index
    %c0_39 = arith.constant 0 : index
    %56 = vector.load %arg8[%c0_38, %c0_39] : memref<1x32xf32, #tpu.memory_space<vmem>>, vector<1x32xf32>
    %c2_40 = arith.constant 2 : index
    %c0_41 = arith.constant 0 : index
    %57 = vector.load %arg16[%c2_40, %c0_41] : memref<36x32xf32, #tpu.memory_space<vmem>>, vector<32x32xf32>
    tpu.vector_store %arg16[%c2_40, %c0_41], %54 {strides = array<i32>} : memref<36x32xf32, #tpu.memory_space<vmem>>, vector<32x32xf32>,
    %c0_42 = arith.constant 0 : index
    %c0_43 = arith.constant 0 : index
    %58 = vector.load %arg16[%c0_42, %c0_43] : memref<36x32xf32, #tpu.memory_space<vmem>>, vector<32x32xf32>
    %c1_44 = arith.constant 1 : index
    %c0_45 = arith.constant 0 : index
    %59 = vector.load %arg16[%c1_44, %c0_45] : memref<36x32xf32, #tpu.memory_space<vmem>>, vector<32x32xf32>
    %c2_46 = arith.constant 2 : index
    %c0_47 = arith.constant 0 : index
    %60 = vector.load %arg16[%c2_46, %c0_47] : memref<36x32xf32, #tpu.memory_space<vmem>>, vector<32x32xf32>
    %c3_48 = arith.constant 3 : index
    %c0_49 = arith.constant 0 : index
    %61 = vector.load %arg16[%c3_48, %c0_49] : memref<36x32xf32, #tpu.memory_space<vmem>>, vector<32x32xf32>
    %c4_50 = arith.constant 4 : index
    %c0_51 = arith.constant 0 : index
    %62 = vector.load %arg16[%c4_50, %c0_51] : memref<36x32xf32, #tpu.memory_space<vmem>>, vector<32x32xf32>
    %63 = tpu.concatenate %58, %59, %60, %61, %62 in 1 : vector<32x32xf32>, vector<32x32xf32>, vector<32x32xf32>, vector<32x32xf32>, vector<32x32xf32> -> vector<32x160xf32>
    %64 = arith.truncf %63 : vector<32x160xf32> to vector<32x160xbf16>
    %cst_52 = arith.constant dense<0.000000e+00> : vector<32x32xf32>
    %65 = tpu.matmul %64, %55, %cst_52 {dimension_numbers = #tpu.dot_dimension_numbers<[1], [0], [0], [1], [0, 0, 1, 1], [], []>} : vector<32x160xbf16>, vector<160x32xbf16>, vector<32x32xf32> -> vector<32x32xf32>
    %66 = vector.broadcast %56 : vector<1x32xf32> to vector<32x32xf32>
    %67 = arith.addf %65, %66 : vector<32x32xf32>
    %cst_53 = arith.constant 2.000000e+01 : f32
    %68 = vector.broadcast %cst_53 : f32 to vector<32x32xf32>
    %69 = arith.minimumf %67, %68 : vector<32x32xf32>
    %70 = math.exp %69 : vector<32x32xf32>
    %cst_54 = arith.constant 1.000000e+00 : f32
    %71 = vector.broadcast %cst_54 : f32 to vector<32x32xf32>
    %72 = arith.addf %71, %70 : vector<32x32xf32>
    %cst_55 = arith.constant 1.000000e+00 : f32
    %73 = vector.broadcast %cst_55 : f32 to vector<32x32xf32>
    %74 = arith.addf %73, %70 : vector<32x32xf32>
    %75 = arith.mulf %72, %74 : vector<32x32xf32>
    %cst_56 = arith.constant 1.000000e+00 : f32
    %76 = vector.broadcast %cst_56 : f32 to vector<32x32xf32>
    %77 = arith.subf %75, %76 : vector<32x32xf32>
    %78 = arith.mulf %67, %77 : vector<32x32xf32>
    %cst_57 = arith.constant 1.000000e+00 : f32
    %79 = vector.broadcast %cst_57 : f32 to vector<32x32xf32>
    %80 = arith.addf %75, %79 : vector<32x32xf32>
    %81 = tpu.reciprocal %80 {approx = true} : vector<32x32xf32> -> vector<32x32xf32>
    %82 = arith.mulf %78, %81 : vector<32x32xf32>
    %83 = vector.broadcast %3 : vector<32x1xf32> to vector<32x32xf32>
    %84 = arith.mulf %82, %83 : vector<32x32xf32>
    %cst_58 = arith.constant 0.000000e+00 : f32
    %85 = vector.broadcast %cst_58 : f32 to vector<32x32xf32>
    %c0_59 = arith.constant 0 : index
    %c0_60 = arith.constant 0 : index
    %c0_61 = arith.constant 0 : index
    %86 = vector.load %arg9[%c0_59, %c0_60, %c0_61] : memref<4x96x64xbf16, #tpu.memory_space<vmem>>, vector<1x96x64xbf16>
    %87 = vector.shape_cast %86 : vector<1x96x64xbf16> to vector<96x64xbf16>
    %c0_62 = arith.constant 0 : index
    %c0_63 = arith.constant 0 : index
    %c0_64 = arith.constant 0 : index
    %88 = vector.load %arg10[%c0_62, %c0_63, %c0_64] : memref<4x1x64xf32, #tpu.memory_space<vmem>>, vector<1x1x64xf32>
    %89 = vector.shape_cast %88 : vector<1x1x64xf32> to vector<1x64xf32>
    %c2_65 = arith.constant 2 : index
    %c0_66 = arith.constant 0 : index
    %90 = vector.load %arg16[%c2_65, %c0_66] : memref<36x32xf32, #tpu.memory_space<vmem>>, vector<32x32xf32>
    tpu.vector_store %arg16[%c2_65, %c0_66], %84 {strides = array<i32>} : memref<36x32xf32, #tpu.memory_space<vmem>>, vector<32x32xf32>,
    %c1_67 = arith.constant 1 : index
    %c0_68 = arith.constant 0 : index
    %91 = vector.load %arg16[%c1_67, %c0_68] : memref<36x32xf32, #tpu.memory_space<vmem>>, vector<32x32xf32>
    %c2_69 = arith.constant 2 : index
    %c0_70 = arith.constant 0 : index
    %92 = vector.load %arg16[%c2_69, %c0_70] : memref<36x32xf32, #tpu.memory_space<vmem>>, vector<32x32xf32>
    %c3_71 = arith.constant 3 : index
    %c0_72 = arith.constant 0 : index
    %93 = vector.load %arg16[%c3_71, %c0_72] : memref<36x32xf32, #tpu.memory_space<vmem>>, vector<32x32xf32>
    %94 = tpu.concatenate %91, %92, %93 in 1 : vector<32x32xf32>, vector<32x32xf32>, vector<32x32xf32> -> vector<32x96xf32>
    %95 = arith.truncf %94 : vector<32x96xf32> to vector<32x96xbf16>
    %cst_73 = arith.constant dense<0.000000e+00> : vector<32x64xf32>
    %96 = tpu.matmul %95, %87, %cst_73 {dimension_numbers = #tpu.dot_dimension_numbers<[1], [0], [0], [1], [0, 0, 1, 1], [], []>} : vector<32x96xbf16>, vector<96x64xbf16>, vector<32x64xf32> -> vector<32x64xf32>
    %97 = vector.broadcast %89 : vector<1x64xf32> to vector<32x64xf32>
    %98 = arith.addf %96, %97 : vector<32x64xf32>
    %99 = vector.extract_strided_slice %98 {offsets = [0, 0], sizes = [32, 32], strides = [1, 1]} : vector<32x64xf32> to vector<32x32xf32>
    %100 = math.tanh %99 : vector<32x32xf32>
    %101 = vector.extract_strided_slice %98 {offsets = [0, 32], sizes = [32, 32], strides = [1, 1]} : vector<32x64xf32> to vector<32x32xf32>
    %102 = arith.negf %101 : vector<32x32xf32>
    %103 = math.exp %102 : vector<32x32xf32>
    %cst_74 = arith.constant 1.000000e+00 : f32
    %104 = vector.broadcast %cst_74 : f32 to vector<32x32xf32>
    %105 = arith.addf %104, %103 : vector<32x32xf32>
    %106 = arith.divf %104, %105 : vector<32x32xf32>
    %107 = arith.mulf %100, %106 : vector<32x32xf32>
    %108 = arith.truncf %107 : vector<32x32xf32> to vector<32x32xbf16>
    %c0_75 = arith.constant 0 : index
    %c0_76 = arith.constant 0 : index
    %c0_77 = arith.constant 0 : index
    %109 = vector.load %arg11[%c0_75, %c0_76, %c0_77] : memref<4x32x64xbf16, #tpu.memory_space<vmem>>, vector<1x32x64xbf16>
    %110 = vector.shape_cast %109 : vector<1x32x64xbf16> to vector<32x64xbf16>
    %cst_78 = arith.constant dense<0.000000e+00> : vector<32x64xf32>
    %111 = tpu.matmul %108, %110, %cst_78 {dimension_numbers = #tpu.dot_dimension_numbers<[1], [0], [0], [1], [0, 0, 1, 1], [], []>} : vector<32x32xbf16>, vector<32x64xbf16>, vector<32x64xf32> -> vector<32x64xf32>
    %c0_79 = arith.constant 0 : index
    %c0_80 = arith.constant 0 : index
    %c0_81 = arith.constant 0 : index
    %112 = vector.load %arg12[%c0_79, %c0_80, %c0_81] : memref<4x1x64xf32, #tpu.memory_space<vmem>>, vector<1x1x64xf32>
    %113 = vector.shape_cast %112 : vector<1x1x64xf32> to vector<1x64xf32>
    %114 = vector.broadcast %113 : vector<1x64xf32> to vector<32x64xf32>
    %115 = arith.addf %111, %114 : vector<32x64xf32>
    %116 = vector.extract_strided_slice %115 {offsets = [0, 0], sizes = [32, 32], strides = [1, 1]} : vector<32x64xf32> to vector<32x32xf32>
    %117 = arith.addf %84, %116 : vector<32x32xf32>
    %118 = vector.broadcast %3 : vector<32x1xf32> to vector<32x32xf32>
    %119 = arith.mulf %117, %118 : vector<32x32xf32>
    %120 = vector.extract_strided_slice %115 {offsets = [0, 32], sizes = [32, 32], strides = [1, 1]} : vector<32x64xf32> to vector<32x32xf32>
    %121 = arith.addf %85, %120 : vector<32x32xf32>
    %c1_82 = arith.constant 1 : index
    %c0_83 = arith.constant 0 : index
    %c0_84 = arith.constant 0 : index
    %122 = vector.load %arg9[%c1_82, %c0_83, %c0_84] : memref<4x96x64xbf16, #tpu.memory_space<vmem>>, vector<1x96x64xbf16>
    %123 = vector.shape_cast %122 : vector<1x96x64xbf16> to vector<96x64xbf16>
    %c1_85 = arith.constant 1 : index
    %c0_86 = arith.constant 0 : index
    %c0_87 = arith.constant 0 : index
    %124 = vector.load %arg10[%c1_85, %c0_86, %c0_87] : memref<4x1x64xf32, #tpu.memory_space<vmem>>, vector<1x1x64xf32>
    %125 = vector.shape_cast %124 : vector<1x1x64xf32> to vector<1x64xf32>
    %c2_88 = arith.constant 2 : index
    %c0_89 = arith.constant 0 : index
    %126 = vector.load %arg16[%c2_88, %c0_89] : memref<36x32xf32, #tpu.memory_space<vmem>>, vector<32x32xf32>
    tpu.vector_store %arg16[%c2_88, %c0_89], %119 {strides = array<i32>} : memref<36x32xf32, #tpu.memory_space<vmem>>, vector<32x32xf32>,
    %c1_90 = arith.constant 1 : index
    %c0_91 = arith.constant 0 : index
    %127 = vector.load %arg16[%c1_90, %c0_91] : memref<36x32xf32, #tpu.memory_space<vmem>>, vector<32x32xf32>
    %c2_92 = arith.constant 2 : index
    %c0_93 = arith.constant 0 : index
    %128 = vector.load %arg16[%c2_92, %c0_93] : memref<36x32xf32, #tpu.memory_space<vmem>>, vector<32x32xf32>
    %c3_94 = arith.constant 3 : index
    %c0_95 = arith.constant 0 : index
    %129 = vector.load %arg16[%c3_94, %c0_95] : memref<36x32xf32, #tpu.memory_space<vmem>>, vector<32x32xf32>
    %130 = tpu.concatenate %127, %128, %129 in 1 : vector<32x32xf32>, vector<32x32xf32>, vector<32x32xf32> -> vector<32x96xf32>
    %131 = arith.truncf %130 : vector<32x96xf32> to vector<32x96xbf16>
    %cst_96 = arith.constant dense<0.000000e+00> : vector<32x64xf32>
    %132 = tpu.matmul %131, %123, %cst_96 {dimension_numbers = #tpu.dot_dimension_numbers<[1], [0], [0], [1], [0, 0, 1, 1], [], []>} : vector<32x96xbf16>, vector<96x64xbf16>, vector<32x64xf32> -> vector<32x64xf32>
    %133 = vector.broadcast %125 : vector<1x64xf32> to vector<32x64xf32>
    %134 = arith.addf %132, %133 : vector<32x64xf32>
    %135 = vector.extract_strided_slice %134 {offsets = [0, 0], sizes = [32, 32], strides = [1, 1]} : vector<32x64xf32> to vector<32x32xf32>
    %136 = math.tanh %135 : vector<32x32xf32>
    %137 = vector.extract_strided_slice %134 {offsets = [0, 32], sizes = [32, 32], strides = [1, 1]} : vector<32x64xf32> to vector<32x32xf32>
    %138 = arith.negf %137 : vector<32x32xf32>
    %139 = math.exp %138 : vector<32x32xf32>
    %cst_97 = arith.constant 1.000000e+00 : f32
    %140 = vector.broadcast %cst_97 : f32 to vector<32x32xf32>
    %141 = arith.addf %140, %139 : vector<32x32xf32>
    %142 = arith.divf %140, %141 : vector<32x32xf32>
    %143 = arith.mulf %136, %142 : vector<32x32xf32>
    %144 = arith.truncf %143 : vector<32x32xf32> to vector<32x32xbf16>
    %c1_98 = arith.constant 1 : index
    %c0_99 = arith.constant 0 : index
    %c0_100 = arith.constant 0 : index
    %145 = vector.load %arg11[%c1_98, %c0_99, %c0_100] : memref<4x32x64xbf16, #tpu.memory_space<vmem>>, vector<1x32x64xbf16>
    %146 = vector.shape_cast %145 : vector<1x32x64xbf16> to vector<32x64xbf16>
    %cst_101 = arith.constant dense<0.000000e+00> : vector<32x64xf32>
    %147 = tpu.matmul %144, %146, %cst_101 {dimension_numbers = #tpu.dot_dimension_numbers<[1], [0], [0], [1], [0, 0, 1, 1], [], []>} : vector<32x32xbf16>, vector<32x64xbf16>, vector<32x64xf32> -> vector<32x64xf32>
    %c1_102 = arith.constant 1 : index
    %c0_103 = arith.constant 0 : index
    %c0_104 = arith.constant 0 : index
    %148 = vector.load %arg12[%c1_102, %c0_103, %c0_104] : memref<4x1x64xf32, #tpu.memory_space<vmem>>, vector<1x1x64xf32>
    %149 = vector.shape_cast %148 : vector<1x1x64xf32> to vector<1x64xf32>
    %150 = vector.broadcast %149 : vector<1x64xf32> to vector<32x64xf32>
    %151 = arith.addf %147, %150 : vector<32x64xf32>
    %152 = vector.extract_strided_slice %151 {offsets = [0, 0], sizes = [32, 32], strides = [1, 1]} : vector<32x64xf32> to vector<32x32xf32>
    %153 = arith.addf %119, %152 : vector<32x32xf32>
    %154 = vector.broadcast %3 : vector<32x1xf32> to vector<32x32xf32>
    %155 = arith.mulf %153, %154 : vector<32x32xf32>
    %156 = vector.extract_strided_slice %151 {offsets = [0, 32], sizes = [32, 32], strides = [1, 1]} : vector<32x64xf32> to vector<32x32xf32>
    %157 = arith.addf %121, %156 : vector<32x32xf32>
    %c2_105 = arith.constant 2 : index
    %c0_106 = arith.constant 0 : index
    %c0_107 = arith.constant 0 : index
    %158 = vector.load %arg9[%c2_105, %c0_106, %c0_107] : memref<4x96x64xbf16, #tpu.memory_space<vmem>>, vector<1x96x64xbf16>
    %159 = vector.shape_cast %158 : vector<1x96x64xbf16> to vector<96x64xbf16>
    %c2_108 = arith.constant 2 : index
    %c0_109 = arith.constant 0 : index
    %c0_110 = arith.constant 0 : index
    %160 = vector.load %arg10[%c2_108, %c0_109, %c0_110] : memref<4x1x64xf32, #tpu.memory_space<vmem>>, vector<1x1x64xf32>
    %161 = vector.shape_cast %160 : vector<1x1x64xf32> to vector<1x64xf32>
    %c2_111 = arith.constant 2 : index
    %c0_112 = arith.constant 0 : index
    %162 = vector.load %arg16[%c2_111, %c0_112] : memref<36x32xf32, #tpu.memory_space<vmem>>, vector<32x32xf32>
    tpu.vector_store %arg16[%c2_111, %c0_112], %155 {strides = array<i32>} : memref<36x32xf32, #tpu.memory_space<vmem>>, vector<32x32xf32>,
    %c1_113 = arith.constant 1 : index
    %c0_114 = arith.constant 0 : index
    %163 = vector.load %arg16[%c1_113, %c0_114] : memref<36x32xf32, #tpu.memory_space<vmem>>, vector<32x32xf32>
    %c2_115 = arith.constant 2 : index
    %c0_116 = arith.constant 0 : index
    %164 = vector.load %arg16[%c2_115, %c0_116] : memref<36x32xf32, #tpu.memory_space<vmem>>, vector<32x32xf32>
    %c3_117 = arith.constant 3 : index
    %c0_118 = arith.constant 0 : index
    %165 = vector.load %arg16[%c3_117, %c0_118] : memref<36x32xf32, #tpu.memory_space<vmem>>, vector<32x32xf32>
    %166 = tpu.concatenate %163, %164, %165 in 1 : vector<32x32xf32>, vector<32x32xf32>, vector<32x32xf32> -> vector<32x96xf32>
    %167 = arith.truncf %166 : vector<32x96xf32> to vector<32x96xbf16>
    %cst_119 = arith.constant dense<0.000000e+00> : vector<32x64xf32>
    %168 = tpu.matmul %167, %159, %cst_119 {dimension_numbers = #tpu.dot_dimension_numbers<[1], [0], [0], [1], [0, 0, 1, 1], [], []>} : vector<32x96xbf16>, vector<96x64xbf16>, vector<32x64xf32> -> vector<32x64xf32>
    %169 = vector.broadcast %161 : vector<1x64xf32> to vector<32x64xf32>
    %170 = arith.addf %168, %169 : vector<32x64xf32>
    %171 = vector.extract_strided_slice %170 {offsets = [0, 0], sizes = [32, 32], strides = [1, 1]} : vector<32x64xf32> to vector<32x32xf32>
    %172 = math.tanh %171 : vector<32x32xf32>
    %173 = vector.extract_strided_slice %170 {offsets = [0, 32], sizes = [32, 32], strides = [1, 1]} : vector<32x64xf32> to vector<32x32xf32>
    %174 = arith.negf %173 : vector<32x32xf32>
    %175 = math.exp %174 : vector<32x32xf32>
    %cst_120 = arith.constant 1.000000e+00 : f32
    %176 = vector.broadcast %cst_120 : f32 to vector<32x32xf32>
    %177 = arith.addf %176, %175 : vector<32x32xf32>
    %178 = arith.divf %176, %177 : vector<32x32xf32>
    %179 = arith.mulf %172, %178 : vector<32x32xf32>
    %180 = arith.truncf %179 : vector<32x32xf32> to vector<32x32xbf16>
    %c2_121 = arith.constant 2 : index
    %c0_122 = arith.constant 0 : index
    %c0_123 = arith.constant 0 : index
    %181 = vector.load %arg11[%c2_121, %c0_122, %c0_123] : memref<4x32x64xbf16, #tpu.memory_space<vmem>>, vector<1x32x64xbf16>
    %182 = vector.shape_cast %181 : vector<1x32x64xbf16> to vector<32x64xbf16>
    %cst_124 = arith.constant dense<0.000000e+00> : vector<32x64xf32>
    %183 = tpu.matmul %180, %182, %cst_124 {dimension_numbers = #tpu.dot_dimension_numbers<[1], [0], [0], [1], [0, 0, 1, 1], [], []>} : vector<32x32xbf16>, vector<32x64xbf16>, vector<32x64xf32> -> vector<32x64xf32>
    %c2_125 = arith.constant 2 : index
    %c0_126 = arith.constant 0 : index
    %c0_127 = arith.constant 0 : index
    %184 = vector.load %arg12[%c2_125, %c0_126, %c0_127] : memref<4x1x64xf32, #tpu.memory_space<vmem>>, vector<1x1x64xf32>
    %185 = vector.shape_cast %184 : vector<1x1x64xf32> to vector<1x64xf32>
    %186 = vector.broadcast %185 : vector<1x64xf32> to vector<32x64xf32>
    %187 = arith.addf %183, %186 : vector<32x64xf32>
    %188 = vector.extract_strided_slice %187 {offsets = [0, 0], sizes = [32, 32], strides = [1, 1]} : vector<32x64xf32> to vector<32x32xf32>
    %189 = arith.addf %155, %188 : vector<32x32xf32>
    %190 = vector.broadcast %3 : vector<32x1xf32> to vector<32x32xf32>
    %191 = arith.mulf %189, %190 : vector<32x32xf32>
    %192 = vector.extract_strided_slice %187 {offsets = [0, 32], sizes = [32, 32], strides = [1, 1]} : vector<32x64xf32> to vector<32x32xf32>
    %193 = arith.addf %157, %192 : vector<32x32xf32>
    %c3_128 = arith.constant 3 : index
    %c0_129 = arith.constant 0 : index
    %c0_130 = arith.constant 0 : index
    %194 = vector.load %arg9[%c3_128, %c0_129, %c0_130] : memref<4x96x64xbf16, #tpu.memory_space<vmem>>, vector<1x96x64xbf16>
    %195 = vector.shape_cast %194 : vector<1x96x64xbf16> to vector<96x64xbf16>
    %c3_131 = arith.constant 3 : index
    %c0_132 = arith.constant 0 : index
    %c0_133 = arith.constant 0 : index
    %196 = vector.load %arg10[%c3_131, %c0_132, %c0_133] : memref<4x1x64xf32, #tpu.memory_space<vmem>>, vector<1x1x64xf32>
    %197 = vector.shape_cast %196 : vector<1x1x64xf32> to vector<1x64xf32>
    %c2_134 = arith.constant 2 : index
    %c0_135 = arith.constant 0 : index
    %198 = vector.load %arg16[%c2_134, %c0_135] : memref<36x32xf32, #tpu.memory_space<vmem>>, vector<32x32xf32>
    tpu.vector_store %arg16[%c2_134, %c0_135], %191 {strides = array<i32>} : memref<36x32xf32, #tpu.memory_space<vmem>>, vector<32x32xf32>,
    %c1_136 = arith.constant 1 : index
    %c0_137 = arith.constant 0 : index
    %199 = vector.load %arg16[%c1_136, %c0_137] : memref<36x32xf32, #tpu.memory_space<vmem>>, vector<32x32xf32>
    %c2_138 = arith.constant 2 : index
    %c0_139 = arith.constant 0 : index
    %200 = vector.load %arg16[%c2_138, %c0_139] : memref<36x32xf32, #tpu.memory_space<vmem>>, vector<32x32xf32>
    %c3_140 = arith.constant 3 : index
    %c0_141 = arith.constant 0 : index
    %201 = vector.load %arg16[%c3_140, %c0_141] : memref<36x32xf32, #tpu.memory_space<vmem>>, vector<32x32xf32>
    %202 = tpu.concatenate %199, %200, %201 in 1 : vector<32x32xf32>, vector<32x32xf32>, vector<32x32xf32> -> vector<32x96xf32>
    %203 = arith.truncf %202 : vector<32x96xf32> to vector<32x96xbf16>
    %cst_142 = arith.constant dense<0.000000e+00> : vector<32x64xf32>
    %204 = tpu.matmul %203, %195, %cst_142 {dimension_numbers = #tpu.dot_dimension_numbers<[1], [0], [0], [1], [0, 0, 1, 1], [], []>} : vector<32x96xbf16>, vector<96x64xbf16>, vector<32x64xf32> -> vector<32x64xf32>
    %205 = vector.broadcast %197 : vector<1x64xf32> to vector<32x64xf32>
    %206 = arith.addf %204, %205 : vector<32x64xf32>
    %207 = vector.extract_strided_slice %206 {offsets = [0, 0], sizes = [32, 32], strides = [1, 1]} : vector<32x64xf32> to vector<32x32xf32>
    %208 = math.tanh %207 : vector<32x32xf32>
    %209 = vector.extract_strided_slice %206 {offsets = [0, 32], sizes = [32, 32], strides = [1, 1]} : vector<32x64xf32> to vector<32x32xf32>
    %210 = arith.negf %209 : vector<32x32xf32>
    %211 = math.exp %210 : vector<32x32xf32>
    %cst_143 = arith.constant 1.000000e+00 : f32
    %212 = vector.broadcast %cst_143 : f32 to vector<32x32xf32>
    %213 = arith.addf %212, %211 : vector<32x32xf32>
    %214 = arith.divf %212, %213 : vector<32x32xf32>
    %215 = arith.mulf %208, %214 : vector<32x32xf32>
    %216 = arith.truncf %215 : vector<32x32xf32> to vector<32x32xbf16>
    %c3_144 = arith.constant 3 : index
    %c0_145 = arith.constant 0 : index
    %c0_146 = arith.constant 0 : index
    %217 = vector.load %arg11[%c3_144, %c0_145, %c0_146] : memref<4x32x64xbf16, #tpu.memory_space<vmem>>, vector<1x32x64xbf16>
    %218 = vector.shape_cast %217 : vector<1x32x64xbf16> to vector<32x64xbf16>
    %cst_147 = arith.constant dense<0.000000e+00> : vector<32x64xf32>
    %219 = tpu.matmul %216, %218, %cst_147 {dimension_numbers = #tpu.dot_dimension_numbers<[1], [0], [0], [1], [0, 0, 1, 1], [], []>} : vector<32x32xbf16>, vector<32x64xbf16>, vector<32x64xf32> -> vector<32x64xf32>
    %c3_148 = arith.constant 3 : index
    %c0_149 = arith.constant 0 : index
    %c0_150 = arith.constant 0 : index
    %220 = vector.load %arg12[%c3_148, %c0_149, %c0_150] : memref<4x1x64xf32, #tpu.memory_space<vmem>>, vector<1x1x64xf32>
    %221 = vector.shape_cast %220 : vector<1x1x64xf32> to vector<1x64xf32>
    %222 = vector.broadcast %221 : vector<1x64xf32> to vector<32x64xf32>
    %223 = arith.addf %219, %222 : vector<32x64xf32>
    %224 = vector.extract_strided_slice %223 {offsets = [0, 32], sizes = [32, 32], strides = [1, 1]} : vector<32x64xf32> to vector<32x32xf32>
    %225 = arith.addf %193, %224 : vector<32x32xf32>
    %226 = vector.broadcast %3 : vector<32x1xf32> to vector<32x32xf32>
    %227 = arith.mulf %225, %226 : vector<32x32xf32>
    %cst_151 = arith.constant dense<0.000000e+00> : vector<32xf32>
    %228 = vector.multi_reduction <add>, %227, %cst_151 [0] : vector<32x32xf32> to vector<32xf32>
    %229 = vector.shape_cast %228 : vector<32xf32> to vector<1x32xf32>
    %c0_152 = arith.constant 0 : index
    %c0_153 = arith.constant 0 : index
    %230 = vector.load %arg13[%c0_152, %c0_153] : memref<32x128xf32, #tpu.memory_space<vmem>>, vector<32x128xf32>
    %cst_154 = arith.constant dense<0.000000e+00> : vector<1x128xf32>
    %231 = tpu.matmul %229, %230, %cst_154 {dimension_numbers = #tpu.dot_dimension_numbers<[1], [0], [0], [1], [0, 0, 1, 1], [], []>} : vector<1x32xf32>, vector<32x128xf32>, vector<1x128xf32> -> vector<1x128xf32>
    %c0_155 = arith.constant 0 : index
    %c0_156 = arith.constant 0 : index
    %232 = vector.load %arg14[%c0_155, %c0_156] : memref<1x128xf32, #tpu.memory_space<vmem>>, vector<1x128xf32>
    %cst_157 = arith.constant 3.200000e+01 : f32
    %233 = vector.broadcast %cst_157 : f32 to vector<1x128xf32>
    %234 = arith.mulf %233, %232 : vector<1x128xf32>
    %235 = arith.addf %231, %234 : vector<1x128xf32>
    %cst_158 = arith.constant dense<0.000000e+00> : vector<1xf32>
    %236 = vector.multi_reduction <add>, %3, %cst_158 [0] : vector<32x1xf32> to vector<1xf32>
    %237 = vector.shape_cast %236 : vector<1xf32> to vector<1x1xf32>
    %cst_159 = arith.constant 1.000000e+00 : f32
    %238 = vector.broadcast %cst_159 : f32 to vector<1x1xf32>
    %239 = arith.maximumf %237, %238 : vector<1x1xf32>
    %240 = vector.broadcast %239 : vector<1x1xf32> to vector<1x128xf32>
    %241 = arith.divf %235, %240 : vector<1x128xf32>
    %c0_160 = arith.constant 0 : index
    %c0_161 = arith.constant 0 : index
    %c0_162 = arith.constant 0 : index
    %242 = vector.load %arg15[%c0_160, %c0_161, %c0_162] : memref<1x1x128xf32, #tpu.memory_space<vmem>>, vector<1x1x128xf32>
    %243 = vector.shape_cast %242 : vector<1x1x128xf32> to vector<1x128xf32>
    %244 = vector.shape_cast %241 : vector<1x128xf32> to vector<1x1x128xf32>
    tpu.vector_store %arg15[%c0_160, %c0_161, %c0_162], %244 {strides = array<i32>} : memref<1x1x128xf32, #tpu.memory_space<vmem>>, vector<1x1x128xf32>,
    return
  }
  func.func @transform_0(%arg0: i32) -> (i32, i32, i32) {
    %c0_i32 = arith.constant 0 : i32
    %c0_i32_0 = arith.constant 0 : i32
    %c0_i32_1 = arith.constant 0 : i32
    return %arg0, %c0_i32, %c0_i32_0 : i32, i32, i32
  }
  func.func @transform_1(%arg0: i32) -> (i32, i32, i32) {
    %c0_i32 = arith.constant 0 : i32
    %c0_i32_0 = arith.constant 0 : i32
    %c0_i32_1 = arith.constant 0 : i32
    return %arg0, %c0_i32, %c0_i32_0 : i32, i32, i32
  }
  func.func @transform_2(%arg0: i32) -> (i32, i32) {
    %c0_i32 = arith.constant 0 : i32
    %c0_i32_0 = arith.constant 0 : i32
    %c0_i32_1 = arith.constant 0 : i32
    return %c0_i32, %c0_i32_0 : i32, i32
  }
  func.func @transform_3(%arg0: i32) -> (i32, i32) {
    %c0_i32 = arith.constant 0 : i32
    %c0_i32_0 = arith.constant 0 : i32
    %c0_i32_1 = arith.constant 0 : i32
    return %c0_i32, %c0_i32_0 : i32, i32
  }
  func.func @transform_4(%arg0: i32) -> (i32, i32) {
    %c0_i32 = arith.constant 0 : i32
    %c0_i32_0 = arith.constant 0 : i32
    %c0_i32_1 = arith.constant 0 : i32
    return %c0_i32, %c0_i32_0 : i32, i32
  }
  func.func @transform_5(%arg0: i32) -> (i32, i32) {
    %c0_i32 = arith.constant 0 : i32
    %c0_i32_0 = arith.constant 0 : i32
    %c0_i32_1 = arith.constant 0 : i32
    return %c0_i32, %c0_i32_0 : i32, i32
  }
  func.func @transform_6(%arg0: i32) -> (i32, i32) {
    %c0_i32 = arith.constant 0 : i32
    %c0_i32_0 = arith.constant 0 : i32
    %c0_i32_1 = arith.constant 0 : i32
    return %c0_i32, %c0_i32_0 : i32, i32
  }
  func.func @transform_7(%arg0: i32) -> (i32, i32) {
    %c0_i32 = arith.constant 0 : i32
    %c0_i32_0 = arith.constant 0 : i32
    %c0_i32_1 = arith.constant 0 : i32
    return %c0_i32, %c0_i32_0 : i32, i32
  }
  func.func @transform_8(%arg0: i32) -> (i32, i32, i32) {
    %c0_i32 = arith.constant 0 : i32
    %c0_i32_0 = arith.constant 0 : i32
    %c0_i32_1 = arith.constant 0 : i32
    %c0_i32_2 = arith.constant 0 : i32
    return %c0_i32, %c0_i32_0, %c0_i32_1 : i32, i32, i32
  }
  func.func @transform_9(%arg0: i32) -> (i32, i32, i32) {
    %c0_i32 = arith.constant 0 : i32
    %c0_i32_0 = arith.constant 0 : i32
    %c0_i32_1 = arith.constant 0 : i32
    %c0_i32_2 = arith.constant 0 : i32
    return %c0_i32, %c0_i32_0, %c0_i32_1 : i32, i32, i32
  }
  func.func @transform_10(%arg0: i32) -> (i32, i32, i32) {
    %c0_i32 = arith.constant 0 : i32
    %c0_i32_0 = arith.constant 0 : i32
    %c0_i32_1 = arith.constant 0 : i32
    %c0_i32_2 = arith.constant 0 : i32
    return %c0_i32, %c0_i32_0, %c0_i32_1 : i32, i32, i32
  }
  func.func @transform_11(%arg0: i32) -> (i32, i32, i32) {
    %c0_i32 = arith.constant 0 : i32
    %c0_i32_0 = arith.constant 0 : i32
    %c0_i32_1 = arith.constant 0 : i32
    %c0_i32_2 = arith.constant 0 : i32
    return %c0_i32, %c0_i32_0, %c0_i32_1 : i32, i32, i32
  }
  func.func @transform_12(%arg0: i32) -> (i32, i32) {
    %c0_i32 = arith.constant 0 : i32
    %c0_i32_0 = arith.constant 0 : i32
    %c0_i32_1 = arith.constant 0 : i32
    return %c0_i32, %c0_i32_0 : i32, i32
  }
  func.func @transform_13(%arg0: i32) -> (i32, i32) {
    %c0_i32 = arith.constant 0 : i32
    %c0_i32_0 = arith.constant 0 : i32
    %c0_i32_1 = arith.constant 0 : i32
    return %c0_i32, %c0_i32_0 : i32, i32
  }
  func.func @transform_14(%arg0: i32) -> (i32, i32, i32) {
    %c0_i32 = arith.constant 0 : i32
    %c0_i32_0 = arith.constant 0 : i32
    %c0_i32_1 = arith.constant 0 : i32
    return %arg0, %c0_i32, %c0_i32_0 : i32, i32, i32
  }
}

</mosaic_0001>

<bundles_post_ra>
// kernel: tpu_custom_call.1
= control target key start
LH: loop header
LB: loop body
LE: loop exit
PB: predicated region body
PF: predicated region fallthrough
CT: control target
= control target key end

     0   :  { %s3987_s0 = inlined_call_operand.vmem [shape: bf16[2,32,16], index: 0, kind: input, shape index: {}]   ;;  %s3988_s1 = inlined_call_operand.vmem [shape: f32[2,32,1], index: 1, kind: input, shape index: {}]   ;;  %s3989_s2 = inlined_call_operand.vmem [shape: bf16[16,32], index: 2, kind: input, shape index: {}]   ;;  %s3990_s3 = inlined_call_operand.vmem [shape: f32[1,32], index: 3, kind: input, shape index: {}]   ;;  %s3991_s4 = inlined_call_operand.vmem [shape: bf16[160,32], index: 4, kind: input, shape index: {}]   ;;  %s3992_s5 = inlined_call_operand.vmem [shape: f32[1,32], index: 5, kind: input, shape index: {}]   ;;  %s3993_s6 = inlined_call_operand.vmem [shape: bf16[160,32], index: 6, kind: input, shape index: {}]   ;;  %s3994_s7 = inlined_call_operand.vmem [shape: f32[1,32], index: 7, kind: input, shape index: {}]   ;;  %s3995_s8 = inlined_call_operand.vmem [shape: bf16[4,96,64], index: 8, kind: input, shape index: {}]   ;;  %s3996_s9 = inlined_call_operand.vmem [shape: f32[4,1,64], index: 9, kind: input, shape index: {}]   ;;  %s3997_s10 = inlined_call_operand.vmem [shape: bf16[4,32,64], index: 10, kind: input, shape index: {}]   ;;  %s3998_s11 = inlined_call_operand.vmem [shape: f32[4,1,64], index: 11, kind: input, shape index: {}]   ;;  %s3999_s12 = inlined_call_operand.vmem [shape: f32[32,128], index: 12, kind: input, shape index: {}]   ;;  %s4000_s13 = inlined_call_operand.vmem [shape: f32[1,128], index: 13, kind: input, shape index: {}]   ;;  %s4001_s14 = inlined_call_operand.hbm [shape: f32[2,1,128], index: 14, kind: output, shape index: {}]  }
   0x1   :  { %4009 = sst [smem:[#allocation8_spill]] %s3987_s0 }
   0x2   :  { %4010 = sst [smem:[#allocation9_spill]] %s3989_s2 }
   0x3   :  { %4011 = sst [smem:[#allocation10_spill]] %s3990_s3 }
   0x4   :  { %4012 = sst [smem:[#allocation11_spill]] %s3991_s4 }
   0x5   :  { %4013 = sst [smem:[#allocation12_spill]] %s3992_s5 }
   0x6   :  { %19 = vsyncpa [#allocation4], 0 }
   0x7   :  { %21 = vsyncpa [#allocation4 + $0x1], 0  ;;  %s3350_s29 = smov 0   ;;  %s3352_s30 = smov 0  }
   0x8   :  { %s3354_s15 = smov 0   ;;  %s3356_s16 = smov 0  }
   0x9 LB: > { %4014 = sst [smem:[#allocation6_spill]] %s3264_s15  ;;  %s3371_s17 = sadd.s32 4294967295, %s3268_s16   ;;  %s3268_s16 = sphi %s3356_s16, %s4030_s16   ;;  %s3264_s15 = sphi %s3354_s15, %s4027_s15   ;;  %s3260_s30 = sphi %s3352_s30, %s4029_s30   ;;  %s3256_s29 = sphi %s3350_s29, %s4028_s29  }
   0xa   : > { %s2469_s18 = sadd.s32 4294967294, %s3268_s16   ;;  %s3375_s19 = sadd.s32 1, %s3268_s16  }
   0xb   : > { %s338_s20 = sadd.s32 1, %s3264_s15  ;;  %s335_s21 = ssub.s32 %s3268_s16, %s3375_s19 }
   0xc   : > { %p348_p0 = scmp.ne.s32.totalorder %s3264_s15, %s3260_s30  ;;  %p336_p1 = scmp.eq.s32.totalorder %s335_s21, 0 }
   0xd   : > { %p349_p2 = scmp.eq.s32.totalorder %s3371_s17, 1  ;;  %p354_p3 = scmp.ne.s32.totalorder %s3260_s30, %s3256_s29 }
   0xe   : > { %p355_p4 = scmp.eq.s32.totalorder %s2469_s18, 1  ;;  %p2472_p7 = scmp.ge.s32.totalorder %s3268_s16, 1 }
   0xf   : > { %s3386_s22 = scalar_select %p336_p1, %s3264_s15, %s338_s20  }
  0x10   : > { %p3388_p5 = por %p349_p2, %p348_p0  ;;  %p3392_p6 = por %p355_p4, %p354_p3 }
  0x11   : > { %4015 = sst [smem:[#allocation7_spill]] %s3386_s22  ;;  %p425_p8 = scmp.lt.s32.totalorder %s3268_s16, 3 }
  0x13   : > { %p426_p9 = pnand %p2472_p7, %p425_p8 }
  0x14   : > { %s4018_s2 = sld [smem:[#allocation9_spill]] (!%p426_p9)  ;;  %p475_p10 = scmp.lt.s32.totalorder (!%p426_p9), %s3371_s17, 1 }
  0x15   : > { %429 = sbr.rel (%p426_p9) target bundleno = 3350 (0xd16), region = 76  ;;  %s4019_s0 = sld [smem:[#allocation8_spill]] (!%p426_p9) }
  0x16   : > { %s4020_s3 = sld [smem:[#allocation10_spill]] (!%p426_p9)  ;;  %s4006_s25 = smov (!%p426_p9), 96  }
  0x17   : > { %s4021_s4 = sld [smem:[#allocation11_spill]] (!%p426_p9)  ;;  %s4002_s26 = smov (!%p426_p9), 32  }
  0x18   : > { %s4004_s18 = smov (!%p426_p9), 64   ;;  %s4022_s5 = sld [smem:[#allocation12_spill]] (!%p426_p9) }
  0x19   : > { %s4025_s22 = smov (!%p426_p9), 96  }
  0x1a   : > { %v2808_v0 = vld [vmem:[%s4018_s2] sm:$0xff]  ;;  %s3403_s27 = scalar_select %p475_p10, %s3371_s17, 1  ;;  %vm519_vm0 = vcmask 130048   ;;  %vm494_vm1 = vcmask 254976   ;;  %v3270_v4 = vmov 0.0   ;;  %vm606_vm2 = vcmask 261120  }
  0x1b   : > { %533 = vmatpush.bf16.msra.mxu0 %v2808_v0  ;;  %2861 = vmatpush.bf16.msra.mxu2 %v2808_v0  ;;  %495 = vst.msk [vmem:[#allocation2] sm:$0x3] %vm494_vm1, %v3270_v4  ;;  %vm683_vm3 = vcmask 523264   ;;  %vm688_vm4 = vcmask 785408   ;;  %s4023_s2 = smov 64   ;;  %vm2353_vm5 = vcmask 7168  }
  0x1c   : > { %s2804_s28 = sshll.u32 %s3403_s27, 4  ;;  %v3049_v3 = vld [vmem:[%s4020_s3] ss:$0 sm:$0xff]  ;;  %496 = vst.msk [vmem:[#allocation2 + $0x22] sm:$0x3] %vm494_vm1, %v3270_v4  ;;  %s4024_s3 = smov 32  }
  0x1d   : > { %s479_s21 = scalar_lea.vmem %s4019_s0, %s2804_s28  ;;  %v2818_v10 = vld [vmem:[%s4021_s4 + $0x48] sm:$0xff]  ;;  %v2817_v15 = vld [vmem:[%s4021_s4 + $0x40] sm:$0xff] }
  0x1e   : > { %v2806_v1 = vld [vmem:[%s479_s21] sm:$0xff]  ;;  %v2807_v2 = vld [vmem:[%s479_s21 + $0x8] sm:$0xff]  ;;  %s2398_s21 = scalar_lea.hbm %s4001_s14, %s3371_s17 }
  0x1f   : > { %2489 = vmatmul.msk.bf16.vlgmr.msra.gmra.mxu0 %vm519_vm0, %v2806_v1  ;;  %2490 = vmatmul.msk.bf16.vlgmr.msra.gmra.mxu2 %vm519_vm0, %v2807_v2 }
  0x20   : > { %791 = vmatpush.bf16.msrb.mxu2 %v2818_v10 }
  0x24   : > { %792 = vmatpush.bf16.msrb.mxu2 %v2817_v15  ;;  %v2816_v15 = vld [vmem:[%s4021_s4 + $0x38] sm:$0xff] }
  0x25   : > { %766 = vmatpush.bf16.msra.mxu1 %v2816_v15 }
  0x9c   : > { %v535_v5 = vpop.f32.mrf.mxu0 }
  0x9d   : > { %v536_v6 = vadd.f32 %v3049_v3, %v535_v5 }
  0x9f   : > { %v545_v7 = vmin.f32 %v536_v6, 20.0 }
  0xa1   : > { %v549_v8 = vmul.f32 1.442695, %v545_v7 }
  0xa2   : > { %v540_v9 = vpop.f32.mrf.mxu2 }
  0xa3   : > { %3060 = vpow2.f32 %v549_v8  ;;  %v541_v11 = vadd.f32 %v3049_v3, %v540_v9 }
  0xa4   : > { %v537_v12 = vpop.f32.mrf.mxu0 }
  0xa5   : > { %v547_v13 = vmin.f32 %v541_v11, 20.0  ;;  %v538_v14 = vadd.f32 %v3049_v3, %v537_v12 }
  0xa7   : > { %v553_v16 = vmul.f32 1.442695, %v547_v13  ;;  %v546_v17 = vmin.f32 %v538_v14, 20.0 }
  0xa9   : > { %v3061_v18 = vpop.eup %3060  ;;  %3062 = vpow2.f32 %v553_v16  ;;  %v551_v19 = vmul.f32 1.442695, %v546_v17  ;;  %v2815_v16 = vld [vmem:[%s4021_s4 + $0x30] sm:$0xff]  ;;  %v2814_v17 = vld [vmem:[%s4021_s4 + $0x28] sm:$0xff] }
  0xaa   : > { %v557_v20 = vadd.f32 1.0, %v3061_v18  ;;  %v542_v21 = vpop.f32.mrf.mxu2  ;;  %767 = vmatpush.bf16.msra.mxu1 %v2815_v16  ;;  %v2813_v18 = vld [vmem:[%s4021_s4 + $0x20] sm:$0xff] }
  0xab   : > { %3064 = vpow2.f32 %v551_v19  ;;  %v543_v22 = vadd.f32 %v3049_v3, %v542_v21  ;;  %v2812_v19 = vld [vmem:[%s4021_s4 + $0x18] sm:$0xff]  ;;  %v2810_v21 = vld [vmem:[%s4021_s4 + $0x8] sm:$0xff] }
  0xac   : > { %v561_v23 = vmul.f32 %v557_v20, %v557_v20  ;;  %v2811_v20 = vld [vmem:[%s4021_s4 + $0x10] sm:$0xff] }
  0xad   : > { %v548_v24 = vmin.f32 %v543_v22, 20.0 }
  0xae   : > { %v573_v25 = vadd.f32 1.0, %v561_v23  ;;  %v2491_v30 = vadd.f32 -1.0, %v561_v23  ;;  %768 = vmatpush.bf16.msra.mxu1 %v2814_v17 }
  0xaf   : > { %v3063_v26 = vpop.eup %3062  ;;  %v555_v27 = vmul.f32 1.442695, %v548_v24 }
  0xb0   : > { %3066 = vrcp.f32 %v573_v25  ;;  %v559_v28 = vadd.f32 1.0, %v3063_v26  ;;  %v569_v35 = vmul.f32 %v2491_v30, %v536_v6 }
  0xb1   : > { %v3065_v29 = vpop.eup %3064  ;;  %3068 = vpow2.f32 %v555_v27 }
  0xb2   : > { %v563_v31 = vmul.f32 %v559_v28, %v559_v28  ;;  %v558_v32 = vadd.f32 1.0, %v3065_v29  ;;  %769 = vmatpush.bf16.msra.mxu1 %v2813_v18  ;;  %v2827_v18 = vld [vmem:[%s3993_s6 + $0x40] sm:$0xff] }
  0xb4   : > { %v575_v33 = vadd.f32 1.0, %v563_v31  ;;  %v562_v34 = vmul.f32 %v558_v32, %v558_v32  ;;  %v2493_v40 = vadd.f32 -1.0, %v563_v31 }
  0xb6   : > { %v3067_v36 = vpop.eup %3066  ;;  %3070 = vrcp.f32 %v575_v33  ;;  %v574_v37 = vadd.f32 1.0, %v562_v34  ;;  %v2492_v42 = vadd.f32 -1.0, %v562_v34  ;;  %v571_v44 = vmul.f32 %v2493_v40, %v541_v11  ;;  %770 = vmatpush.bf16.msra.mxu1 %v2812_v19 }
  0xb7   : > { %v3069_v38 = vpop.eup %3068  ;;  %v581_v39 = vmul.f32 %v3067_v36, %v569_v35 }
  0xb8   : > { %3072 = vrcp.f32 %v574_v37  ;;  %v560_v41 = vadd.f32 1.0, %v3069_v38  ;;  %v570_v48 = vmul.f32 %v2492_v42, %v538_v14 }
  0xb9   : > { %607 = vst.msk [vmem:[#allocation2 + $0x2] sm:$0xff] %vm606_vm2, %v581_v39 }
  0xba   : > { %v564_v43 = vmul.f32 %v560_v41, %v560_v41  ;;  %771 = vmatpush.bf16.msra.mxu1 %v2811_v20 }
  0xbc   : > { %v3071_v45 = vpop.eup %3070  ;;  %v576_v46 = vadd.f32 1.0, %v564_v43  ;;  %v2494_v51 = vadd.f32 -1.0, %v564_v43 }
  0xbd   : > { %v583_v47 = vmul.f32 %v3071_v45, %v571_v44 }
  0xbe   : > { %v3073_v49 = vpop.eup %3072  ;;  %3074 = vrcp.f32 %v576_v46  ;;  %v572_v52 = vmul.f32 %v2494_v51, %v543_v22  ;;  %772 = vmatpush.bf16.msra.mxu1 %v2810_v21  ;;  %v2809_v22 = vld [vmem:[%s4021_s4] sm:$0xff]  ;;  %s2805_s4 = sshll.u32 %s3403_s27, 5  ;;  %s473_s27 = sand.u32 1, %s3260_s30  }
  0xbf   : > { %609 = vst.msk [vmem:[#allocation2 + $0x12] sm:$0xff] %vm606_vm2, %v583_v47  ;;  %v582_v50 = vmul.f32 %v3073_v49, %v570_v48  ;;  %s484_s20 = scalar_lea.vmem %s3988_s1, %s2805_s4 }
  0xc0   : > { %v615_v60 = vld [vmem:[#allocation2 + $0x1] sm:$0xff] }
  0xc1   : > { %608 = vst.msk [vmem:[#allocation2 + $0xa] sm:$0xff] %vm606_vm2, %v582_v50  ;;  %v619_v6 = vld [vmem:[#allocation2 + $0x2] sm:$0xff] }
  0xc2   : > { %773 = vmatpush.bf16.msra.mxu1 %v2809_v22  ;;  %v611_v28 = vld [vmem:[#allocation2] sm:$0xff] }
  0xc4   : > { %v3075_v53 = vpop.eup %3074 }
  0xc5   : > { %v584_v54 = vmul.f32 %v3075_v53, %v572_v52 }
  0xc6   : > { %v621_v0 = vld [vmem:[#allocation2 + $0x12] sm:$0xff] }
  0xc7   : > { %610 = vst.msk [vmem:[#allocation2 + $0x1a] sm:$0xff] %vm606_vm2, %v584_v54 }
  0xc8   : > { %v627_v55 = vld [vmem:[#allocation2 + $0x4] sm:$0xff]  ;;  %v628_v56 = vld [vmem:[#allocation2 + $0xc] sm:$0xff] }
  0xc9   : > { %v623_v57 = vld [vmem:[#allocation2 + $0x3] sm:$0xff]  ;;  %v694_v58 = vpack.c.bf16 %v628_v56, %v627_v55  ;;  %v624_v59 = vld [vmem:[#allocation2 + $0xb] sm:$0xff] }
  0xca   : > { %v616_v61 = vld [vmem:[#allocation2 + $0x9] sm:$0xff]  ;;  %v2916_v62 = vpack.i.bf16 %v624_v59, %v623_v57  ;;  %v617_v5 = vld [vmem:[#allocation2 + $0x11] sm:$0xff] }
  0xcb   : > { %v2906_v63 = vpack.i.bf16 %v616_v61, %v615_v60  ;;  %2535 = vmatmul.msk.bf16.vlgmr.msrb.gmra.mxu2 %vm606_vm2, %v694_v58  ;;  %v620_v4 = vld [vmem:[#allocation2 + $0xa] sm:$0xff]  ;;  %v3050_v60 = vld [vmem:[%s4022_s5] ss:$0 sm:$0xff]  ;;  %s3226_s5 = scalar_lea.hbm %s4001_s14, 2 }
  0xcc   : > { %2917 = vrot.lane.b32.xlu1 %v2916_v62, %s4006_s25  ;;  %v2911_v8 = vpack.i.bf16 %v620_v4, %v619_v6  ;;  %v612_v29 = vld [vmem:[#allocation2 + $0x8] sm:$0xff]  ;;  %v613_v45 = vld [vmem:[#allocation2 + $0x10] sm:$0xff] }
  0xcd   : > { %2907 = vrot.lane.b32.xlu0 %v2906_v63, %s4002_s26 }
  0xce   : > { %v622_v1 = vld [vmem:[#allocation2 + $0x1a] sm:$0xff] }
  0xcf   : > { %v2926_v2 = vpack.i.bf16 %v622_v1, %v621_v0  ;;  %v618_v3 = vld [vmem:[#allocation2 + $0x19] sm:$0xff] }
  0xd0   : > { %v2921_v7 = vpack.i.bf16 %v618_v3, %v617_v5  ;;  %v625_v9 = vld [vmem:[#allocation2 + $0x13] sm:$0xff]  ;;  %v626_v10 = vld [vmem:[#allocation2 + $0x1b] sm:$0xff] }
  0xd1   : > { %2927 = vrot.lane.b32.xlu2 %v2926_v2, %s4004_s18  ;;  %v629_v11 = vld [vmem:[#allocation2 + $0x14] sm:$0xff]  ;;  %v630_v12 = vld [vmem:[#allocation2 + $0x1c] sm:$0xff]  ;;  %v2931_v13 = vpack.i.bf16 %v626_v10, %v625_v9 }
  0xd2   : > { %v696_v14 = vpack.c.bf16 %v630_v12, %v629_v11  ;;  %v614_v46 = vld [vmem:[#allocation2 + $0x18] sm:$0xff] }
  0xd4   : > { %2922 = vrot.lane.b32.xlu1 %v2921_v7, %s4002_s26  ;;  %s474_s26 = scalar_lea.vmem [#allocation3], %s473_s27 }
  0xd5   : > { %2912 = vrot.lane.b32.xlu0 %v2911_v8, %s4004_s18  ;;  %s2390_s18 = scalar_lea.sflag [#allocation4], %s473_s27 }
  0xd9   : > { %2932 = vrot.lane.b32.xlu2 %v2931_v13, %s4006_s25  ;;  %v2828_v13 = vld [vmem:[%s3993_s6 + $0x48] sm:$0xff] }
  0xda   : > { %1047 = vmatpush.bf16.msrb.mxu0 %v2828_v13 }
  0xdb   : > { %2536 = vmatmul.msk.bf16.gmra.mxu2 %vm606_vm2, %v696_v14 }
  0xde   : > { %1048 = vmatpush.bf16.msrb.mxu0 %v2827_v18  ;;  %v2822_v18 = vld [vmem:[%s3993_s6 + $0x18] sm:$0xff] }
 0x12b   : > { %v2928_v36 = vpop.permute.xlu2 %2927 }
 0x12c   : > { %v2930_v49 = vunpack.i.h.bf16 %v2928_v36  ;;  %v2929_v50 = vunpack.i.l.bf16 %v2928_v36 }
 0x133   : > { %v2933_v51 = vpop.permute.xlu2 %2932 }
 0x134   : > { %v2935_v54 = vunpack.i.h.bf16 %v2933_v51  ;;  %v2934_v55 = vunpack.i.l.bf16 %v2933_v51 }
 0x13e   : > { %v2918_v24 = vpop.permute.xlu1 %2917 }
 0x13f   : > { %v2908_v23 = vpop.permute.xlu0 %2907  ;;  %v2920_v32 = vunpack.i.h.bf16 %v2918_v24  ;;  %v2919_v33 = vunpack.i.l.bf16 %v2918_v24 }
 0x140   : > { %v2910_v25 = vunpack.i.h.bf16 %v2908_v23  ;;  %v2909_v26 = vunpack.i.l.bf16 %v2908_v23 }
 0x142   : > { %v679_v34 = vsel %vm606_vm2, %v611_v28, %v2909_v26  ;;  %v680_v35 = vsel %vm606_vm2, %v612_v29, %v2910_v25 }
 0x146   : > { %v2923_v41 = vpop.permute.xlu1 %2922 }
 0x147   : > { %v2913_v27 = vpop.permute.xlu0 %2912  ;;  %v2925_v43 = vunpack.i.h.bf16 %v2923_v41  ;;  %v2924_v44 = vunpack.i.l.bf16 %v2923_v41 }
 0x148   : > { %v2915_v30 = vunpack.i.h.bf16 %v2913_v27  ;;  %v2914_v31 = vunpack.i.l.bf16 %v2913_v27 }
 0x149   : > { %v682_v47 = vsel %vm606_vm2, %v614_v46, %v2925_v43  ;;  %v681_v48 = vsel %vm606_vm2, %v613_v45, %v2924_v44  ;;  %v2826_v45 = vld [vmem:[%s3993_s6 + $0x38] sm:$0xff] }
 0x14a   : > { %v684_v37 = vsel %vm683_vm3, %v679_v34, %v2914_v31  ;;  %v685_v38 = vsel %vm683_vm3, %v680_v35, %v2915_v30  ;;  %v686_v52 = vsel %vm683_vm3, %v681_v48, %v2929_v50  ;;  %v687_v53 = vsel %vm683_vm3, %v682_v47, %v2930_v49  ;;  %1022 = vmatpush.bf16.msra.mxu3 %v2826_v45  ;;  %v2825_v48 = vld [vmem:[%s3993_s6 + $0x30] sm:$0xff] }
 0x14b   : > { %v689_v39 = vsel %vm688_vm4, %v684_v37, %v2919_v33  ;;  %v690_v40 = vsel %vm688_vm4, %v685_v38, %v2920_v32  ;;  %v691_v56 = vsel %vm688_vm4, %v686_v52, %v2934_v55  ;;  %v692_v57 = vsel %vm688_vm4, %v687_v53, %v2935_v54  ;;  %v492_v45 = vld [vmem:[%s484_s20 + $0x10] sm:$0xff] }
 0x14c   : > { %v693_v42 = vpack.c.bf16 %v690_v40, %v689_v39  ;;  %v695_v58 = vpack.c.bf16 %v692_v57, %v691_v56 }
 0x14e   : > { %774 = vmatmul.bf16.vlgmr.msra.gmra.mxu1 %v693_v42  ;;  %v794_v59 = vpop.f32.mrf.mxu2  ;;  %1023 = vmatpush.bf16.msra.mxu3 %v2825_v48  ;;  %v2357_v48 = vsel %vm2353_vm5, %v492_v45, 0.0 }
 0x156   : > { %v796_v1 = vpop.f32.mrf.mxu2 }
 0x15e   : > { %779 = vmatmul.bf16.gmra.mxu1 %v695_v58  ;;  %v799_v9 = vpop.f32.mrf.mxu2 }
 0x166   : > { %v801_v25 = vpop.f32.mrf.mxu2 }
 0x1cb   : > { %v775_v61 = vpop.f32.mrf.mxu1 }
 0x1cc   : > { %v776_v62 = vadd.f32 %v3050_v60, %v775_v61 }
 0x1ce   : > { %v795_v63 = vadd.f32 %v794_v59, %v776_v62 }
 0x1d0   : > { %v804_v0 = vmin.f32 %v795_v63, 20.0 }
 0x1d2   : > { %v808_v2 = vmul.f32 1.442695, %v804_v0 }
 0x1d3   : > { %v777_v3 = vpop.f32.mrf.mxu1 }
 0x1d4   : > { %3076 = vpow2.f32 %v808_v2  ;;  %v778_v4 = vadd.f32 %v3050_v60, %v777_v3 }
 0x1d6   : > { %v797_v5 = vadd.f32 %v796_v1, %v778_v4 }
 0x1d8   : > { %v805_v6 = vmin.f32 %v797_v5, 20.0 }
 0x1da   : > { %v3077_v7 = vpop.eup %3076  ;;  %v810_v8 = vmul.f32 1.442695, %v805_v6 }
 0x1db   : > { %v816_v10 = vadd.f32 1.0, %v3077_v7  ;;  %v780_v11 = vpop.f32.mrf.mxu1 }
 0x1dc   : > { %3078 = vpow2.f32 %v810_v8  ;;  %v781_v12 = vadd.f32 %v3050_v60, %v780_v11 }
 0x1dd   : > { %v820_v14 = vmul.f32 %v816_v10, %v816_v10 }
 0x1de   : > { %v800_v15 = vadd.f32 %v799_v9, %v781_v12 }
 0x1df   : > { %v832_v16 = vadd.f32 1.0, %v820_v14  ;;  %v2537_v20 = vadd.f32 -1.0, %v820_v14 }
 0x1e0   : > { %v806_v17 = vmin.f32 %v800_v15, 20.0 }
 0x1e1   : > { %3080 = vrcp.f32 %v832_v16  ;;  %v828_v27 = vmul.f32 %v2537_v20, %v795_v63  ;;  %v2824_v16 = vld [vmem:[%s3993_s6 + $0x28] sm:$0xff] }
 0x1e2   : > { %v3079_v19 = vpop.eup %3078  ;;  %v812_v21 = vmul.f32 1.442695, %v806_v17  ;;  %1024 = vmatpush.bf16.msra.mxu3 %v2824_v16  ;;  %v2823_v17 = vld [vmem:[%s3993_s6 + $0x20] sm:$0xff]  ;;  %v2820_v20 = vld [vmem:[%s3993_s6 + $0x8] sm:$0xff] }
 0x1e3   : > { %v817_v22 = vadd.f32 1.0, %v3079_v19  ;;  %v782_v23 = vpop.f32.mrf.mxu1  ;;  %v2821_v19 = vld [vmem:[%s3993_s6 + $0x10] sm:$0xff] }
 0x1e4   : > { %3082 = vpow2.f32 %v812_v21  ;;  %v783_v24 = vadd.f32 %v3050_v60, %v782_v23  ;;  %v2819_v21 = vld [vmem:[%s3993_s6] sm:$0xff] }
 0x1e5   : > { %v821_v26 = vmul.f32 %v817_v22, %v817_v22 }
 0x1e6   : > { %v802_v28 = vadd.f32 %v801_v25, %v783_v24  ;;  %1025 = vmatpush.bf16.msra.mxu3 %v2823_v17 }
 0x1e7   : > { %v3081_v29 = vpop.eup %3080  ;;  %v833_v30 = vadd.f32 1.0, %v821_v26  ;;  %v2538_v34 = vadd.f32 -1.0, %v821_v26 }
 0x1e8   : > { %v840_v31 = vmul.f32 %v3081_v29, %v828_v27  ;;  %v807_v32 = vmin.f32 %v802_v28, 20.0 }
 0x1e9   : > { %3084 = vrcp.f32 %v833_v30  ;;  %v829_v38 = vmul.f32 %v2538_v34, %v797_v5 }
 0x1ea   : > { %v3083_v33 = vpop.eup %3082  ;;  %865 = vst.msk [vmem:[#allocation2 + $0x2] sm:$0xff] %vm606_vm2, %v840_v31  ;;  %v814_v35 = vmul.f32 1.442695, %v807_v32  ;;  %1026 = vmatpush.bf16.msra.mxu3 %v2822_v18 }
 0x1eb   : > { %v818_v36 = vadd.f32 1.0, %v3083_v33 }
 0x1ec   : > { %3086 = vpow2.f32 %v814_v35 }
 0x1ed   : > { %v822_v37 = vmul.f32 %v818_v36, %v818_v36 }
 0x1ee   : > { %1027 = vmatpush.bf16.msra.mxu3 %v2821_v19 }
 0x1ef   : > { %v3085_v39 = vpop.eup %3084  ;;  %v834_v40 = vadd.f32 1.0, %v822_v37  ;;  %v2539_v43 = vadd.f32 -1.0, %v822_v37 }
 0x1f0   : > { %v841_v41 = vmul.f32 %v3085_v39, %v829_v38 }
 0x1f1   : > { %3088 = vrcp.f32 %v834_v40  ;;  %v830_v47 = vmul.f32 %v2539_v43, %v800_v15  ;;  %v877_v52 = vld [vmem:[#allocation2 + $0x2] sm:$0xff] }
 0x1f2   : > { %v3087_v42 = vpop.eup %3086  ;;  %866 = vst.msk [vmem:[#allocation2 + $0xa] sm:$0xff] %vm606_vm2, %v841_v41  ;;  %v873_v54 = vld [vmem:[#allocation2 + $0x1] sm:$0xff]  ;;  %1028 = vmatpush.bf16.msra.mxu3 %v2820_v20 }
 0x1f3   : > { %v819_v44 = vadd.f32 1.0, %v3087_v42  ;;  %v869_v29 = vld [vmem:[#allocation2] sm:$0xff]  ;;  %v491_v41 = vld [vmem:[%s484_s20 + $0x8] sm:$0xff]  ;;  %v3274_v42 = vmov 0  }
 0x1f4   : > { %v490_v40 = vld [vmem:[%s484_s20] sm:$0xff]  ;;  %2966 = vset.pattern.permute.xlu0 %v3274_v42  ;;  %2967 = vset.pattern.permute.xlu1 %v3274_v42 }
 0x1f5   : > { %v823_v46 = vmul.f32 %v819_v44, %v819_v44  ;;  %v2354_v43 = vsel %vm2353_vm5, %v490_v40, 0.0  ;;  %v2355_v44 = vsel %vm2353_vm5, %v491_v41, 0.0  ;;  %2968 = vset.pattern.permute.xlu2 %v3274_v42 }
 0x1f6   : > { %1029 = vmatpush.bf16.msra.mxu3 %v2819_v21 }
 0x1f7   : > { %v3089_v49 = vpop.eup %3088  ;;  %v835_v50 = vadd.f32 1.0, %v823_v46  ;;  %v2540_v56 = vadd.f32 -1.0, %v823_v46  ;;  %v2356_v46 = vadd.f32 %v2355_v44, %v2354_v43 }
 0x1f8   : > { %v842_v51 = vmul.f32 %v3089_v49, %v830_v47  ;;  %v493_v47 = vld [vmem:[%s484_s20 + $0x18] sm:$0xff] }
 0x1f9   : > { %3090 = vrcp.f32 %v835_v50  ;;  %v878_v53 = vld [vmem:[#allocation2 + $0xa] sm:$0xff]  ;;  %v831_v59 = vmul.f32 %v2540_v56, %v802_v28  ;;  %v2359_v49 = vsel %vm2353_vm5, %v493_v47, 0.0  ;;  %v2358_v50 = vadd.f32 %v2357_v48, %v2356_v46 }
 0x1fa   : > { %v874_v55 = vld [vmem:[#allocation2 + $0x9] sm:$0xff]  ;;  %867 = vst.msk [vmem:[#allocation2 + $0x12] sm:$0xff] %vm606_vm2, %v842_v51  ;;  %v2941_v57 = vpack.i.bf16 %v878_v53, %v877_v52 }
 0x1fb   : > { %v2936_v58 = vpack.i.bf16 %v874_v55, %v873_v54  ;;  %v885_v62 = vld [vmem:[#allocation2 + $0x4] sm:$0xff]  ;;  %v3521_v56 = vadd.f32 %v2359_v49, %v2358_v50 }
 0x1fc   : > { %2942 = vrot.lane.b32.xlu1 %v2941_v57, %s4023_s2  ;;  %v881_v0 = vld [vmem:[#allocation2 + $0x3] sm:$0xff] }
 0x1fd   : > { %2937 = vrot.lane.b32.xlu0 %v2936_v58, %s4024_s3  ;;  %v870_v30 = vld [vmem:[#allocation2 + $0x8] sm:$0xff] }
 0x1ff   : > { %v3091_v60 = vpop.eup %3090 }
 0x200   : > { %v843_v61 = vmul.f32 %v3091_v60, %v831_v59 }
 0x201   : > { %v886_v63 = vld [vmem:[#allocation2 + $0xc] sm:$0xff] }
 0x202   : > { %v882_v1 = vld [vmem:[#allocation2 + $0xb] sm:$0xff]  ;;  %868 = vst.msk [vmem:[#allocation2 + $0x1a] sm:$0xff] %vm606_vm2, %v843_v61  ;;  %v950_v2 = vpack.c.bf16 %v886_v63, %v885_v62 }
 0x203   : > { %v2946_v3 = vpack.i.bf16 %v882_v1, %v881_v0  ;;  %v879_v4 = vld [vmem:[#allocation2 + $0x12] sm:$0xff] }
 0x204   : > { %2581 = vmatmul.msk.bf16.vlgmr.msrb.gmra.mxu0 %vm606_vm2, %v950_v2  ;;  %v875_v10 = vld [vmem:[#allocation2 + $0x11] sm:$0xff] }
 0x205   : > { %2947 = vrot.lane.b32.xlu2 %v2946_v3, %s4025_s22  ;;  %v871_v59 = vld [vmem:[#allocation2 + $0x10] sm:$0xff] }
 0x209   : > { %v883_v5 = vld [vmem:[#allocation2 + $0x13] sm:$0xff]  ;;  %v884_v6 = vld [vmem:[#allocation2 + $0x1b] sm:$0xff] }
 0x20a   : > { %v880_v7 = vld [vmem:[#allocation2 + $0x1a] sm:$0xff]  ;;  %v2961_v8 = vpack.i.bf16 %v884_v6, %v883_v5 }
 0x20b   : > { %v2956_v9 = vpack.i.bf16 %v880_v7, %v879_v4  ;;  %v876_v11 = vld [vmem:[#allocation2 + $0x19] sm:$0xff] }
 0x20c   : > { %v2951_v12 = vpack.i.bf16 %v876_v11, %v875_v10  ;;  %v887_v13 = vld [vmem:[#allocation2 + $0x14] sm:$0xff]  ;;  %v888_v14 = vld [vmem:[#allocation2 + $0x1c] sm:$0xff] }
 0x20d   : > { %2962 = vrot.lane.b32.xlu2 %v2961_v8, %s4025_s22  ;;  %2957 = vrot.lane.b32.xlu1 %v2956_v9, %s4023_s2  ;;  %v952_v15 = vpack.c.bf16 %v888_v14, %v887_v13  ;;  %v872_v60 = vld [vmem:[#allocation2 + $0x18] sm:$0xff]  ;;  %v3051_v7 = vld [vmem:[%s3994_s7] ss:$0 sm:$0xff] }
 0x20e   : > { %2952 = vrot.lane.b32.xlu0 %v2951_v12, %s4024_s3 }
 0x214   : > { %2582 = vmatmul.msk.bf16.gmra.mxu0 %vm606_vm2, %v952_v15 }
 0x215   : > { %1107 = vperm.xlu1 %2967, %v491_v41   ;;  %1112 = vperm.xlu2 %2968, %v492_v45  }
 0x216   : > { %1102 = vperm.xlu0 %2966, %v490_v40  }
 0x21d   : > { %1117 = vperm.xlu1 %2967, %v493_v47  }
 0x25f   : > { %v2948_v22 = vpop.permute.xlu2 %2947 }
 0x260   : > { %v2950_v31 = vunpack.i.h.bf16 %v2948_v22  ;;  %v2949_v32 = vunpack.i.l.bf16 %v2948_v22 }
 0x267   : > { %v2963_v52 = vpop.permute.xlu2 %2962 }
 0x268   : > { %v2965_v61 = vunpack.i.h.bf16 %v2963_v52  ;;  %v2964_v62 = vunpack.i.l.bf16 %v2963_v52 }
 0x26e   : > { %v2943_v23 = vpop.permute.xlu1 %2942 }
 0x26f   : > { %v2938_v24 = vpop.permute.xlu0 %2937  ;;  %v2945_v25 = vunpack.i.h.bf16 %v2943_v23  ;;  %v2944_v26 = vunpack.i.l.bf16 %v2943_v23 }
 0x270   : > { %v2940_v27 = vunpack.i.h.bf16 %v2938_v24  ;;  %v2939_v28 = vunpack.i.l.bf16 %v2938_v24 }
 0x272   : > { %v937_v33 = vsel %vm606_vm2, %v869_v29, %v2939_v28  ;;  %v938_v34 = vsel %vm606_vm2, %v870_v30, %v2940_v27 }
 0x273   : > { %v941_v35 = vsel %vm683_vm3, %v937_v33, %v2944_v26  ;;  %v942_v36 = vsel %vm683_vm3, %v938_v34, %v2945_v25 }
 0x274   : > { %v945_v37 = vsel %vm688_vm4, %v941_v35, %v2949_v32  ;;  %v946_v38 = vsel %vm688_vm4, %v942_v36, %v2950_v31 }
 0x275   : > { %v949_v39 = vpack.c.bf16 %v946_v38, %v945_v37 }
 0x277   : > { %1030 = vmatmul.bf16.vlgmr.msra.gmra.mxu3 %v949_v39 }
 0x27f   : > { %v2958_v51 = vpop.permute.xlu1 %2957 }
 0x280   : > { %v2960_v53 = vunpack.i.h.bf16 %v2958_v51  ;;  %v2959_v54 = vunpack.i.l.bf16 %v2958_v51  ;;  %v2953_v55 = vpop.permute.xlu0 %2952 }
 0x281   : > { %v2955_v57 = vunpack.i.h.bf16 %v2953_v55  ;;  %v2954_v58 = vunpack.i.l.bf16 %v2953_v55  ;;  %v1050_v6 = vpop.f32.mrf.mxu0 }
 0x283   : > { %v940_v63 = vsel %vm606_vm2, %v872_v60, %v2955_v57  ;;  %v939_v0 = vsel %vm606_vm2, %v871_v59, %v2954_v58 }
 0x284   : > { %v943_v1 = vsel %vm683_vm3, %v939_v0, %v2959_v54  ;;  %v944_v2 = vsel %vm683_vm3, %v940_v63, %v2960_v53  ;;  %v3546_v63 = vpop.permute.xlu2 %1112 }
 0x285   : > { %v947_v3 = vsel %vm688_vm4, %v943_v1, %v2964_v62  ;;  %v948_v4 = vsel %vm688_vm4, %v944_v2, %v2965_v61 }
 0x286   : > { %v951_v5 = vpack.c.bf16 %v948_v4, %v947_v3 }
 0x287   : > { %v3539_v51 = vpop.permute.xlu1 %1107 }
 0x288   : > { %1035 = vmatmul.bf16.gmra.mxu3 %v951_v5  ;;  %v3532_v40 = vpop.permute.xlu0 %1102 }
 0x289   : > { %v1052_v12 = vpop.f32.mrf.mxu0 }
 0x291   : > { %v1055_v21 = vpop.f32.mrf.mxu0 }
 0x299   : > { %v1057_v35 = vpop.f32.mrf.mxu0 }
 0x2fa   : > { %v1031_v8 = vpop.f32.mrf.mxu3 }
 0x2fb   : > { %v1032_v9 = vadd.f32 %v3051_v7, %v1031_v8 }
 0x2fd   : > { %v1051_v10 = vadd.f32 %v1050_v6, %v1032_v9  ;;  %v3554_v9 = vpop.permute.xlu1 %1117 }
 0x2ff   : > { %v1060_v11 = vmin.f32 %v1051_v10, 20.0 }
 0x301   : > { %v1064_v13 = vmul.f32 1.442695, %v1060_v11 }
 0x302   : > { %v1033_v14 = vpop.f32.mrf.mxu3 }
 0x303   : > { %3092 = vpow2.f32 %v1064_v13  ;;  %v1034_v15 = vadd.f32 %v3051_v7, %v1033_v14 }
 0x305   : > { %v1053_v16 = vadd.f32 %v1052_v12, %v1034_v15 }
 0x307   : > { %v1061_v17 = vmin.f32 %v1053_v16, 20.0 }
 0x309   : > { %v3093_v18 = vpop.eup %3092  ;;  %v1066_v19 = vmul.f32 1.442695, %v1061_v17 }
 0x30a   : > { %v1072_v20 = vadd.f32 1.0, %v3093_v18 }
 0x30b   : > { %3094 = vpow2.f32 %v1066_v19  ;;  %v1036_v22 = vpop.f32.mrf.mxu3 }
 0x30c   : > { %v1076_v23 = vmul.f32 %v1072_v20, %v1072_v20  ;;  %v1037_v24 = vadd.f32 %v3051_v7, %v1036_v22  ;;  %v2834_v20 = vld [vmem:[%s3995_s8 + $0x28] sm:$0xff]  ;;  %v2832_v22 = vld [vmem:[%s3995_s8 + $0x18] sm:$0xff] }
 0x30d   : > { %1242 = vmatpush.bf16.msra.mxu2 %v2834_v20 }
 0x30e   : > { %v1088_v25 = vadd.f32 1.0, %v1076_v23  ;;  %v1056_v26 = vadd.f32 %v1055_v21, %v1037_v24  ;;  %v2583_v29 = vadd.f32 -1.0, %v1076_v23  ;;  %v2833_v21 = vld [vmem:[%s3995_s8 + $0x20] sm:$0xff]  ;;  %v2831_v23 = vld [vmem:[%s3995_s8 + $0x10] sm:$0xff]  ;;  %v2830_v24 = vld [vmem:[%s3995_s8 + $0x8] sm:$0xff] }
 0x310   : > { %3096 = vrcp.f32 %v1088_v25  ;;  %v1062_v27 = vmin.f32 %v1056_v26, 20.0  ;;  %v1084_v36 = vmul.f32 %v2583_v29, %v1051_v10  ;;  %v2829_v25 = vld [vmem:[%s3995_s8] sm:$0xff] }
 0x311   : > { %v3095_v28 = vpop.eup %3094  ;;  %1243 = vmatpush.bf16.msra.mxu2 %v2833_v21 }
 0x312   : > { %v1073_v30 = vadd.f32 1.0, %v3095_v28  ;;  %v1068_v31 = vmul.f32 1.442695, %v1062_v27 }
 0x313   : > { %v1038_v32 = vpop.f32.mrf.mxu3 }
 0x314   : > { %v1077_v33 = vmul.f32 %v1073_v30, %v1073_v30  ;;  %3098 = vpow2.f32 %v1068_v31  ;;  %v1039_v34 = vadd.f32 %v3051_v7, %v1038_v32 }
 0x315   : > { %1244 = vmatpush.bf16.msra.mxu2 %v2832_v22 }
 0x316   : > { %v3097_v37 = vpop.eup %3096  ;;  %v1089_v38 = vadd.f32 1.0, %v1077_v33  ;;  %v1058_v39 = vadd.f32 %v1057_v35, %v1039_v34  ;;  %v2584_v43 = vadd.f32 -1.0, %v1077_v33 }
 0x317   : > { %v1096_v41 = vmul.f32 %v3097_v37, %v1084_v36 }
 0x318   : > { %3100 = vrcp.f32 %v1089_v38  ;;  %v1063_v42 = vmin.f32 %v1058_v39, 20.0  ;;  %v1085_v48 = vmul.f32 %v2584_v43, %v1053_v16 }
 0x319   : > { %v3535_v44 = vmul.f32 %v3532_v40, %v1096_v41  ;;  %1245 = vmatpush.bf16.msra.mxu2 %v2831_v23 }
 0x31a   : > { %v3099_v45 = vpop.eup %3098  ;;  %v1070_v46 = vmul.f32 1.442695, %v1063_v42 }
 0x31b   : > { %v1074_v47 = vadd.f32 1.0, %v3099_v45  ;;  %1137 = vst.msk [vmem:[#allocation2 + $0x2] sm:$0xff] %vm606_vm2, %v3535_v44 }
 0x31c   : > { %3102 = vpow2.f32 %v1070_v46 }
 0x31d   : > { %v1078_v49 = vmul.f32 %v1074_v47, %v1074_v47  ;;  %1246 = vmatpush.bf16.msra.mxu2 %v2830_v24 }
 0x31e   : > { %v3101_v50 = vpop.eup %3100 }
 0x31f   : > { %v1097_v52 = vmul.f32 %v3101_v50, %v1085_v48  ;;  %v1090_v53 = vadd.f32 1.0, %v1078_v49  ;;  %v2585_v57 = vadd.f32 -1.0, %v1078_v49 }
 0x321   : > { %3104 = vrcp.f32 %v1090_v53  ;;  %v3542_v54 = vmul.f32 %v3539_v51, %v1097_v52  ;;  %v1086_v60 = vmul.f32 %v2585_v57, %v1056_v26  ;;  %1247 = vmatpush.bf16.msra.mxu2 %v2829_v25  ;;  %v3052_v57 = vld [vmem:[%s3996_s9] ss:$0 sm:$0xff] }
 0x322   : > { %v3103_v55 = vpop.eup %3102  ;;  %v1145_v3 = vld [vmem:[#allocation2 + $0x2] sm:$0xff] }
 0x323   : > { %v1075_v58 = vadd.f32 1.0, %v3103_v55  ;;  %1138 = vst.msk [vmem:[#allocation2 + $0xa] sm:$0xff] %vm606_vm2, %v3542_v54  ;;  %v1141_v30 = vld [vmem:[#allocation2 + $0x1] sm:$0xff] }
 0x325   : > { %v1079_v59 = vmul.f32 %v1075_v58, %v1075_v58 }
 0x327   : > { %v3105_v61 = vpop.eup %3104  ;;  %v1091_v62 = vadd.f32 1.0, %v1079_v59  ;;  %v2586_v1 = vadd.f32 -1.0, %v1079_v59 }
 0x328   : > { %v1098_v0 = vmul.f32 %v3105_v61, %v1086_v60 }
 0x329   : > { %3106 = vrcp.f32 %v1091_v62  ;;  %v1087_v6 = vmul.f32 %v2586_v1, %v1058_v39 }
 0x32a   : > { %v3549_v2 = vmul.f32 %v3546_v63, %v1098_v0  ;;  %v1146_v4 = vld [vmem:[#allocation2 + $0xa] sm:$0xff] }
 0x32b   : > { %v2969_v5 = vpack.i.bf16 %v1146_v4, %v1145_v3  ;;  %v1149_v11 = vld [vmem:[#allocation2 + $0x3] sm:$0xff] }
 0x32c   : > { %1139 = vst.msk [vmem:[#allocation2 + $0x12] sm:$0xff] %vm606_vm2, %v3549_v2  ;;  %v1142_v31 = vld [vmem:[#allocation2 + $0x9] sm:$0xff] }
 0x32d   : > { %2970 = vrot.lane.b32.xlu2 %v2969_v5, %s4024_s3 }
 0x32f   : > { %v3107_v7 = vpop.eup %3106 }
 0x330   : > { %v1099_v8 = vmul.f32 %v3107_v7, %v1087_v6 }
 0x332   : > { %v3557_v10 = vmul.f32 %v3554_v9, %v1099_v8 }
 0x333   : > { %v1150_v12 = vld [vmem:[#allocation2 + $0xb] sm:$0xff] }
 0x334   : > { %1140 = vst.msk [vmem:[#allocation2 + $0x1a] sm:$0xff] %vm606_vm2, %v3557_v10  ;;  %v2974_v13 = vpack.i.bf16 %v1150_v12, %v1149_v11  ;;  %v1147_v14 = vld [vmem:[#allocation2 + $0x12] sm:$0xff] }
 0x335   : > { %v1143_v45 = vld [vmem:[#allocation2 + $0x11] sm:$0xff] }
 0x336   : > { %2975 = vrot.lane.b32.xlu0 %v2974_v13, %s4023_s2 }
 0x33b   : > { %v1148_v15 = vld [vmem:[#allocation2 + $0x1a] sm:$0xff] }
 0x33c   : > { %v1151_v16 = vld [vmem:[#allocation2 + $0x13] sm:$0xff]  ;;  %v1152_v17 = vld [vmem:[#allocation2 + $0x1b] sm:$0xff]  ;;  %v2979_v18 = vpack.i.bf16 %v1148_v15, %v1147_v14  ;;  %v2836_v14 = vld [vmem:[%s3997_s10 + $0x8] sm:$0xff] }
 0x33d   : > { %v2984_v19 = vpack.i.bf16 %v1152_v17, %v1151_v16  ;;  %v1144_v46 = vld [vmem:[#allocation2 + $0x19] sm:$0xff]  ;;  %1393 = vmatpush.bf16.msrb.mxu1 %v2836_v14 }
 0x33e   : > { %2980 = vrot.lane.b32.xlu1 %v2979_v18, %s4024_s3 }
 0x33f   : > { %2985 = vrot.lane.b32.xlu2 %v2984_v19, %s4023_s2 }
 0x387   : > { %v2971_v26 = vpop.permute.xlu2 %2970 }
 0x388   : > { %v2973_v27 = vunpack.i.h.bf16 %v2971_v26  ;;  %v2972_v28 = vunpack.i.l.bf16 %v2971_v26 }
 0x38a   : > { %v1185_v34 = vsel %vm606_vm2, %v1141_v30, %v2972_v28  ;;  %v1186_v35 = vsel %vm606_vm2, %v1142_v31, %v2973_v27 }
 0x399   : > { %v2986_v43 = vpop.permute.xlu2 %2985 }
 0x39a   : > { %v2988_v49 = vunpack.i.h.bf16 %v2986_v43  ;;  %v2987_v50 = vunpack.i.l.bf16 %v2986_v43 }
 0x3a8   : > { %v2976_v29 = vpop.permute.xlu0 %2975 }
 0x3a9   : > { %v2978_v32 = vunpack.i.h.bf16 %v2976_v29  ;;  %v2977_v33 = vunpack.i.l.bf16 %v2976_v29 }
 0x3ab   : > { %v1189_v36 = vsel %vm683_vm3, %v1185_v34, %v2977_v33  ;;  %v1190_v37 = vsel %vm683_vm3, %v1186_v35, %v2978_v32 }
 0x3ac   : > { %v1193_v38 = vpack.c.bf16 %v1190_v37, %v1189_v36 }
 0x3ae   : > { %2611 = vmatmul.msk.bf16.vlgmr.msra.gmra.mxu2 %vm688_vm4, %v1193_v38 }
 0x3b0   : > { %v2981_v39 = vpop.permute.xlu1 %2980 }
 0x3b1   : > { %v2983_v41 = vunpack.i.h.bf16 %v2981_v39  ;;  %v2982_v42 = vunpack.i.l.bf16 %v2981_v39 }
 0x3b3   : > { %v1187_v47 = vsel %vm606_vm2, %v1143_v45, %v2982_v42  ;;  %v1188_v48 = vsel %vm606_vm2, %v1144_v46, %v2983_v41 }
 0x3b4   : > { %v1191_v52 = vsel %vm683_vm3, %v1187_v47, %v2987_v50  ;;  %v1192_v53 = vsel %vm683_vm3, %v1188_v48, %v2988_v49 }
 0x3b5   : > { %v1194_v55 = vpack.c.bf16 %v1192_v53, %v1191_v52 }
 0x3be   : > { %2612 = vmatmul.msk.bf16.gmra.mxu2 %vm688_vm4, %v1194_v55 }
 0x431   : > { %v1249_v58 = vpop.f32.mrf.mxu2 }
 0x432   : > { %v3595_v59 = vadd.f32 %v3052_v57, %v1249_v58 }
 0x434   : > { %v2613_v60 = vmul.f32 -1.442695, %v3595_v59 }
 0x436   : > { %3108 = vpow2.f32 %v2613_v60 }
 0x439   : > { %v1251_v61 = vpop.f32.mrf.mxu2 }
 0x43a   : > { %v3598_v62 = vadd.f32 %v3052_v57, %v1251_v61 }
 0x43c   : > { %v3109_v0 = vpop.eup %3108  ;;  %v2614_v1 = vmul.f32 -1.442695, %v3598_v62 }
 0x43d   : > { %v1275_v3 = vadd.f32 1.0, %v3109_v0 }
 0x43e   : > { %3110 = vpow2.f32 %v2614_v1 }
 0x43f   : > { %3112 = vrcp.f32 %v1275_v3  ;;  %v1290_v16 = vand.u32 2147483648, %v1275_v3  ;;  %v1288_v19 = vand.u32 2147483647, %v1275_v3  ;;  %vm1284_vm7 = vweird.f32 %v1275_v3 }
 0x441   : > { %v1254_v4 = vpop.f32.mrf.mxu2  ;;  %v1291_v25 = vor.u32 1.1754944e-38, %v1290_v16  ;;  %vm1289_vm9 = vcmp.eq.f32.partialorder %v1288_v19, 8.507059e+37 }
 0x442   : > { %v3601_v5 = vadd.f32 %v3052_v57, %v1254_v4  ;;  %v2835_v4 = vld [vmem:[%s3997_s10] sm:$0xff] }
 0x443   : > { %1394 = vmatpush.bf16.msrb.mxu1 %v2835_v4 }
 0x444   : > { %v3111_v6 = vpop.eup %3110  ;;  %v2615_v7 = vmul.f32 -1.442695, %v3601_v5 }
 0x445   : > { %v3113_v8 = vpop.eup %3112  ;;  %v1276_v11 = vadd.f32 1.0, %v3111_v6 }
 0x446   : > { %3114 = vpow2.f32 %v2615_v7  ;;  %v1280_v12 = vmul.f32 %v3113_v8, %v1275_v3  ;;  %vm1285_vm6 = vweird.f32 %v3113_v8 }
 0x447   : > { %3116 = vrcp.f32 %v1276_v11  ;;  %vm1286_vm8 = vmor %vm1284_vm7, %vm1285_vm6  ;;  %v1305_v30 = vand.u32 2147483648, %v1276_v11  ;;  %v1303_v32 = vand.u32 2147483647, %v1276_v11  ;;  %vm1299_vm11 = vweird.f32 %v1276_v11 }
 0x448   : > { %v1281_v13 = vsub.f32 1.0, %v1280_v12 }
 0x449   : > { %v1256_v15 = vpop.f32.mrf.mxu2  ;;  %v1306_v37 = vor.u32 1.1754944e-38, %v1305_v30  ;;  %vm1304_vm13 = vcmp.eq.f32.partialorder %v1303_v32, 8.507059e+37 }
 0x44a   : > { %v3607_v17 = vadd.f32 %v3052_v57, %v1256_v15  ;;  %v1282_v18 = vmul.f32 %v3113_v8, %v1281_v13 }
 0x44c   : > { %v3115_v20 = vpop.eup %3114  ;;  %v2616_v21 = vmul.f32 -1.442695, %v3607_v17  ;;  %v1283_v22 = vadd.f32 %v3113_v8, %v1282_v18 }
 0x44d   : > { %v3117_v23 = vpop.eup %3116  ;;  %v1277_v24 = vadd.f32 1.0, %v3115_v20 }
 0x44e   : > { %3118 = vpow2.f32 %v2616_v21  ;;  %v1287_v26 = vsel %vm1286_vm8, %v3113_v8, %v1283_v22  ;;  %v1295_v27 = vmul.f32 %v3117_v23, %v1276_v11  ;;  %vm1300_vm10 = vweird.f32 %v3117_v23  ;;  %v3053_v21 = vld [vmem:[%s3998_s11] ss:$0 sm:$0xff] }
 0x44f   : > { %3120 = vrcp.f32 %v1277_v24  ;;  %v1292_v28 = vsel %vm1289_vm9, %v1291_v25, %v1287_v26  ;;  %vm1301_vm12 = vmor %vm1299_vm11, %vm1300_vm10  ;;  %v1320_v43 = vand.u32 2147483648, %v1277_v24  ;;  %v1318_v46 = vand.u32 2147483647, %v1277_v24  ;;  %v2842_v26 = vld [vmem:[%s3995_s8 + $0x58] sm:$0xff] }
 0x450   : > { %1343 = vrot.lane.b32.xlu0 %v1292_v28, %s4025_s22  ;;  %v1296_v29 = vsub.f32 1.0, %v1295_v27  ;;  %vm1314_vm15 = vweird.f32 %v1277_v24  ;;  %1538 = vmatpush.bf16.msrb.mxu3 %v2842_v26 }
 0x451   : > { %v1321_v49 = vor.u32 1.1754944e-38, %v1320_v43  ;;  %vm1319_vm1 = vcmp.eq.f32.partialorder %v1318_v46, 8.507059e+37 }
 0x452   : > { %v1297_v31 = vmul.f32 %v3117_v23, %v1296_v29 }
 0x454   : > { %v3119_v33 = vpop.eup %3118  ;;  %v1298_v34 = vadd.f32 %v3117_v23, %v1297_v31 }
 0x455   : > { %v3121_v35 = vpop.eup %3120  ;;  %v1278_v36 = vadd.f32 1.0, %v3119_v33 }
 0x456   : > { %v1302_v38 = vsel %vm1301_vm12, %v3117_v23, %v1298_v34  ;;  %v1310_v39 = vmul.f32 %v3121_v35, %v1277_v24  ;;  %vm1315_vm14 = vweird.f32 %v3121_v35 }
 0x457   : > { %3122 = vrcp.f32 %v1278_v36  ;;  %v1307_v41 = vsel %vm1304_vm13, %v1306_v37, %v1302_v38  ;;  %vm1316_vm0 = vmor %vm1314_vm15, %vm1315_vm14  ;;  %v1335_v57 = vand.u32 2147483648, %v1278_v36  ;;  %v1333_v60 = vand.u32 2147483647, %v1278_v36 }
 0x458   : > { %1345 = vrot.lane.b32.xlu1 %v1307_v41, %s4025_s22  ;;  %v1311_v42 = vsub.f32 1.0, %v1310_v39  ;;  %vm1329_vm6 = vweird.f32 %v1278_v36  ;;  %3124 = vtanh.f32 %v3595_v59 }
 0x459   : > { %v1336_v0 = vor.u32 1.1754944e-38, %v1335_v57  ;;  %vm1334_vm8 = vcmp.eq.f32.partialorder %v1333_v60, 8.507059e+37  ;;  %3126 = vtanh.f32 %v3598_v62 }
 0x45a   : > { %v1312_v45 = vmul.f32 %v3121_v35, %v1311_v42  ;;  %3128 = vtanh.f32 %v3601_v5 }
 0x45b   : > { %3130 = vtanh.f32 %v3607_v17 }
 0x45c   : > { %v1313_v47 = vadd.f32 %v3121_v35, %v1312_v45 }
 0x45d   : > { %v3123_v48 = vpop.eup %3122 }
 0x45e   : > { %v1317_v50 = vsel %vm1316_vm0, %v3121_v35, %v1313_v47  ;;  %v1325_v52 = vmul.f32 %v3123_v48, %v1278_v36  ;;  %vm1330_vm5 = vweird.f32 %v3123_v48  ;;  %v3125_v7 = vpop.eup %3124 }
 0x45f   : > { %v1322_v53 = vsel %vm1319_vm1, %v1321_v49, %v1317_v50  ;;  %vm1331_vm7 = vmor %vm1329_vm6, %vm1330_vm5  ;;  %v3127_v8 = vpop.eup %3126  ;;  %v2839_v49 = vld [vmem:[%s3995_s8 + $0x40] sm:$0xff]  ;;  %v2838_v50 = vld [vmem:[%s3995_s8 + $0x38] sm:$0xff] }
 0x460   : > { %1347 = vrot.lane.b32.xlu2 %v1322_v53, %s4025_s22  ;;  %v1326_v55 = vsub.f32 1.0, %v1325_v52  ;;  %v3129_v16 = vpop.eup %3128  ;;  %v2837_v52 = vld [vmem:[%s3995_s8 + $0x30] sm:$0xff] }
 0x461   : > { %v3131_v18 = vpop.eup %3130 }
 0x462   : > { %v1327_v58 = vmul.f32 %v3123_v48, %v1326_v55 }
 0x464   : > { %v1328_v61 = vadd.f32 %v3123_v48, %v1327_v58 }
 0x466   : > { %v1332_v1 = vsel %vm1331_vm7, %v3123_v48, %v1328_v61 }
 0x467   : > { %v1337_v3 = vsel %vm1334_vm8, %v1336_v0, %v1332_v1 }
 0x468   : > { %1349 = vrot.lane.b32.xlu0 %v1337_v3, %s4025_s22 }
 0x4ba   : > { %v1348_v15 = vpop.permute.xlu2 %1347 }
 0x4bb   : > { %v1357_v59 = vmul.f32 %v3129_v16, %v1348_v15 }
 0x4c2   : > { %v1344_v6 = vpop.permute.xlu0 %1343 }
 0x4c3   : > { %v1355_v12 = vmul.f32 %v3125_v7, %v1344_v6 }
 0x4ca   : > { %v1346_v11 = vpop.permute.xlu1 %1345 }
 0x4cb   : > { %v1356_v13 = vmul.f32 %v3127_v8, %v1346_v11 }
 0x4cd   : > { %v1359_v14 = vpack.c.bf16 %v1356_v13, %v1355_v12 }
 0x4cf   : > { %2625 = vmatmul.msk.bf16.vlgmr.msrb.gmra.mxu1 %vm606_vm2, %v1359_v14 }
 0x4da   : > { %v1350_v19 = vpop.permute.xlu0 %1349 }
 0x4db   : > { %v1358_v20 = vmul.f32 %v3131_v18, %v1350_v19 }
 0x4dd   : > { %v1360_v62 = vpack.c.bf16 %v1358_v20, %v1357_v59 }
 0x4df   : > { %2626 = vmatmul.msk.bf16.gmra.mxu1 %vm606_vm2, %v1360_v62 }
 0x54c   : > { %v1396_v22 = vpop.f32.mrf.mxu1 }
 0x54d   : > { %v3626_v23 = vadd.f32 %v3053_v21, %v1396_v22 }
 0x54f   : > { %v1406_v5 = vadd.f32 %v3626_v23, %v3535_v44  ;;  %v2841_v44 = vld [vmem:[%s3995_s8 + $0x50] sm:$0xff] }
 0x550   : > { %1539 = vmatpush.bf16.msrb.mxu3 %v2841_v44 }
 0x551   : > { %v3631_v17 = vmul.f32 %v1406_v5, %v3532_v40  ;;  %v3054_v5 = vld [vmem:[%s3996_s9 + $0x1] ss:$0 sm:$0xff] }
 0x553   : > { %1433 = vst.msk [vmem:[#allocation2 + $0x2] sm:$0xff] %vm606_vm2, %v3631_v17 }
 0x554   : > { %v1398_v24 = vpop.f32.mrf.mxu1 }
 0x555   : > { %v3635_v25 = vadd.f32 %v3053_v21, %v1398_v24 }
 0x557   : > { %v1407_v27 = vadd.f32 %v3635_v25, %v3542_v54 }
 0x559   : > { %v3646_v28 = vmul.f32 %v1407_v27, %v3539_v51 }
 0x55a   : > { %v1441_v32 = vld [vmem:[#allocation2 + $0x2] sm:$0xff] }
 0x55b   : > { %1434 = vst.msk [vmem:[#allocation2 + $0xa] sm:$0xff] %vm606_vm2, %v3646_v28  ;;  %v1437_v0 = vld [vmem:[#allocation2 + $0x1] sm:$0xff] }
 0x55c   : > { %v1401_v29 = vpop.f32.mrf.mxu1 }
 0x55d   : > { %v3650_v30 = vadd.f32 %v3053_v21, %v1401_v29 }
 0x55f   : > { %v1408_v31 = vadd.f32 %v3650_v30, %v3549_v2 }
 0x561   : > { %v3655_v54 = vmul.f32 %v1408_v31, %v3546_v63 }
 0x562   : > { %v1442_v33 = vld [vmem:[#allocation2 + $0xa] sm:$0xff] }
 0x563   : > { %1435 = vst.msk [vmem:[#allocation2 + $0x12] sm:$0xff] %vm606_vm2, %v3655_v54  ;;  %v2989_v34 = vpack.i.bf16 %v1442_v33, %v1441_v32  ;;  %v1445_v2 = vld [vmem:[#allocation2 + $0x3] sm:$0xff] }
 0x564   : > { %v1403_v35 = vpop.f32.mrf.mxu1  ;;  %v1438_v1 = vld [vmem:[#allocation2 + $0x9] sm:$0xff] }
 0x565   : > { %v3659_v36 = vadd.f32 %v3053_v21, %v1403_v35  ;;  %2990 = vrot.lane.b32.xlu1 %v2989_v34, %s4024_s3 }
 0x567   : > { %v1409_v37 = vadd.f32 %v3659_v36, %v3557_v10  ;;  %v2840_v10 = vld [vmem:[%s3995_s8 + $0x48] sm:$0xff] }
 0x568   : > { %1540 = vmatpush.bf16.msrb.mxu3 %v2840_v10 }
 0x569   : > { %v3665_v38 = vmul.f32 %v1409_v37, %v3554_v9 }
 0x56a   : > { %v1446_v39 = vld [vmem:[#allocation2 + $0xb] sm:$0xff] }
 0x56b   : > { %1436 = vst.msk [vmem:[#allocation2 + $0x1a] sm:$0xff] %vm606_vm2, %v3665_v38  ;;  %v2994_v41 = vpack.i.bf16 %v1446_v39, %v1445_v2  ;;  %v1443_v42 = vld [vmem:[#allocation2 + $0x12] sm:$0xff] }
 0x56c   : > { %1541 = vmatpush.bf16.msrb.mxu3 %v2839_v49  ;;  %v1439_v18 = vld [vmem:[#allocation2 + $0x11] sm:$0xff] }
 0x56d   : > { %2995 = vrot.lane.b32.xlu2 %v2994_v41, %s4023_s2 }
 0x570   : > { %1542 = vmatpush.bf16.msrb.mxu3 %v2838_v50 }
 0x572   : > { %v1444_v43 = vld [vmem:[#allocation2 + $0x1a] sm:$0xff] }
 0x573   : > { %v1447_v45 = vld [vmem:[#allocation2 + $0x13] sm:$0xff]  ;;  %v1448_v46 = vld [vmem:[#allocation2 + $0x1b] sm:$0xff]  ;;  %v2999_v47 = vpack.i.bf16 %v1444_v43, %v1443_v42 }
 0x574   : > { %v3004_v48 = vpack.i.bf16 %v1448_v46, %v1447_v45  ;;  %1543 = vmatpush.bf16.msrb.mxu3 %v2837_v52  ;;  %v1440_v19 = vld [vmem:[#allocation2 + $0x19] sm:$0xff] }
 0x575   : > { %3000 = vrot.lane.b32.xlu0 %v2999_v47, %s4024_s3 }
 0x576   : > { %3005 = vrot.lane.b32.xlu1 %v3004_v48, %s4023_s2 }
 0x5c7   : > { %v2996_v53 = vpop.permute.xlu2 %2995 }
 0x5c8   : > { %v2998_v60 = vunpack.i.h.bf16 %v2996_v53  ;;  %v2997_v61 = vunpack.i.l.bf16 %v2996_v53 }
 0x5d7   : > { %v2991_v55 = vpop.permute.xlu1 %2990 }
 0x5d8   : > { %v2993_v57 = vunpack.i.h.bf16 %v2991_v55  ;;  %v2992_v58 = vunpack.i.l.bf16 %v2991_v55 }
 0x5da   : > { %v1481_v3 = vsel %vm606_vm2, %v1437_v0, %v2992_v58  ;;  %v1482_v4 = vsel %vm606_vm2, %v1438_v1, %v2993_v57 }
 0x5db   : > { %v1485_v6 = vsel %vm683_vm3, %v1481_v3, %v2997_v61  ;;  %v1486_v7 = vsel %vm683_vm3, %v1482_v4, %v2998_v60 }
 0x5dc   : > { %v1489_v8 = vpack.c.bf16 %v1486_v7, %v1485_v6 }
 0x5de   : > { %2664 = vmatmul.msk.bf16.vlgmr.msrb.gmra.mxu3 %vm688_vm4, %v1489_v8 }
 0x5e7   : > { %v3001_v11 = vpop.permute.xlu0 %3000 }
 0x5e8   : > { %v3006_v12 = vpop.permute.xlu1 %3005  ;;  %v3003_v13 = vunpack.i.h.bf16 %v3001_v11  ;;  %v3002_v14 = vunpack.i.l.bf16 %v3001_v11 }
 0x5e9   : > { %v3008_v15 = vunpack.i.h.bf16 %v3006_v12  ;;  %v3007_v16 = vunpack.i.l.bf16 %v3006_v12 }
 0x5ea   : > { %v1483_v59 = vsel %vm606_vm2, %v1439_v18, %v3002_v14  ;;  %v1484_v20 = vsel %vm606_vm2, %v1440_v19, %v3003_v13 }
 0x5eb   : > { %v1487_v62 = vsel %vm683_vm3, %v1483_v59, %v3007_v16  ;;  %v1488_v21 = vsel %vm683_vm3, %v1484_v20, %v3008_v15 }
 0x5ec   : > { %v1490_v22 = vpack.c.bf16 %v1488_v21, %v1487_v62 }
 0x5ee   : > { %2665 = vmatmul.msk.bf16.gmra.mxu3 %vm688_vm4, %v1490_v22 }
 0x661   : > { %v1545_v24 = vpop.f32.mrf.mxu3 }
 0x662   : > { %v3697_v26 = vadd.f32 %v3054_v5, %v1545_v24 }
 0x664   : > { %v2666_v27 = vmul.f32 -1.442695, %v3697_v26 }
 0x666   : > { %3132 = vpow2.f32 %v2666_v27 }
 0x669   : > { %v1547_v44 = vpop.f32.mrf.mxu3 }
 0x66a   : > { %v3700_v29 = vadd.f32 %v3054_v5, %v1547_v44 }
 0x66c   : > { %v3133_v31 = vpop.eup %3132  ;;  %v2667_v32 = vmul.f32 -1.442695, %v3700_v29 }
 0x66d   : > { %v1571_v33 = vadd.f32 1.0, %v3133_v31 }
 0x66e   : > { %3134 = vpow2.f32 %v2667_v32 }
 0x66f   : > { %3136 = vrcp.f32 %v1571_v33  ;;  %v1586_v46 = vand.u32 2147483648, %v1571_v33  ;;  %v1584_v10 = vand.u32 2147483647, %v1571_v33  ;;  %vm1580_vm10 = vweird.f32 %v1571_v33 }
 0x671   : > { %v1550_v34 = vpop.f32.mrf.mxu3  ;;  %v1587_v57 = vor.u32 1.1754944e-38, %v1586_v46  ;;  %vm1585_vm12 = vcmp.eq.f32.partialorder %v1584_v10, 8.507059e+37 }
 0x672   : > { %v3703_v35 = vadd.f32 %v3054_v5, %v1550_v34 }
 0x674   : > { %v3135_v37 = vpop.eup %3134  ;;  %v2668_v2 = vmul.f32 -1.442695, %v3703_v35 }
 0x675   : > { %v3137_v39 = vpop.eup %3136  ;;  %v1572_v41 = vadd.f32 1.0, %v3135_v37 }
 0x676   : > { %3138 = vpow2.f32 %v2668_v2  ;;  %v1576_v42 = vmul.f32 %v3137_v39, %v1571_v33  ;;  %vm1581_vm9 = vweird.f32 %v3137_v39 }
 0x677   : > { %3140 = vrcp.f32 %v1572_v41  ;;  %vm1582_vm11 = vmor %vm1580_vm10, %vm1581_vm9  ;;  %v1601_v1 = vand.u32 2147483648, %v1572_v41  ;;  %v1599_v4 = vand.u32 2147483647, %v1572_v41  ;;  %vm1595_vm14 = vweird.f32 %v1572_v41 }
 0x678   : > { %v1577_v43 = vsub.f32 1.0, %v1576_v42 }
 0x679   : > { %v1552_v45 = vpop.f32.mrf.mxu3  ;;  %v1602_v12 = vor.u32 1.1754944e-38, %v1601_v1  ;;  %vm1600_vm0 = vcmp.eq.f32.partialorder %v1599_v4, 8.507059e+37 }
 0x67a   : > { %v3706_v47 = vadd.f32 %v3054_v5, %v1552_v45  ;;  %v1578_v48 = vmul.f32 %v3137_v39, %v1577_v43 }
 0x67c   : > { %v3139_v49 = vpop.eup %3138  ;;  %v2669_v50 = vmul.f32 -1.442695, %v3706_v47  ;;  %v1579_v52 = vadd.f32 %v3137_v39, %v1578_v48 }
 0x67d   : > { %v3141_v53 = vpop.eup %3140  ;;  %v1573_v55 = vadd.f32 1.0, %v3139_v49 }
 0x67e   : > { %3142 = vpow2.f32 %v2669_v50  ;;  %v1583_v58 = vsel %vm1582_vm11, %v3137_v39, %v1579_v52  ;;  %v1591_v60 = vmul.f32 %v3141_v53, %v1572_v41  ;;  %vm1596_vm13 = vweird.f32 %v3141_v53  ;;  %v2844_v39 = vld [vmem:[%s3997_s10 + $0x18] sm:$0xff]  ;;  %v2843_v41 = vld [vmem:[%s3997_s10 + $0x10] sm:$0xff] }
 0x67f   : > { %3144 = vrcp.f32 %v1573_v55  ;;  %v1588_v61 = vsel %vm1585_vm12, %v1587_v57, %v1583_v58  ;;  %vm1597_vm15 = vmor %vm1595_vm14, %vm1596_vm13  ;;  %v1616_v18 = vand.u32 2147483648, %v1573_v55  ;;  %v1614_v59 = vand.u32 2147483647, %v1573_v55  ;;  %1691 = vmatpush.bf16.msra.mxu0 %v2844_v39 }
 0x680   : > { %1639 = vrot.lane.b32.xlu2 %v1588_v61, %s4025_s22  ;;  %v1592_v0 = vsub.f32 1.0, %v1591_v60  ;;  %vm1610_vm5 = vweird.f32 %v1573_v55 }
 0x681   : > { %v1617_v21 = vor.u32 1.1754944e-38, %v1616_v18  ;;  %vm1615_vm7 = vcmp.eq.f32.partialorder %v1614_v59, 8.507059e+37 }
 0x682   : > { %v1593_v3 = vmul.f32 %v3141_v53, %v1592_v0 }
 0x683   : > { %1692 = vmatpush.bf16.msra.mxu0 %v2843_v41 }
 0x684   : > { %v3143_v6 = vpop.eup %3142  ;;  %v1594_v7 = vadd.f32 %v3141_v53, %v1593_v3  ;;  %v2850_v3 = vld [vmem:[%s3995_s8 + $0x88] sm:$0xff] }
 0x685   : > { %v3145_v8 = vpop.eup %3144  ;;  %v1574_v11 = vadd.f32 1.0, %v3143_v6  ;;  %1836 = vmatpush.bf16.msrb.mxu2 %v2850_v3 }
 0x686   : > { %v1598_v13 = vsel %vm1597_vm15, %v3141_v53, %v1594_v7  ;;  %v1606_v14 = vmul.f32 %v3145_v8, %v1573_v55  ;;  %vm1611_vm1 = vweird.f32 %v3145_v8 }
 0x687   : > { %3146 = vrcp.f32 %v1574_v11  ;;  %v1603_v15 = vsel %vm1600_vm0, %v1602_v12, %v1598_v13  ;;  %vm1612_vm6 = vmor %vm1610_vm5, %vm1611_vm1  ;;  %v1631_v44 = vand.u32 2147483648, %v1574_v11  ;;  %v1629_v32 = vand.u32 2147483647, %v1574_v11 }
 0x688   : > { %1641 = vrot.lane.b32.xlu0 %v1603_v15, %s4025_s22  ;;  %v1607_v16 = vsub.f32 1.0, %v1606_v14  ;;  %vm1625_vm9 = vweird.f32 %v1574_v11  ;;  %3148 = vtanh.f32 %v3697_v26 }
 0x689   : > { %v1632_v34 = vor.u32 1.1754944e-38, %v1631_v44  ;;  %vm1630_vm11 = vcmp.eq.f32.partialorder %v1629_v32, 8.507059e+37  ;;  %3150 = vtanh.f32 %v3700_v29  ;;  %v2847_v44 = vld [vmem:[%s3995_s8 + $0x70] sm:$0xff]  ;;  %v2845_v32 = vld [vmem:[%s3995_s8 + $0x60] sm:$0xff] }
 0x68a   : > { %v1608_v19 = vmul.f32 %v3145_v8, %v1607_v16  ;;  %3152 = vtanh.f32 %v3703_v35  ;;  %v3055_v35 = vld [vmem:[%s3998_s11 + $0x1] ss:$0 sm:$0xff] }
 0x68b   : > { %3154 = vtanh.f32 %v3706_v47 }
 0x68c   : > { %v1609_v20 = vadd.f32 %v3145_v8, %v1608_v19 }
 0x68d   : > { %v3147_v62 = vpop.eup %3146 }
 0x68e   : > { %v1613_v22 = vsel %vm1612_vm6, %v3145_v8, %v1609_v20  ;;  %v1621_v5 = vmul.f32 %v3147_v62, %v1574_v11  ;;  %vm1626_vm8 = vweird.f32 %v3147_v62  ;;  %v3149_v43 = vpop.eup %3148 }
 0x68f   : > { %v1618_v24 = vsel %vm1615_vm7, %v1617_v21, %v1613_v22  ;;  %vm1627_vm10 = vmor %vm1625_vm9, %vm1626_vm8  ;;  %v3151_v45 = vpop.eup %3150 }
 0x690   : > { %1643 = vrot.lane.b32.xlu1 %v1618_v24, %s4025_s22  ;;  %v1622_v27 = vsub.f32 1.0, %v1621_v5  ;;  %v3153_v52 = vpop.eup %3152 }
 0x691   : > { %v3155_v53 = vpop.eup %3154 }
 0x692   : > { %v1623_v31 = vmul.f32 %v3147_v62, %v1622_v27 }
 0x694   : > { %v1624_v33 = vadd.f32 %v3147_v62, %v1623_v31  ;;  %v2846_v31 = vld [vmem:[%s3995_s8 + $0x68] sm:$0xff] }
 0x696   : > { %v1628_v37 = vsel %vm1627_vm10, %v3147_v62, %v1624_v33 }
 0x697   : > { %v1633_v2 = vsel %vm1630_vm11, %v1632_v34, %v1628_v37 }
 0x698   : > { %1645 = vrot.lane.b32.xlu2 %v1633_v2, %s4025_s22 }
 0x6da   : > { %v1640_v42 = vpop.permute.xlu2 %1639 }
 0x6db   : > { %v1651_v48 = vmul.f32 %v3149_v43, %v1640_v42 }
 0x6f2   : > { %v1646_v50 = vpop.permute.xlu2 %1645 }
 0x6f3   : > { %v1654_v26 = vmul.f32 %v3155_v53, %v1646_v50 }
 0x6fa   : > { %v1642_v46 = vpop.permute.xlu0 %1641 }
 0x6fb   : > { %v1652_v10 = vmul.f32 %v3151_v45, %v1642_v46 }
 0x6fd   : > { %v1655_v49 = vpack.c.bf16 %v1652_v10, %v1651_v48 }
 0x6ff   : > { %2683 = vmatmul.msk.bf16.vlgmr.msra.gmra.mxu0 %vm606_vm2, %v1655_v49 }
 0x702   : > { %v1644_v55 = vpop.permute.xlu1 %1643 }
 0x703   : > { %v1653_v57 = vmul.f32 %v3153_v52, %v1644_v55 }
 0x705   : > { %v1656_v29 = vpack.c.bf16 %v1654_v26, %v1653_v57 }
 0x70f   : > { %2684 = vmatmul.msk.bf16.gmra.mxu0 %vm606_vm2, %v1656_v29 }
 0x77c   : > { %v1694_v58 = vpop.f32.mrf.mxu0 }
 0x77d   : > { %v3728_v60 = vadd.f32 %v3055_v35, %v1694_v58 }
 0x77f   : > { %v1704_v47 = vadd.f32 %v3728_v60, %v3631_v17  ;;  %v2849_v17 = vld [vmem:[%s3995_s8 + $0x80] sm:$0xff] }
 0x780   : > { %1837 = vmatpush.bf16.msrb.mxu2 %v2849_v17  ;;  %v3056_v17 = vld [vmem:[%s3996_s9 + $0x2] ss:$0 sm:$0xff] }
 0x781   : > { %v3733_v61 = vmul.f32 %v1704_v47, %v3532_v40 }
 0x783   : > { %1731 = vst.msk [vmem:[#allocation2 + $0x2] sm:$0xff] %vm606_vm2, %v3733_v61 }
 0x784   : > { %v1696_v0 = vpop.f32.mrf.mxu0 }
 0x785   : > { %v3737_v1 = vadd.f32 %v3055_v35, %v1696_v0 }
 0x787   : > { %v1705_v4 = vadd.f32 %v3737_v1, %v3646_v28 }
 0x789   : > { %v3748_v6 = vmul.f32 %v1705_v4, %v3539_v51 }
 0x78a   : > { %v1739_v12 = vld [vmem:[#allocation2 + $0x2] sm:$0xff] }
 0x78b   : > { %1732 = vst.msk [vmem:[#allocation2 + $0xa] sm:$0xff] %vm606_vm2, %v3748_v6  ;;  %v1735_v39 = vld [vmem:[#allocation2 + $0x1] sm:$0xff] }
 0x78c   : > { %v1699_v7 = vpop.f32.mrf.mxu0 }
 0x78d   : > { %v3752_v8 = vadd.f32 %v3055_v35, %v1699_v7 }
 0x78f   : > { %v1706_v11 = vadd.f32 %v3752_v8, %v3655_v54 }
 0x791   : > { %v3757_v28 = vmul.f32 %v1706_v11, %v3546_v63 }
 0x792   : > { %v1740_v13 = vld [vmem:[#allocation2 + $0xa] sm:$0xff] }
 0x793   : > { %1733 = vst.msk [vmem:[#allocation2 + $0x12] sm:$0xff] %vm606_vm2, %v3757_v28  ;;  %v3009_v14 = vpack.i.bf16 %v1740_v13, %v1739_v12  ;;  %v1743_v54 = vld [vmem:[#allocation2 + $0x3] sm:$0xff] }
 0x794   : > { %v1701_v15 = vpop.f32.mrf.mxu0  ;;  %v1736_v41 = vld [vmem:[#allocation2 + $0x9] sm:$0xff] }
 0x795   : > { %v3761_v16 = vadd.f32 %v3055_v35, %v1701_v15  ;;  %3010 = vrot.lane.b32.xlu0 %v3009_v14, %s4024_s3 }
 0x797   : > { %v1707_v18 = vadd.f32 %v3761_v16, %v3665_v38  ;;  %v2848_v38 = vld [vmem:[%s3995_s8 + $0x78] sm:$0xff] }
 0x798   : > { %1838 = vmatpush.bf16.msrb.mxu2 %v2848_v38  ;;  %v2852_v38 = vld [vmem:[%s3997_s10 + $0x28] sm:$0xff] }
 0x799   : > { %v3767_v19 = vmul.f32 %v1707_v18, %v3554_v9  ;;  %1989 = vmatpush.bf16.msra.mxu1 %v2852_v38 }
 0x79a   : > { %v1744_v59 = vld [vmem:[#allocation2 + $0xb] sm:$0xff] }
 0x79b   : > { %1734 = vst.msk [vmem:[#allocation2 + $0x1a] sm:$0xff] %vm606_vm2, %v3767_v19  ;;  %v3014_v20 = vpack.i.bf16 %v1744_v59, %v1743_v54  ;;  %v1741_v62 = vld [vmem:[#allocation2 + $0x12] sm:$0xff] }
 0x79c   : > { %1839 = vmatpush.bf16.msrb.mxu2 %v2847_v44  ;;  %v1737_v29 = vld [vmem:[#allocation2 + $0x11] sm:$0xff] }
 0x79d   : > { %3015 = vrot.lane.b32.xlu1 %v3014_v20, %s4023_s2 }
 0x7a0   : > { %1840 = vmatpush.bf16.msrb.mxu2 %v2846_v31 }
 0x7a2   : > { %v1742_v21 = vld [vmem:[#allocation2 + $0x1a] sm:$0xff] }
 0x7a3   : > { %v1745_v22 = vld [vmem:[#allocation2 + $0x13] sm:$0xff]  ;;  %v1746_v5 = vld [vmem:[#allocation2 + $0x1b] sm:$0xff]  ;;  %v3019_v24 = vpack.i.bf16 %v1742_v21, %v1741_v62 }
 0x7a4   : > { %v3024_v27 = vpack.i.bf16 %v1746_v5, %v1745_v22  ;;  %1841 = vmatpush.bf16.msrb.mxu2 %v2845_v32  ;;  %v1738_v35 = vld [vmem:[#allocation2 + $0x19] sm:$0xff] }
 0x7a5   : > { %3020 = vrot.lane.b32.xlu2 %v3019_v24, %s4024_s3 }
 0x7a6   : > { %3025 = vrot.lane.b32.xlu0 %v3024_v27, %s4023_s2 }
 0x7ff   : > { %v3021_v50 = vpop.permute.xlu2 %3020 }
 0x800   : > { %v3023_v53 = vunpack.i.h.bf16 %v3021_v50  ;;  %v3022_v55 = vunpack.i.l.bf16 %v3021_v50 }
 0x802   : > { %v1781_v58 = vsel %vm606_vm2, %v1737_v29, %v3022_v55  ;;  %v1782_v47 = vsel %vm606_vm2, %v1738_v35, %v3023_v53 }
 0x807   : > { %v3011_v33 = vpop.permute.xlu0 %3010 }
 0x808   : > { %v3013_v34 = vunpack.i.h.bf16 %v3011_v33  ;;  %v3012_v37 = vunpack.i.l.bf16 %v3011_v33 }
 0x80a   : > { %v1779_v45 = vsel %vm606_vm2, %v1735_v39, %v3012_v37  ;;  %v1780_v46 = vsel %vm606_vm2, %v1736_v41, %v3013_v34 }
 0x80f   : > { %v3016_v2 = vpop.permute.xlu1 %3015 }
 0x810   : > { %v3018_v42 = vunpack.i.h.bf16 %v3016_v2  ;;  %v3017_v43 = vunpack.i.l.bf16 %v3016_v2 }
 0x812   : > { %v1783_v48 = vsel %vm683_vm3, %v1779_v45, %v3017_v43  ;;  %v1784_v10 = vsel %vm683_vm3, %v1780_v46, %v3018_v42 }
 0x813   : > { %v1787_v49 = vpack.c.bf16 %v1784_v10, %v1783_v48 }
 0x815   : > { %2722 = vmatmul.msk.bf16.vlgmr.msrb.gmra.mxu2 %vm688_vm4, %v1787_v49 }
 0x818   : > { %v3026_v52 = vpop.permute.xlu0 %3025 }
 0x819   : > { %v3028_v26 = vunpack.i.h.bf16 %v3026_v52  ;;  %v3027_v57 = vunpack.i.l.bf16 %v3026_v52 }
 0x81b   : > { %v1785_v0 = vsel %vm683_vm3, %v1781_v58, %v3027_v57  ;;  %v1786_v3 = vsel %vm683_vm3, %v1782_v47, %v3028_v26 }
 0x81c   : > { %v1788_v4 = vpack.c.bf16 %v1786_v3, %v1785_v0 }
 0x825   : > { %2723 = vmatmul.msk.bf16.gmra.mxu2 %vm688_vm4, %v1788_v4 }
 0x898   : > { %v1843_v7 = vpop.f32.mrf.mxu2 }
 0x899   : > { %v3799_v11 = vadd.f32 %v3056_v17, %v1843_v7 }
 0x89b   : > { %v2724_v12 = vmul.f32 -1.442695, %v3799_v11 }
 0x89d   : > { %3156 = vpow2.f32 %v2724_v12 }
 0x8a0   : > { %v1845_v13 = vpop.f32.mrf.mxu2 }
 0x8a1   : > { %v3802_v14 = vadd.f32 %v3056_v17, %v1845_v13 }
 0x8a3   : > { %v3157_v15 = vpop.eup %3156  ;;  %v2725_v18 = vmul.f32 -1.442695, %v3802_v14 }
 0x8a4   : > { %v1869_v54 = vadd.f32 1.0, %v3157_v15 }
 0x8a5   : > { %3158 = vpow2.f32 %v2725_v18 }
 0x8a6   : > { %3160 = vrcp.f32 %v1869_v54  ;;  %v1884_v31 = vand.u32 2147483648, %v1869_v54  ;;  %v1882_v34 = vand.u32 2147483647, %v1869_v54  ;;  %vm1878_vm13 = vweird.f32 %v1869_v54 }
 0x8a8   : > { %v1848_v59 = vpop.f32.mrf.mxu2  ;;  %v1885_v43 = vor.u32 1.1754944e-38, %v1884_v31  ;;  %vm1883_vm15 = vcmp.eq.f32.partialorder %v1882_v34, 8.507059e+37 }
 0x8a9   : > { %v3805_v20 = vadd.f32 %v3056_v17, %v1848_v59 }
 0x8ab   : > { %v3159_v62 = vpop.eup %3158  ;;  %v2726_v21 = vmul.f32 -1.442695, %v3805_v20 }
 0x8ac   : > { %v3161_v22 = vpop.eup %3160  ;;  %v1870_v5 = vadd.f32 1.0, %v3159_v62 }
 0x8ad   : > { %3162 = vpow2.f32 %v2726_v21  ;;  %v1874_v24 = vmul.f32 %v3161_v22, %v1869_v54  ;;  %vm1879_vm12 = vweird.f32 %v3161_v22 }
 0x8ae   : > { %3164 = vrcp.f32 %v1870_v5  ;;  %vm1880_vm14 = vmor %vm1878_vm13, %vm1879_vm12  ;;  %v1899_v49 = vand.u32 2147483648, %v1870_v5  ;;  %v1897_v52 = vand.u32 2147483647, %v1870_v5  ;;  %vm1893_vm1 = vweird.f32 %v1870_v5 }
 0x8af   : > { %v1875_v27 = vsub.f32 1.0, %v1874_v24 }
 0x8b0   : > { %v1850_v44 = vpop.f32.mrf.mxu2  ;;  %v1900_v29 = vor.u32 1.1754944e-38, %v1899_v49  ;;  %vm1898_vm6 = vcmp.eq.f32.partialorder %v1897_v52, 8.507059e+37 }
 0x8b1   : > { %v3811_v32 = vadd.f32 %v3056_v17, %v1850_v44  ;;  %v1876_v33 = vmul.f32 %v3161_v22, %v1875_v27  ;;  %v2851_v44 = vld [vmem:[%s3997_s10 + $0x20] sm:$0xff] }
 0x8b2   : > { %1990 = vmatpush.bf16.msra.mxu1 %v2851_v44 }
 0x8b3   : > { %v3163_v37 = vpop.eup %3162  ;;  %v2727_v2 = vmul.f32 -1.442695, %v3811_v32  ;;  %v1877_v39 = vadd.f32 %v3161_v22, %v1876_v33 }
 0x8b4   : > { %v3165_v41 = vpop.eup %3164  ;;  %v1871_v42 = vadd.f32 1.0, %v3163_v37 }
 0x8b5   : > { %3166 = vpow2.f32 %v2727_v2  ;;  %v1881_v45 = vsel %vm1880_vm14, %v3161_v22, %v1877_v39  ;;  %v1889_v46 = vmul.f32 %v3165_v41, %v1870_v5  ;;  %vm1894_vm0 = vweird.f32 %v3165_v41 }
 0x8b6   : > { %3168 = vrcp.f32 %v1871_v42  ;;  %v1886_v48 = vsel %vm1883_vm15, %v1885_v43, %v1881_v45  ;;  %vm1895_vm5 = vmor %vm1893_vm1, %vm1894_vm0  ;;  %v1914_v3 = vand.u32 2147483648, %v1871_v42  ;;  %v1912_v17 = vand.u32 2147483647, %v1871_v42 }
 0x8b7   : > { %1937 = vrot.lane.b32.xlu1 %v1886_v48, %s4025_s22  ;;  %v1890_v10 = vsub.f32 1.0, %v1889_v46  ;;  %vm1908_vm8 = vweird.f32 %v1871_v42 }
 0x8b8   : > { %v1915_v13 = vor.u32 1.1754944e-38, %v1914_v3  ;;  %vm1913_vm10 = vcmp.eq.f32.partialorder %v1912_v17, 8.507059e+37  ;;  %v1715_v17 = vadd.f32 %v3761_v16, %v3659_v36  ;;  %v2858_v16 = vld [vmem:[%s3995_s8 + $0xb8] sm:$0xff] }
 0x8b9   : > { %v1891_v50 = vmul.f32 %v3165_v41, %v1890_v10  ;;  %v3057_v10 = vld [vmem:[%s3998_s11 + $0x2] ss:$0 sm:$0xff]  ;;  %2134 = vmatpush.bf16.msra.mxu3 %v2858_v16 }
 0x8bb   : > { %v3167_v53 = vpop.eup %3166  ;;  %v1892_v55 = vadd.f32 %v3165_v41, %v1891_v50  ;;  %v1712_v50 = vadd.f32 %v3728_v60, %v3626_v23 }
 0x8bc   : > { %v3169_v26 = vpop.eup %3168  ;;  %v1872_v57 = vadd.f32 1.0, %v3167_v53 }
 0x8bd   : > { %v1896_v35 = vsel %vm1895_vm5, %v3165_v41, %v1892_v55  ;;  %v1904_v58 = vmul.f32 %v3169_v26, %v1871_v42  ;;  %vm1909_vm7 = vweird.f32 %v3169_v26 }
 0x8be   : > { %3170 = vrcp.f32 %v1872_v57  ;;  %v1901_v47 = vsel %vm1898_vm6, %v1900_v29, %v1896_v35  ;;  %vm1910_vm9 = vmor %vm1908_vm8, %vm1909_vm7  ;;  %v1929_v62 = vand.u32 2147483648, %v1872_v57  ;;  %v1927_v22 = vand.u32 2147483647, %v1872_v57 }
 0x8bf   : > { %1939 = vrot.lane.b32.xlu2 %v1901_v47, %s4025_s22  ;;  %v1905_v0 = vsub.f32 1.0, %v1904_v58  ;;  %vm1923_vm12 = vweird.f32 %v1872_v57  ;;  %3172 = vtanh.f32 %v3799_v11 }
 0x8c0   : > { %v1930_v24 = vor.u32 1.1754944e-38, %v1929_v62  ;;  %vm1928_vm14 = vcmp.eq.f32.partialorder %v1927_v22, 8.507059e+37  ;;  %3174 = vtanh.f32 %v3802_v14  ;;  %v2856_v22 = vld [vmem:[%s3995_s8 + $0xa8] sm:$0xff] }
 0x8c1   : > { %v1906_v4 = vmul.f32 %v3169_v26, %v1905_v0  ;;  %3176 = vtanh.f32 %v3805_v20  ;;  %v1714_v0 = vadd.f32 %v3752_v8, %v3650_v30 }
 0x8c2   : > { %3178 = vtanh.f32 %v3811_v32 }
 0x8c3   : > { %v1907_v7 = vadd.f32 %v3169_v26, %v1906_v4 }
 0x8c4   : > { %v3171_v12 = vpop.eup %3170 }
 0x8c5   : > { %v1911_v15 = vsel %vm1910_vm9, %v3169_v26, %v1907_v7  ;;  %v1919_v18 = vmul.f32 %v3171_v12, %v1872_v57  ;;  %vm1924_vm11 = vweird.f32 %v3171_v12  ;;  %v3173_v33 = vpop.eup %3172  ;;  %v1713_v26 = vadd.f32 %v3737_v1, %v3635_v25 }
 0x8c6   : > { %v1916_v54 = vsel %vm1913_vm10, %v1915_v13, %v1911_v15  ;;  %vm1925_vm13 = vmor %vm1923_vm12, %vm1924_vm11  ;;  %v3175_v34 = vpop.eup %3174 }
 0x8c7   : > { %1941 = vrot.lane.b32.xlu0 %v1916_v54, %s4025_s22  ;;  %v1920_v59 = vsub.f32 1.0, %v1919_v18  ;;  %v3177_v43 = vpop.eup %3176 }
 0x8c8   : > { %v3179_v45 = vpop.eup %3178 }
 0x8c9   : > { %v1921_v21 = vmul.f32 %v3171_v12, %v1920_v59 }
 0x8cb   : > { %v1922_v5 = vadd.f32 %v3171_v12, %v1921_v21 }
 0x8cd   : > { %v1926_v27 = vsel %vm1925_vm13, %v3171_v12, %v1922_v5  ;;  %v2855_v5 = vld [vmem:[%s3995_s8 + $0xa0] sm:$0xff] }
 0x8ce   : > { %v1931_v38 = vsel %vm1928_vm14, %v1930_v24, %v1926_v27  ;;  %v2854_v24 = vld [vmem:[%s3995_s8 + $0x98] sm:$0xff]  ;;  %v2853_v27 = vld [vmem:[%s3995_s8 + $0x90] sm:$0xff] }
 0x8cf   : > { %1943 = vrot.lane.b32.xlu1 %v1931_v38, %s4025_s22 }
 0x919   : > { %v1940_v31 = vpop.permute.xlu2 %1939 }
 0x91a   : > { %v1950_v2 = vmul.f32 %v3175_v34, %v1940_v31 }
 0x929   : > { %v1938_v37 = vpop.permute.xlu1 %1937 }
 0x92a   : > { %v1949_v39 = vmul.f32 %v3173_v33, %v1938_v37 }
 0x92c   : > { %v1953_v41 = vpack.c.bf16 %v1950_v2, %v1949_v39 }
 0x92e   : > { %2741 = vmatmul.msk.bf16.vlgmr.msra.gmra.mxu1 %vm606_vm2, %v1953_v41 }
 0x939   : > { %v1942_v42 = vpop.permute.xlu0 %1941 }
 0x93a   : > { %v1951_v11 = vmul.f32 %v3177_v43, %v1942_v42 }
 0x941   : > { %v1944_v46 = vpop.permute.xlu1 %1943 }
 0x942   : > { %v1952_v48 = vmul.f32 %v3179_v45, %v1944_v46 }
 0x944   : > { %v1954_v14 = vpack.c.bf16 %v1952_v48, %v1951_v11 }
 0x946   : > { %2742 = vmatmul.msk.bf16.gmra.mxu1 %vm606_vm2, %v1954_v14 }
 0x9ab   : > { %v1992_v49 = vpop.f32.mrf.mxu1 }
 0x9ac   : > { %v1993_v20 = vadd.f32 %v3057_v10, %v1992_v49 }
 0x9ae   : > { %v2002_v32 = vadd.f32 %v1993_v20, %v3733_v61  ;;  %v3833_v52 = vadd.f32 %v1993_v20, %v1712_v50 }
 0x9b0   : > { %v2006_v53 = vmul.f32 %v2002_v32, %v3532_v40 }
 0x9b2   : > { %2029 = vst.msk [vmem:[#allocation2 + $0x2] sm:$0xff] %vm606_vm2, %v2006_v53 }
 0x9b3   : > { %v1994_v55 = vpop.f32.mrf.mxu1 }
 0x9b4   : > { %v1995_v57 = vadd.f32 %v3057_v10, %v1994_v55 }
 0x9b6   : > { %v2003_v29 = vadd.f32 %v1995_v57, %v3748_v6  ;;  %v3840_v35 = vadd.f32 %v1995_v57, %v1713_v26 }
 0x9b8   : > { %v2007_v23 = vmul.f32 %v2003_v29, %v3539_v51 }
 0x9b9   : > { %v2037_v60 = vld [vmem:[#allocation2 + $0x2] sm:$0xff] }
 0x9ba   : > { %2030 = vst.msk [vmem:[#allocation2 + $0xa] sm:$0xff] %vm606_vm2, %v2007_v23  ;;  %v2033_v34 = vld [vmem:[#allocation2 + $0x1] sm:$0xff] }
 0x9bb   : > { %v3058_v23 = vld [vmem:[%s3996_s9 + $0x3] ss:$0 sm:$0xff] }
 0x9c1   : > { %v2038_v61 = vld [vmem:[#allocation2 + $0xa] sm:$0xff] }
 0x9c2   : > { %v3029_v58 = vpack.i.bf16 %v2038_v61, %v2037_v60  ;;  %v2041_v8 = vld [vmem:[#allocation2 + $0x3] sm:$0xff] }
 0x9c3   : > { %v1997_v47 = vpop.f32.mrf.mxu1  ;;  %v2034_v37 = vld [vmem:[#allocation2 + $0x9] sm:$0xff] }
 0x9c4   : > { %v1998_v3 = vadd.f32 %v3057_v10, %v1997_v47  ;;  %3030 = vrot.lane.b32.xlu2 %v3029_v58, %s4024_s3 }
 0x9c6   : > { %v2004_v25 = vadd.f32 %v1998_v3, %v3757_v28  ;;  %v3848_v1 = vadd.f32 %v1998_v3, %v1714_v0 }
 0x9c8   : > { %v2008_v6 = vmul.f32 %v2004_v25, %v3546_v63 }
 0x9ca   : > { %2031 = vst.msk [vmem:[#allocation2 + $0x12] sm:$0xff] %vm606_vm2, %v2008_v6 }
 0x9cb   : > { %v1999_v4 = vpop.f32.mrf.mxu1 }
 0x9cc   : > { %v2000_v7 = vadd.f32 %v3057_v10, %v1999_v4 }
 0x9ce   : > { %v2005_v12 = vadd.f32 %v2000_v7, %v3767_v19  ;;  %v3855_v13 = vadd.f32 %v2000_v7, %v1715_v17  ;;  %v2857_v19 = vld [vmem:[%s3995_s8 + $0xb0] sm:$0xff] }
 0x9cf   : > { %2135 = vmatpush.bf16.msra.mxu3 %v2857_v19  ;;  %v2361_v19 = vrot.slane %v3521_v56, 4 }
 0x9d0   : > { %v2009_v30 = vmul.f32 %v2005_v12, %v3554_v9 }
 0x9d1   : > { %v2042_v15 = vld [vmem:[#allocation2 + $0xb] sm:$0xff] }
 0x9d2   : > { %2032 = vst.msk [vmem:[#allocation2 + $0x1a] sm:$0xff] %vm606_vm2, %v2009_v30  ;;  %v3034_v28 = vpack.i.bf16 %v2042_v15, %v2041_v8  ;;  %v2039_v18 = vld [vmem:[#allocation2 + $0x12] sm:$0xff] }
 0x9d3   : > { %2136 = vmatpush.bf16.msra.mxu3 %v2856_v22  ;;  %v2035_v49 = vld [vmem:[#allocation2 + $0x11] sm:$0xff] }
 0x9d4   : > { %3035 = vrot.lane.b32.xlu0 %v3034_v28, %s4023_s2 }
 0x9d7   : > { %2137 = vmatpush.bf16.msra.mxu3 %v2855_v5 }
 0x9d9   : > { %v2040_v54 = vld [vmem:[#allocation2 + $0x1a] sm:$0xff] }
 0x9da   : > { %v2043_v59 = vld [vmem:[#allocation2 + $0x13] sm:$0xff]  ;;  %v2044_v62 = vld [vmem:[#allocation2 + $0x1b] sm:$0xff]  ;;  %v3039_v21 = vpack.i.bf16 %v2040_v54, %v2039_v18 }
 0x9db   : > { %v3044_v36 = vpack.i.bf16 %v2044_v62, %v2043_v59  ;;  %2138 = vmatpush.bf16.msra.mxu3 %v2854_v24  ;;  %v2036_v50 = vld [vmem:[#allocation2 + $0x19] sm:$0xff] }
 0x9dc   : > { %3040 = vrot.lane.b32.xlu1 %v3039_v21, %s4024_s3  ;;  %v2860_v18 = vld [vmem:[%s3997_s10 + $0x38] sm:$0xff]  ;;  %s2402_s3 = sshll.u32 %s2398_s21, 4  ;;  %s2403_s3 = int_to_ptr.hbm [resolvable:$true] %s2402_s3 }
 0x9dd   : > { %3045 = vrot.lane.b32.xlu2 %v3044_v36, %s4023_s2  ;;  %2287 = vmatpush.bf16.msrb.mxu0 %v2860_v18  ;;  %s2400_s2 = sshll.u32 %s474_s26, 4  ;;  %s3220_s25 = sshra.s32 %s2403_s3, 4  ;;  %s2401_s2 = int_to_ptr.vmem [resolvable:$true] %s2400_s2  ;;  %s3221_s25 = int_to_ptr.hbm [resolvable:$true] %s3220_s25 }
 0x9de   : > { %s3222_s28 = scalar_lea.hbm %s3221_s25, 1  ;;  %p3227_p0 = scmp.lt.s32.totalorder %s3221_s25, %s4001_s14 }
 0x9df   : > { %2139 = vmatpush.bf16.msra.mxu3 %v2853_v27  ;;  %p3223_p11 = scmp.ne.s32.totalorder %s3221_s25, %s3222_s28  ;;  %p3228_p1 = scmp.lt.s32.totalorder %s3226_s5, %s3222_s28 }
 0x9e1   : > { %p3224_p12 = pnand %p3223_p11, %p3388_p5  ;;  %p3229_p2 = por %p3228_p1, %p3227_p0 }
 0x9e3   : > { %p3225_p13 = pneg %p3224_p12 }
 0x9e5   : > { %p3230_p3 = pnand %p3229_p2, %p3225_p13 }
 0xa1e   : > { %v3031_v38 = vpop.permute.xlu2 %3030 }
 0xa1f   : > { %v3033_v44 = vunpack.i.h.bf16 %v3031_v38  ;;  %v3032_v31 = vunpack.i.l.bf16 %v3031_v38 }
 0xa21   : > { %v2077_v41 = vsel %vm606_vm2, %v2033_v34, %v3032_v31  ;;  %v2078_v42 = vsel %vm606_vm2, %v2034_v37, %v3033_v44  ;;  %v2362_v34 = vadd.f32 %v2361_v19, %v3521_v56 }
 0xa37   : > { %v3046_v10 = vpop.permute.xlu2 %3045 }
 0xa38   : > { %v3048_v53 = vunpack.i.h.bf16 %v3046_v10  ;;  %v3047_v55 = vunpack.i.l.bf16 %v3046_v10 }
 0xa46   : > { %v3036_v33 = vpop.permute.xlu0 %3035 }
 0xa47   : > { %v3038_v2 = vunpack.i.h.bf16 %v3036_v33  ;;  %v3037_v39 = vunpack.i.l.bf16 %v3036_v33 }
 0xa49   : > { %v2081_v43 = vsel %vm683_vm3, %v2077_v41, %v3037_v39  ;;  %v2082_v45 = vsel %vm683_vm3, %v2078_v42, %v3038_v2 }
 0xa4a   : > { %v2085_v46 = vpack.c.bf16 %v2082_v45, %v2081_v43  ;;  %v2363_v45 = vrot.slane %v2362_v34, 2 }
 0xa4c   : > { %2780 = vmatmul.msk.bf16.vlgmr.msra.gmra.mxu3 %vm688_vm4, %v2085_v46 }
 0xa4e   : > { %v3041_v11 = vpop.permute.xlu1 %3040 }
 0xa4f   : > { %v3043_v48 = vunpack.i.h.bf16 %v3041_v11  ;;  %v3042_v14 = vunpack.i.l.bf16 %v3041_v11 }
 0xa51   : > { %v2079_v20 = vsel %vm606_vm2, %v2035_v49, %v3042_v14  ;;  %v2080_v32 = vsel %vm606_vm2, %v2036_v50, %v3043_v48  ;;  %v2364_v50 = vadd.f32 %v2363_v45, %v2362_v34 }
 0xa52   : > { %v2083_v26 = vsel %vm683_vm3, %v2079_v20, %v3047_v55  ;;  %v2084_v57 = vsel %vm683_vm3, %v2080_v32, %v3048_v53 }
 0xa53   : > { %v2086_v29 = vpack.c.bf16 %v2084_v57, %v2083_v26  ;;  %v2365_v26 = vrot.slane %v2364_v50, 1 }
 0xa5c   : > { %2781 = vmatmul.msk.bf16.gmra.mxu3 %vm688_vm4, %v2086_v29 }
 0xacf   : > { %v2141_v60 = vpop.f32.mrf.mxu3 }
 0xad0   : > { %v3893_v61 = vadd.f32 %v3058_v23, %v2141_v60 }
 0xad2   : > { %v2782_v58 = vmul.f32 -1.442695, %v3893_v61 }
 0xad4   : > { %3180 = vpow2.f32 %v2782_v58 }
 0xad7   : > { %v2143_v47 = vpop.f32.mrf.mxu3 }
 0xad8   : > { %v3896_v0 = vadd.f32 %v3058_v23, %v2143_v47  ;;  %v2366_v47 = vadd.f32 %v2365_v26, %v2364_v50 }
 0xada   : > { %v3181_v3 = vpop.eup %3180  ;;  %v2783_v25 = vmul.f32 -1.442695, %v3896_v0 }
 0xadb   : > { %v2167_v6 = vadd.f32 1.0, %v3181_v3 }
 0xadc   : > { %3182 = vpow2.f32 %v2783_v25 }
 0xadd   : > { %3184 = vrcp.f32 %v2167_v6  ;;  %v2182_v59 = vand.u32 2147483648, %v2167_v6  ;;  %v2180_v36 = vand.u32 2147483647, %v2167_v6  ;;  %vm2176_vm4 = vweird.f32 %v2167_v6 }
 0xadf   : > { %v2146_v4 = vpop.f32.mrf.mxu3  ;;  %v2183_v38 = vor.u32 1.1754944e-38, %v2182_v59  ;;  %vm2181_vm0 = vcmp.eq.f32.partialorder %v2180_v36, 8.507059e+37 }
 0xae0   : > { %v3899_v17 = vadd.f32 %v3058_v23, %v2146_v4 }
 0xae2   : > { %v3183_v7 = vpop.eup %3182  ;;  %v2784_v12 = vmul.f32 -1.442695, %v3899_v17 }
 0xae3   : > { %v3185_v30 = vpop.eup %3184  ;;  %v2168_v8 = vadd.f32 1.0, %v3183_v7  ;;  %v2367_v7 = vmax.f32 %v2366_v47, 1.0 }
 0xae4   : > { %3186 = vpow2.f32 %v2784_v12  ;;  %v2172_v15 = vmul.f32 %v3185_v30, %v2167_v6  ;;  %vm2177_vm3 = vweird.f32 %v3185_v30 }
 0xae5   : > { %3188 = vrcp.f32 %v2168_v8  ;;  %vm2178_vm15 = vmor %vm2176_vm4, %vm2177_vm3  ;;  %v2197_v2 = vand.u32 2147483648, %v2168_v8  ;;  %v2195_v41 = vand.u32 2147483647, %v2168_v8  ;;  %vm2191_vm5 = vweird.f32 %v2168_v8 }
 0xae6   : > { %v2173_v28 = vsub.f32 1.0, %v2172_v15  ;;  %vm2308_vm4 = vcmask 523520  }
 0xae7   : > { %v2148_v54 = vpop.f32.mrf.mxu3  ;;  %v2198_v48 = vor.u32 1.1754944e-38, %v2197_v2  ;;  %vm2196_vm7 = vcmp.eq.f32.partialorder %v2195_v41, 8.507059e+37  ;;  %v2325_v41 = vld [vmem:[%s3999_s12 + $0x18] sm:$0xff] }
 0xae8   : > { %v3905_v62 = vadd.f32 %v3058_v23, %v2148_v54  ;;  %v2174_v21 = vmul.f32 %v3185_v30, %v2173_v28  ;;  %v2859_v28 = vld [vmem:[%s3997_s10 + $0x30] sm:$0xff]  ;;  %2345 = vmatpush.msra.mxu2 %v2325_v41 }
 0xae9   : > { %2288 = vmatpush.bf16.msrb.mxu0 %v2859_v28 }
 0xaea   : > { %v3187_v16 = vpop.eup %3186  ;;  %v2785_v22 = vmul.f32 -1.442695, %v3905_v62  ;;  %v2175_v5 = vadd.f32 %v3185_v30, %v2174_v21 }
 0xaeb   : > { %v3189_v24 = vpop.eup %3188  ;;  %v2169_v27 = vadd.f32 1.0, %v3187_v16 }
 0xaec   : > { %3190 = vpow2.f32 %v2785_v22  ;;  %v2179_v44 = vsel %vm2178_vm15, %v3185_v30, %v2175_v5  ;;  %v2187_v31 = vmul.f32 %v3189_v24, %v2168_v8  ;;  %vm2192_vm1 = vweird.f32 %v3189_v24 }
 0xaed   : > { %3192 = vrcp.f32 %v2169_v27  ;;  %v2184_v33 = vsel %vm2181_vm0, %v2183_v38, %v2179_v44  ;;  %vm2193_vm6 = vmor %vm2191_vm5, %vm2192_vm1  ;;  %v2212_v20 = vand.u32 2147483648, %v2169_v27  ;;  %v2210_v53 = vand.u32 2147483647, %v2169_v27  ;;  %v3059_v44 = vld [vmem:[%s3998_s11 + $0x3] ss:$0 sm:$0xff] }
 0xaee   : > { %2235 = vrot.lane.b32.xlu0 %v2184_v33, %s4025_s22  ;;  %v2188_v37 = vsub.f32 1.0, %v2187_v31  ;;  %vm2206_vm9 = vweird.f32 %v2169_v27 }
 0xaef   : > { %v2213_v29 = vor.u32 1.1754944e-38, %v2212_v20  ;;  %vm2211_vm11 = vcmp.eq.f32.partialorder %v2210_v53, 8.507059e+37 }
 0xaf0   : > { %v2189_v39 = vmul.f32 %v3189_v24, %v2188_v37 }
 0xaf2   : > { %v3191_v42 = vpop.eup %3190  ;;  %v2190_v43 = vadd.f32 %v3189_v24, %v2189_v39 }
 0xaf3   : > { %v3193_v46 = vpop.eup %3192  ;;  %v2170_v11 = vadd.f32 1.0, %v3191_v42  ;;  %v2324_v42 = vld [vmem:[%s3999_s12 + $0x10] sm:$0xff] }
 0xaf4   : > { %v2194_v14 = vsel %vm2193_vm6, %v3189_v24, %v2190_v43  ;;  %v2202_v10 = vmul.f32 %v3193_v46, %v2169_v27  ;;  %vm2207_vm8 = vweird.f32 %v3193_v46  ;;  %2346 = vmatpush.msra.mxu2 %v2324_v42 }
 0xaf5   : > { %3194 = vrcp.f32 %v2170_v11  ;;  %v2199_v56 = vsel %vm2196_vm7, %v2198_v48, %v2194_v14  ;;  %vm2208_vm10 = vmor %vm2206_vm9, %vm2207_vm8  ;;  %v2227_v25 = vand.u32 2147483648, %v2170_v11  ;;  %v2225_v4 = vand.u32 2147483647, %v2170_v11 }
 0xaf6   : > { %2237 = vrot.lane.b32.xlu1 %v2199_v56, %s4025_s22  ;;  %v2203_v49 = vsub.f32 1.0, %v2202_v10  ;;  %vm2221_vm13 = vweird.f32 %v2170_v11  ;;  %3196 = vtanh.f32 %v3893_v61 }
 0xaf7   : > { %v2228_v30 = vor.u32 1.1754944e-38, %v2227_v25  ;;  %vm2226_vm3 = vcmp.eq.f32.partialorder %v2225_v4, 8.507059e+37  ;;  %3198 = vtanh.f32 %v3896_v0 }
 0xaf8   : > { %v2204_v32 = vmul.f32 %v3193_v46, %v2203_v49  ;;  %3200 = vtanh.f32 %v3899_v17 }
 0xaf9   : > { %3202 = vtanh.f32 %v3905_v62 }
 0xafa   : > { %v2205_v55 = vadd.f32 %v3193_v46, %v2204_v32 }
 0xafb   : > { %v3195_v57 = vpop.eup %3194 }
 0xafc   : > { %v2209_v23 = vsel %vm2208_vm10, %v3193_v46, %v2205_v55  ;;  %v2217_v60 = vmul.f32 %v3195_v57, %v2170_v11  ;;  %vm2222_vm12 = vweird.f32 %v3195_v57  ;;  %v3197_v54 = vpop.eup %3196  ;;  %v2322_v46 = vld [vmem:[%s3999_s12] sm:$0xff] }
 0xafd   : > { %v2214_v58 = vsel %vm2211_vm11, %v2213_v29, %v2209_v23  ;;  %vm2223_vm14 = vmor %vm2221_vm13, %vm2222_vm12  ;;  %v3199_v59 = vpop.eup %3198 }
 0xafe   : > { %2239 = vrot.lane.b32.xlu2 %v2214_v58, %s4025_s22  ;;  %v2218_v3 = vsub.f32 1.0, %v2217_v60  ;;  %v3201_v5 = vpop.eup %3200 }
 0xaff   : > { %v3203_v24 = vpop.eup %3202 }
 0xb00   : > { %v2219_v6 = vmul.f32 %v3195_v57, %v2218_v3  ;;  %v2326_v3 = vld [vmem:[%s4000_s13] sm:$0x1] }
 0xb02   : > { %v2220_v12 = vadd.f32 %v3195_v57, %v2219_v6 }
 0xb04   : > { %v2224_v8 = vsel %vm2223_vm14, %v3195_v57, %v2220_v12 }
 0xb05   : > { %v2229_v15 = vsel %vm2226_vm3, %v2228_v30, %v2224_v8 }
 0xb06   : > { %2370 = vperm.xlu2 %2968, %v2367_v7   ;;  %2241 = vrot.lane.b32.xlu0 %v2229_v15, %s4025_s22  ;;  %v2327_v7 = vmul.f32 32.0, %v2326_v3 }
 0xb58   : > { %v2240_v22 = vpop.permute.xlu2 %2239 }
 0xb59   : > { %v2249_v61 = vmul.f32 %v3201_v5, %v2240_v22 }
 0xb60   : > { %v2236_v18 = vpop.permute.xlu0 %2235  ;;  %v2371_v60 = vpop.permute.xlu2 %2370 }
 0xb61   : > { %v2247_v36 = vmul.f32 %v3197_v54, %v2236_v18  ;;  %3204 = vrcp.f32 %v2371_v60  ;;  %v2384_v6 = vand.u32 2147483648, %v2371_v60  ;;  %vm2378_vm0 = vweird.f32 %v2371_v60 }
 0xb62   : > { %v2382_v4 = vand.u32 2147483647, %v2371_v60 }
 0xb63   : > { %v2385_v30 = vor.u32 1.1754944e-38, %v2384_v6 }
 0xb64   : > { %vm2383_vm1 = vcmp.eq.f32.partialorder %v2382_v4, 8.507059e+37 }
 0xb68   : > { %v2238_v21 = vpop.permute.xlu1 %2237 }
 0xb69   : > { %v2248_v16 = vmul.f32 %v3199_v59, %v2238_v21 }
 0xb6b   : > { %v2251_v19 = vpack.c.bf16 %v2248_v16, %v2247_v36 }
 0xb6d   : > { %2799 = vmatmul.msk.bf16.vlgmr.msrb.gmra.mxu0 %vm606_vm2, %v2251_v19 }
 0xb78   : > { %v2242_v27 = vpop.permute.xlu0 %2241 }
 0xb79   : > { %v2250_v38 = vmul.f32 %v3203_v24, %v2242_v27 }
 0xb7b   : > { %v2252_v0 = vpack.c.bf16 %v2250_v38, %v2249_v61 }
 0xb7d   : > { %2800 = vmatmul.msk.bf16.gmra.mxu0 %vm606_vm2, %v2252_v0 }
 0xbea   : > { %v2290_v31 = vpop.f32.mrf.mxu0 }
 0xbeb   : > { %v2291_v33 = vadd.f32 %v3059_v44, %v2290_v31 }
 0xbed   : > { %v2300_v34 = vadd.f32 %v2291_v33, %v3833_v52 }
 0xbef   : > { %v2304_v62 = vmul.f32 %v2300_v34, %v3532_v40 }
 0xbf1   : > { %v2309_v43 = vsel %vm2308_vm4, %v2304_v62, 0.0 }
 0xbf2   : > { %v2292_v17 = vpop.f32.mrf.mxu0 }
 0xbf3   : > { %v2293_v37 = vadd.f32 %v3059_v44, %v2292_v17 }
 0xbf5   : > { %v2301_v2 = vadd.f32 %v2293_v37, %v3840_v35  ;;  %v2323_v35 = vld [vmem:[%s3999_s12 + $0x8] sm:$0xff] }
 0xbf6   : > { %2347 = vmatpush.msra.mxu2 %v2323_v35 }
 0xbf7   : > { %v2305_v39 = vmul.f32 %v2301_v2, %v3539_v51 }
 0xbf8   : > { %2348 = vmatpush.msra.mxu2 %v2322_v46 }
 0xbf9   : > { %v2310_v52 = vsel %vm2308_vm4, %v2305_v39, 0.0 }
 0xbfa   : > { %v2311_v45 = vadd.f32 %v2310_v52, %v2309_v43  ;;  %v2295_v40 = vpop.f32.mrf.mxu0 }
 0xbfb   : > { %v2296_v51 = vadd.f32 %v3059_v44, %v2295_v40 }
 0xbfd   : > { %v2302_v11 = vadd.f32 %v2296_v51, %v3848_v1 }
 0xbff   : > { %v2306_v48 = vmul.f32 %v2302_v11, %v3546_v63 }
 0xc01   : > { %v2312_v14 = vsel %vm2308_vm4, %v2306_v48, 0.0 }
 0xc02   : > { %v2313_v10 = vadd.f32 %v2312_v14, %v2311_v45  ;;  %v2297_v56 = vpop.f32.mrf.mxu0 }
 0xc03   : > { %v2298_v49 = vadd.f32 %v3059_v44, %v2297_v56 }
 0xc05   : > { %v2303_v50 = vadd.f32 %v2298_v49, %v3855_v13  ;;  %v3205_v13 = vpop.eup %3204 }
 0xc06   : > { %vm2379_vm15 = vweird.f32 %v3205_v13 }
 0xc07   : > { %v2307_v20 = vmul.f32 %v2303_v50, %v3554_v9  ;;  %v2374_v9 = vmul.f32 %v3205_v13, %v2371_v60 }
 0xc09   : > { %v2314_v32 = vsel %vm2308_vm4, %v2307_v20, 0.0  ;;  %v2375_v58 = vsub.f32 1.0, %v2374_v9 }
 0xc0a   : > { %v2315_v53 = vadd.f32 %v2314_v32, %v2313_v10 }
 0xc0b   : > { %v2376_v47 = vmul.f32 %v3205_v13, %v2375_v58 }
 0xc0c   : > { %v2316_v55 = vrot.slane %v2315_v53, 4 }
 0xc0d   : > { %v2377_v25 = vadd.f32 %v3205_v13, %v2376_v47 }
 0xc0e   : > { %v2317_v26 = vadd.f32 %v2316_v55, %v2315_v53 }
 0xc10   : > { %v2318_v1 = vrot.slane %v2317_v26, 2 }
 0xc12   : > { %v2319_v57 = vadd.f32 %v2318_v1, %v2317_v26 }
 0xc14   : > { %v2320_v29 = vrot.slane %v2319_v57, 1 }
 0xc16   : > { %v2321_v63 = vadd.f32 %v2320_v29, %v2319_v57 }
 0xc18   : > { %2329 = vrot.lane.b32.xlu1 %v2321_v63, %s4025_s22 }
 0xc8a   : > { %v2330_v23 = vpop.permute.xlu1 %2329 }
 0xc8b   : > { %2801 = vmatmul.msk.f32.vlgmr.msra.gmra.mxu2 %vm606_vm2, %v2330_v23  ;;  %vm2380_vm2 = vmor %vm2378_vm0, %vm2379_vm15 }
 0xc8c   : > { %v2381_v12 = vsel %vm2380_vm2, %v3205_v13, %v2377_v25 }
 0xc8d   : > { %v2386_v28 = vsel %vm2383_vm1, %v2385_v30, %v2381_v12 }
 0xd0e   : > { %v2350_v8 = vpop.f32.mrf.mxu2 }
 0xd0f   : > { %v2351_v15 = vadd.f32 %v2350_v8, %v2327_v7 }
 0xd11   : > { %v2387_v18 = vmul.f32 %v2386_v28, %v2351_v15 }
 0xd13   : > { %2388 = vst [vmem:[%s474_s26] sm:$0x1] %v2387_v18 }
 0xd14   : > { %3233 = shalt.err (!%p3230_p3)
}
 0xd15   : > { %2862 = dma.vmem_to_hbm [thread:$0]  (%p3388_p5), %s2401_s2, 16, %s2403_s3, %s2390_s18  }
 0xd16 PF: > { %p2868_p4 = scmp.ge.s32.totalorder %s3268_s16, 2  ;;  %s2414_s27 = sand.u32 1, %s3256_s29  }
 0xd17   : > { %s2415_s22 = scalar_lea.sflag [#allocation4], %s2414_s27 }
 0xd18   : > { %p2865_p7 = pnand %p2868_p4, %p3392_p6 }
 0xd1a   : > { %p2866_p8 = pneg %p2865_p7 }
 0xd1c   : > { %3251 = dma.done.wait (%p2866_p8), %s2415_s22, 16  }
 0xd1d   : > { %3253 = vsyncadd (%p2866_p8), %s2415_s22, 4294967280  ;;  %s4026_s0 = sld [smem:[#allocation6_spill]]  ;;  %p24_p9 = scmp.ge.s32.totalorder %s3375_s19, 4  }
 0xd1e   : > { %s4027_s15 = sld [smem:[#allocation7_spill]]  ;;  %s4028_s29 = smov %s3260_s30 }
 0xd1f   : > { %s4030_s16 = smov %s3375_s19  ;;  %26 = sbr.rel (!%p24_p9) target bundleno = 9 (0x9), region = 126 }
 0xd23   : > { %s4029_s30 = smov %s4026_s0 }
 0xd24   :  { %2420 = vsyncpa [#allocation4], 1 }
 0xd25   :  { %2422 = vsyncpa [#allocation4 + $0x1], 1 }

// kernel: tpu_custom_call.1
= control target key start
LH: loop header
LB: loop body
LE: loop exit
PB: predicated region body
PF: predicated region fallthrough
CT: control target
= control target key end

     0   :  { %s3987_s0 = inlined_call_operand.vmem [shape: bf16[2,32,16], index: 0, kind: input, shape index: {}]   ;;  %s3988_s1 = inlined_call_operand.vmem [shape: f32[2,32,1], index: 1, kind: input, shape index: {}]   ;;  %s3989_s2 = inlined_call_operand.vmem [shape: bf16[16,32], index: 2, kind: input, shape index: {}]   ;;  %s3990_s3 = inlined_call_operand.vmem [shape: f32[1,32], index: 3, kind: input, shape index: {}]   ;;  %s3991_s4 = inlined_call_operand.vmem [shape: bf16[160,32], index: 4, kind: input, shape index: {}]   ;;  %s3992_s5 = inlined_call_operand.vmem [shape: f32[1,32], index: 5, kind: input, shape index: {}]   ;;  %s3993_s6 = inlined_call_operand.vmem [shape: bf16[160,32], index: 6, kind: input, shape index: {}]   ;;  %s3994_s7 = inlined_call_operand.vmem [shape: f32[1,32], index: 7, kind: input, shape index: {}]   ;;  %s3995_s8 = inlined_call_operand.vmem [shape: bf16[4,96,64], index: 8, kind: input, shape index: {}]   ;;  %s3996_s9 = inlined_call_operand.vmem [shape: f32[4,1,64], index: 9, kind: input, shape index: {}]   ;;  %s3997_s10 = inlined_call_operand.vmem [shape: bf16[4,32,64], index: 10, kind: input, shape index: {}]   ;;  %s3998_s11 = inlined_call_operand.vmem [shape: f32[4,1,64], index: 11, kind: input, shape index: {}]   ;;  %s3999_s12 = inlined_call_operand.vmem [shape: f32[32,128], index: 12, kind: input, shape index: {}]   ;;  %s4000_s13 = inlined_call_operand.vmem [shape: f32[1,128], index: 13, kind: input, shape index: {}]   ;;  %s4001_s14 = inlined_call_operand.hbm [shape: f32[2,1,128], index: 14, kind: output, shape index: {}]  }
   0x1   :  { %4009 = sst [smem:[#allocation8_spill]] %s3987_s0 }
   0x2   :  { %4010 = sst [smem:[#allocation9_spill]] %s3989_s2 }
   0x3   :  { %4011 = sst [smem:[#allocation10_spill]] %s3990_s3 }
   0x4   :  { %4012 = sst [smem:[#allocation11_spill]] %s3991_s4 }
   0x5   :  { %4013 = sst [smem:[#allocation12_spill]] %s3992_s5 }
   0x6   :  { %19 = vsyncpa [#allocation4], 0 }
   0x7   :  { %21 = vsyncpa [#allocation4 + $0x1], 0  ;;  %s3350_s29 = smov 0   ;;  %s3352_s30 = smov 0  }
   0x8   :  { %s3354_s15 = smov 0   ;;  %s3356_s16 = smov 0  }
   0x9 LB: > { %4014 = sst [smem:[#allocation6_spill]] %s3264_s15  ;;  %s3371_s17 = sadd.s32 4294967295, %s3268_s16   ;;  %s3268_s16 = sphi %s3356_s16, %s4030_s16   ;;  %s3264_s15 = sphi %s3354_s15, %s4027_s15   ;;  %s3260_s30 = sphi %s3352_s30, %s4029_s30   ;;  %s3256_s29 = sphi %s3350_s29, %s4028_s29  }
   0xa   : > { %s2469_s18 = sadd.s32 4294967294, %s3268_s16   ;;  %s3375_s19 = sadd.s32 1, %s3268_s16  }
   0xb   : > { %s338_s20 = sadd.s32 1, %s3264_s15  ;;  %s335_s21 = ssub.s32 %s3268_s16, %s3375_s19 }
   0xc   : > { %p348_p0 = scmp.ne.s32.totalorder %s3264_s15, %s3260_s30  ;;  %p336_p1 = scmp.eq.s32.totalorder %s335_s21, 0 }
   0xd   : > { %p349_p2 = scmp.eq.s32.totalorder %s3371_s17, 1  ;;  %p354_p3 = scmp.ne.s32.totalorder %s3260_s30, %s3256_s29 }
   0xe   : > { %p355_p4 = scmp.eq.s32.totalorder %s2469_s18, 1  ;;  %p2472_p7 = scmp.ge.s32.totalorder %s3268_s16, 1 }
   0xf   : > { %s3386_s22 = scalar_select %p336_p1, %s3264_s15, %s338_s20  }
  0x10   : > { %p3388_p5 = por %p349_p2, %p348_p0  ;;  %p3392_p6 = por %p355_p4, %p354_p3 }
  0x11   : > { %4015 = sst [smem:[#allocation7_spill]] %s3386_s22  ;;  %p425_p8 = scmp.lt.s32.totalorder %s3268_s16, 3 }
  0x13   : > { %p426_p9 = pnand %p2472_p7, %p425_p8 }
  0x14   : > { %s4018_s2 = sld [smem:[#allocation9_spill]] (!%p426_p9)  ;;  %p475_p10 = scmp.lt.s32.totalorder (!%p426_p9), %s3371_s17, 1 }
  0x15   : > { %429 = sbr.rel (%p426_p9) target bundleno = 3350 (0xd16), region = 76  ;;  %s4019_s0 = sld [smem:[#allocation8_spill]] (!%p426_p9) }
  0x16   : > { %s4020_s3 = sld [smem:[#allocation10_spill]] (!%p426_p9)  ;;  %s4006_s25 = smov (!%p426_p9), 96  }
  0x17   : > { %s4021_s4 = sld [smem:[#allocation11_spill]] (!%p426_p9)  ;;  %s4002_s26 = smov (!%p426_p9), 32  }
  0x18   : > { %s4004_s18 = smov (!%p426_p9), 64   ;;  %s4022_s5 = sld [smem:[#allocation12_spill]] (!%p426_p9) }
  0x19   : > { %s4025_s22 = smov (!%p426_p9), 96  }
  0x1a   : > { %v2808_v0 = vld [vmem:[%s4018_s2] sm:$0xff]  ;;  %s3403_s27 = scalar_select %p475_p10, %s3371_s17, 1  ;;  %vm519_vm0 = vcmask 130048   ;;  %vm494_vm1 = vcmask 254976   ;;  %v3270_v4 = vmov 0.0   ;;  %vm606_vm2 = vcmask 261120  }
  0x1b   : > { %533 = vmatpush.bf16.msra.mxu0 %v2808_v0  ;;  %2861 = vmatpush.bf16.msra.mxu2 %v2808_v0  ;;  %495 = vst.msk [vmem:[#allocation2] sm:$0x3] %vm494_vm1, %v3270_v4  ;;  %vm683_vm3 = vcmask 523264   ;;  %vm688_vm4 = vcmask 785408   ;;  %s4023_s2 = smov 64   ;;  %vm2353_vm5 = vcmask 7168  }
  0x1c   : > { %s2804_s28 = sshll.u32 %s3403_s27, 4  ;;  %v3049_v3 = vld [vmem:[%s4020_s3] ss:$0 sm:$0xff]  ;;  %496 = vst.msk [vmem:[#allocation2 + $0x22] sm:$0x3] %vm494_vm1, %v3270_v4  ;;  %s4024_s3 = smov 32  }
  0x1d   : > { %s479_s21 = scalar_lea.vmem %s4019_s0, %s2804_s28  ;;  %v2818_v10 = vld [vmem:[%s4021_s4 + $0x48] sm:$0xff]  ;;  %v2817_v15 = vld [vmem:[%s4021_s4 + $0x40] sm:$0xff] }
  0x1e   : > { %v2806_v1 = vld [vmem:[%s479_s21] sm:$0xff]  ;;  %v2807_v2 = vld [vmem:[%s479_s21 + $0x8] sm:$0xff]  ;;  %s2398_s21 = scalar_lea.hbm %s4001_s14, %s3371_s17 }
  0x1f   : > { %2489 = vmatmul.msk.bf16.vlgmr.msra.gmra.mxu0 %vm519_vm0, %v2806_v1  ;;  %2490 = vmatmul.msk.bf16.vlgmr.msra.gmra.mxu2 %vm519_vm0, %v2807_v2 }
  0x20   : > { %791 = vmatpush.bf16.msrb.mxu2 %v2818_v10 }
  0x24   : > { %792 = vmatpush.bf16.msrb.mxu2 %v2817_v15  ;;  %v2816_v15 = vld [vmem:[%s4021_s4 + $0x38] sm:$0xff] }
  0x25   : > { %766 = vmatpush.bf16.msra.mxu1 %v2816_v15 }
  0x9c   : > { %v535_v5 = vpop.f32.mrf.mxu0 }
  0x9d   : > { %v536_v6 = vadd.f32 %v3049_v3, %v535_v5 }
  0x9f   : > { %v545_v7 = vmin.f32 %v536_v6, 20.0 }
  0xa1   : > { %v549_v8 = vmul.f32 1.442695, %v545_v7 }
  0xa2   : > { %v540_v9 = vpop.f32.mrf.mxu2 }
  0xa3   : > { %3060 = vpow2.f32 %v549_v8  ;;  %v541_v11 = vadd.f32 %v3049_v3, %v540_v9 }
  0xa4   : > { %v537_v12 = vpop.f32.mrf.mxu0 }
  0xa5   : > { %v547_v13 = vmin.f32 %v541_v11, 20.0  ;;  %v538_v14 = vadd.f32 %v3049_v3, %v537_v12 }
  0xa7   : > { %v553_v16 = vmul.f32 1.442695, %v547_v13  ;;  %v546_v17 = vmin.f32 %v538_v14, 20.0 }
  0xa9   : > { %v3061_v18 = vpop.eup %3060  ;;  %3062 = vpow2.f32 %v553_v16  ;;  %v551_v19 = vmul.f32 1.442695, %v546_v17  ;;  %v2815_v16 = vld [vmem:[%s4021_s4 + $0x30] sm:$0xff]  ;;  %v2814_v17 = vld [vmem:[%s4021_s4 + $0x28] sm:$0xff] }
  0xaa   : > { %v557_v20 = vadd.f32 1.0, %v3061_v18  ;;  %v542_v21 = vpop.f32.mrf.mxu2  ;;  %767 = vmatpush.bf16.msra.mxu1 %v2815_v16  ;;  %v2813_v18 = vld [vmem:[%s4021_s4 + $0x20] sm:$0xff] }
  0xab   : > { %3064 = vpow2.f32 %v551_v19  ;;  %v543_v22 = vadd.f32 %v3049_v3, %v542_v21  ;;  %v2812_v19 = vld [vmem:[%s4021_s4 + $0x18] sm:$0xff]  ;;  %v2810_v21 = vld [vmem:[%s4021_s4 + $0x8] sm:$0xff] }
  0xac   : > { %v561_v23 = vmul.f32 %v557_v20, %v557_v20  ;;  %v2811_v20 = vld [vmem:[%s4021_s4 + $0x10] sm:$0xff] }
  0xad   : > { %v548_v24 = vmin.f32 %v543_v22, 20.0 }
  0xae   : > { %v573_v25 = vadd.f32 1.0, %v561_v23  ;;  %v2491_v30 = vadd.f32 -1.0, %v561_v23  ;;  %768 = vmatpush.bf16.msra.mxu1 %v2814_v17 }
  0xaf   : > { %v3063_v26 = vpop.eup %3062  ;;  %v555_v27 = vmul.f32 1.442695, %v548_v24 }
  0xb0   : > { %3066 = vrcp.f32 %v573_v25  ;;  %v559_v28 = vadd.f32 1.0, %v3063_v26  ;;  %v569_v35 = vmul.f32 %v2491_v30, %v536_v6 }
  0xb1   : > { %v3065_v29 = vpop.eup %3064  ;;  %3068 = vpow2.f32 %v555_v27 }
  0xb2   : > { %v563_v31 = vmul.f32 %v559_v28, %v559_v28  ;;  %v558_v32 = vadd.f32 1.0, %v3065_v29  ;;  %769 = vmatpush.bf16.msra.mxu1 %v2813_v18  ;;  %v2827_v18 = vld [vmem:[%s3993_s6 + $0x40] sm:$0xff] }
  0xb4   : > { %v575_v33 = vadd.f32 1.0, %v563_v31  ;;  %v562_v34 = vmul.f32 %v558_v32, %v558_v32  ;;  %v2493_v40 = vadd.f32 -1.0, %v563_v31 }
  0xb6   : > { %v3067_v36 = vpop.eup %3066  ;;  %3070 = vrcp.f32 %v575_v33  ;;  %v574_v37 = vadd.f32 1.0, %v562_v34  ;;  %v2492_v42 = vadd.f32 -1.0, %v562_v34  ;;  %v571_v44 = vmul.f32 %v2493_v40, %v541_v11  ;;  %770 = vmatpush.bf16.msra.mxu1 %v2812_v19 }
  0xb7   : > { %v3069_v38 = vpop.eup %3068  ;;  %v581_v39 = vmul.f32 %v3067_v36, %v569_v35 }
  0xb8   : > { %3072 = vrcp.f32 %v574_v37  ;;  %v560_v41 = vadd.f32 1.0, %v3069_v38  ;;  %v570_v48 = vmul.f32 %v2492_v42, %v538_v14 }
  0xb9   : > { %607 = vst.msk [vmem:[#allocation2 + $0x2] sm:$0xff] %vm606_vm2, %v581_v39 }
  0xba   : > { %v564_v43 = vmul.f32 %v560_v41, %v560_v41  ;;  %771 = vmatpush.bf16.msra.mxu1 %v2811_v20 }
  0xbc   : > { %v3071_v45 = vpop.eup %3070  ;;  %v576_v46 = vadd.f32 1.0, %v564_v43  ;;  %v2494_v51 = vadd.f32 -1.0, %v564_v43 }
  0xbd   : > { %v583_v47 = vmul.f32 %v3071_v45, %v571_v44 }
  0xbe   : > { %v3073_v49 = vpop.eup %3072  ;;  %3074 = vrcp.f32 %v576_v46  ;;  %v572_v52 = vmul.f32 %v2494_v51, %v543_v22  ;;  %772 = vmatpush.bf16.msra.mxu1 %v2810_v21  ;;  %v2809_v22 = vld [vmem:[%s4021_s4] sm:$0xff]  ;;  %s2805_s4 = sshll.u32 %s3403_s27, 5  ;;  %s473_s27 = sand.u32 1, %s3260_s30  }
  0xbf   : > { %609 = vst.msk [vmem:[#allocation2 + $0x12] sm:$0xff] %vm606_vm2, %v583_v47  ;;  %v582_v50 = vmul.f32 %v3073_v49, %v570_v48  ;;  %s484_s20 = scalar_lea.vmem %s3988_s1, %s2805_s4 }
  0xc0   : > { %v615_v60 = vld [vmem:[#allocation2 + $0x1] sm:$0xff] }
  0xc1   : > { %608 = vst.msk [vmem:[#allocation2 + $0xa] sm:$0xff] %vm606_vm2, %v582_v50  ;;  %v619_v6 = vld [vmem:[#allocation2 + $0x2] sm:$0xff] }
  0xc2   : > { %773 = vmatpush.bf16.msra.mxu1 %v2809_v22  ;;  %v611_v28 = vld [vmem:[#allocation2] sm:$0xff] }
  0xc4   : > { %v3075_v53 = vpop.eup %3074 }
  0xc5   : > { %v584_v54 = vmul.f32 %v3075_v53, %v572_v52 }
  0xc6   : > { %v621_v0 = vld [vmem:[#allocation2 + $0x12] sm:$0xff] }
  0xc7   : > { %610 = vst.msk [vmem:[#allocation2 + $0x1a] sm:$0xff] %vm606_vm2, %v584_v54 }
  0xc8   : > { %v627_v55 = vld [vmem:[#allocation2 + $0x4] sm:$0xff]  ;;  %v628_v56 = vld [vmem:[#allocation2 + $0xc] sm:$0xff] }
  0xc9   : > { %v623_v57 = vld [vmem:[#allocation2 + $0x3] sm:$0xff]  ;;  %v694_v58 = vpack.c.bf16 %v628_v56, %v627_v55  ;;  %v624_v59 = vld [vmem:[#allocation2 + $0xb] sm:$0xff] }
  0xca   : > { %v616_v61 = vld [vmem:[#allocation2 + $0x9] sm:$0xff]  ;;  %v2916_v62 = vpack.i.bf16 %v624_v59, %v623_v57  ;;  %v617_v5 = vld [vmem:[#allocation2 + $0x11] sm:$0xff] }
  0xcb   : > { %v2906_v63 = vpack.i.bf16 %v616_v61, %v615_v60  ;;  %2535 = vmatmul.msk.bf16.vlgmr.msrb.gmra.mxu2 %vm606_vm2, %v694_v58  ;;  %v620_v4 = vld [vmem:[#allocation2 + $0xa] sm:$0xff]  ;;  %v3050_v60 = vld [vmem:[%s4022_s5] ss:$0 sm:$0xff]  ;;  %s3226_s5 = scalar_lea.hbm %s4001_s14, 2 }
  0xcc   : > { %2917 = vrot.lane.b32.xlu1 %v2916_v62, %s4006_s25  ;;  %v2911_v8 = vpack.i.bf16 %v620_v4, %v619_v6  ;;  %v612_v29 = vld [vmem:[#allocation2 + $0x8] sm:$0xff]  ;;  %v613_v45 = vld [vmem:[#allocation2 + $0x10] sm:$0xff] }
  0xcd   : > { %2907 = vrot.lane.b32.xlu0 %v2906_v63, %s4002_s26 }
  0xce   : > { %v622_v1 = vld [vmem:[#allocation2 + $0x1a] sm:$0xff] }
  0xcf   : > { %v2926_v2 = vpack.i.bf16 %v622_v1, %v621_v0  ;;  %v618_v3 = vld [vmem:[#allocation2 + $0x19] sm:$0xff] }
  0xd0   : > { %v2921_v7 = vpack.i.bf16 %v618_v3, %v617_v5  ;;  %v625_v9 = vld [vmem:[#allocation2 + $0x13] sm:$0xff]  ;;  %v626_v10 = vld [vmem:[#allocation2 + $0x1b] sm:$0xff] }
  0xd1   : > { %2927 = vrot.lane.b32.xlu2 %v2926_v2, %s4004_s18  ;;  %v629_v11 = vld [vmem:[#allocation2 + $0x14] sm:$0xff]  ;;  %v630_v12 = vld [vmem:[#allocation2 + $0x1c] sm:$0xff]  ;;  %v2931_v13 = vpack.i.bf16 %v626_v10, %v625_v9 }
  0xd2   : > { %v696_v14 = vpack.c.bf16 %v630_v12, %v629_v11  ;;  %v614_v46 = vld [vmem:[#allocation2 + $0x18] sm:$0xff] }
  0xd4   : > { %2922 = vrot.lane.b32.xlu1 %v2921_v7, %s4002_s26  ;;  %s474_s26 = scalar_lea.vmem [#allocation3], %s473_s27 }
  0xd5   : > { %2912 = vrot.lane.b32.xlu0 %v2911_v8, %s4004_s18  ;;  %s2390_s18 = scalar_lea.sflag [#allocation4], %s473_s27 }
  0xd9   : > { %2932 = vrot.lane.b32.xlu2 %v2931_v13, %s4006_s25  ;;  %v2828_v13 = vld [vmem:[%s3993_s6 + $0x48] sm:$0xff] }
  0xda   : > { %1047 = vmatpush.bf16.msrb.mxu0 %v2828_v13 }
  0xdb   : > { %2536 = vmatmul.msk.bf16.gmra.mxu2 %vm606_vm2, %v696_v14 }
  0xde   : > { %1048 = vmatpush.bf16.msrb.mxu0 %v2827_v18  ;;  %v2822_v18 = vld [vmem:[%s3993_s6 + $0x18] sm:$0xff] }
 0x12b   : > { %v2928_v36 = vpop.permute.xlu2 %2927 }
 0x12c   : > { %v2930_v49 = vunpack.i.h.bf16 %v2928_v36  ;;  %v2929_v50 = vunpack.i.l.bf16 %v2928_v36 }
 0x133   : > { %v2933_v51 = vpop.permute.xlu2 %2932 }
 0x134   : > { %v2935_v54 = vunpack.i.h.bf16 %v2933_v51  ;;  %v2934_v55 = vunpack.i.l.bf16 %v2933_v51 }
 0x13e   : > { %v2918_v24 = vpop.permute.xlu1 %2917 }
 0x13f   : > { %v2908_v23 = vpop.permute.xlu0 %2907  ;;  %v2920_v32 = vunpack.i.h.bf16 %v2918_v24  ;;  %v2919_v33 = vunpack.i.l.bf16 %v2918_v24 }
 0x140   : > { %v2910_v25 = vunpack.i.h.bf16 %v2908_v23  ;;  %v2909_v26 = vunpack.i.l.bf16 %v2908_v23 }
 0x142   : > { %v679_v34 = vsel %vm606_vm2, %v611_v28, %v2909_v26  ;;  %v680_v35 = vsel %vm606_vm2, %v612_v29, %v2910_v25 }
 0x146   : > { %v2923_v41 = vpop.permute.xlu1 %2922 }
 0x147   : > { %v2913_v27 = vpop.permute.xlu0 %2912  ;;  %v2925_v43 = vunpack.i.h.bf16 %v2923_v41  ;;  %v2924_v44 = vunpack.i.l.bf16 %v2923_v41 }
 0x148   : > { %v2915_v30 = vunpack.i.h.bf16 %v2913_v27  ;;  %v2914_v31 = vunpack.i.l.bf16 %v2913_v27 }
 0x149   : > { %v682_v47 = vsel %vm606_vm2, %v614_v46, %v2925_v43  ;;  %v681_v48 = vsel %vm606_vm2, %v613_v45, %v2924_v44  ;;  %v2826_v45 = vld [vmem:[%s3993_s6 + $0x38] sm:$0xff] }
 0x14a   : > { %v684_v37 = vsel %vm683_vm3, %v679_v34, %v2914_v31  ;;  %v685_v38 = vsel %vm683_vm3, %v680_v35, %v2915_v30  ;;  %v686_v52 = vsel %vm683_vm3, %v681_v48, %v2929_v50  ;;  %v687_v53 = vsel %vm683_vm3, %v682_v47, %v2930_v49  ;;  %1022 = vmatpush.bf16.msra.mxu3 %v2826_v45  ;;  %v2825_v48 = vld [vmem:[%s3993_s6 + $0x30] sm:$0xff] }
 0x14b   : > { %v689_v39 = vsel %vm688_vm4, %v684_v37, %v2919_v33  ;;  %v690_v40 = vsel %vm688_vm4, %v685_v38, %v2920_v32  ;;  %v691_v56 = vsel %vm688_vm4, %v686_v52, %v2934_v55  ;;  %v692_v57 = vsel %vm688_vm4, %v687_v53, %v2935_v54  ;;  %v492_v45 = vld [vmem:[%s484_s20 + $0x10] sm:$0xff] }
 0x14c   : > { %v693_v42 = vpack.c.bf16 %v690_v40, %v689_v39  ;;  %v695_v58 = vpack.c.bf16 %v692_v57, %v691_v56 }
 0x14e   : > { %774 = vmatmul.bf16.vlgmr.msra.gmra.mxu1 %v693_v42  ;;  %v794_v59 = vpop.f32.mrf.mxu2  ;;  %1023 = vmatpush.bf16.msra.mxu3 %v2825_v48  ;;  %v2357_v48 = vsel %vm2353_vm5, %v492_v45, 0.0 }
 0x156   : > { %v796_v1 = vpop.f32.mrf.mxu2 }
 0x15e   : > { %779 = vmatmul.bf16.gmra.mxu1 %v695_v58  ;;  %v799_v9 = vpop.f32.mrf.mxu2 }
 0x166   : > { %v801_v25 = vpop.f32.mrf.mxu2 }
 0x1cb   : > { %v775_v61 = vpop.f32.mrf.mxu1 }
 0x1cc   : > { %v776_v62 = vadd.f32 %v3050_v60, %v775_v61 }
 0x1ce   : > { %v795_v63 = vadd.f32 %v794_v59, %v776_v62 }
 0x1d0   : > { %v804_v0 = vmin.f32 %v795_v63, 20.0 }
 0x1d2   : > { %v808_v2 = vmul.f32 1.442695, %v804_v0 }
 0x1d3   : > { %v777_v3 = vpop.f32.mrf.mxu1 }
 0x1d4   : > { %3076 = vpow2.f32 %v808_v2  ;;  %v778_v4 = vadd.f32 %v3050_v60, %v777_v3 }
 0x1d6   : > { %v797_v5 = vadd.f32 %v796_v1, %v778_v4 }
 0x1d8   : > { %v805_v6 = vmin.f32 %v797_v5, 20.0 }
 0x1da   : > { %v3077_v7 = vpop.eup %3076  ;;  %v810_v8 = vmul.f32 1.442695, %v805_v6 }
 0x1db   : > { %v816_v10 = vadd.f32 1.0, %v3077_v7  ;;  %v780_v11 = vpop.f32.mrf.mxu1 }
 0x1dc   : > { %3078 = vpow2.f32 %v810_v8  ;;  %v781_v12 = vadd.f32 %v3050_v60, %v780_v11 }
 0x1dd   : > { %v820_v14 = vmul.f32 %v816_v10, %v816_v10 }
 0x1de   : > { %v800_v15 = vadd.f32 %v799_v9, %v781_v12 }
 0x1df   : > { %v832_v16 = vadd.f32 1.0, %v820_v14  ;;  %v2537_v20 = vadd.f32 -1.0, %v820_v14 }
 0x1e0   : > { %v806_v17 = vmin.f32 %v800_v15, 20.0 }
 0x1e1   : > { %3080 = vrcp.f32 %v832_v16  ;;  %v828_v27 = vmul.f32 %v2537_v20, %v795_v63  ;;  %v2824_v16 = vld [vmem:[%s3993_s6 + $0x28] sm:$0xff] }
 0x1e2   : > { %v3079_v19 = vpop.eup %3078  ;;  %v812_v21 = vmul.f32 1.442695, %v806_v17  ;;  %1024 = vmatpush.bf16.msra.mxu3 %v2824_v16  ;;  %v2823_v17 = vld [vmem:[%s3993_s6 + $0x20] sm:$0xff]  ;;  %v2820_v20 = vld [vmem:[%s3993_s6 + $0x8] sm:$0xff] }
 0x1e3   : > { %v817_v22 = vadd.f32 1.0, %v3079_v19  ;;  %v782_v23 = vpop.f32.mrf.mxu1  ;;  %v2821_v19 = vld [vmem:[%s3993_s6 + $0x10] sm:$0xff] }
 0x1e4   : > { %3082 = vpow2.f32 %v812_v21  ;;  %v783_v24 = vadd.f32 %v3050_v60, %v782_v23  ;;  %v2819_v21 = vld [vmem:[%s3993_s6] sm:$0xff] }
 0x1e5   : > { %v821_v26 = vmul.f32 %v817_v22, %v817_v22 }
 0x1e6   : > { %v802_v28 = vadd.f32 %v801_v25, %v783_v24  ;;  %1025 = vmatpush.bf16.msra.mxu3 %v2823_v17 }
 0x1e7   : > { %v3081_v29 = vpop.eup %3080  ;;  %v833_v30 = vadd.f32 1.0, %v821_v26  ;;  %v2538_v34 = vadd.f32 -1.0, %v821_v26 }
 0x1e8   : > { %v840_v31 = vmul.f32 %v3081_v29, %v828_v27  ;;  %v807_v32 = vmin.f32 %v802_v28, 20.0 }
 0x1e9   : > { %3084 = vrcp.f32 %v833_v30  ;;  %v829_v38 = vmul.f32 %v2538_v34, %v797_v5 }
 0x1ea   : > { %v3083_v33 = vpop.eup %3082  ;;  %865 = vst.msk [vmem:[#allocation2 + $0x2] sm:$0xff] %vm606_vm2, %v840_v31  ;;  %v814_v35 = vmul.f32 1.442695, %v807_v32  ;;  %1026 = vmatpush.bf16.msra.mxu3 %v2822_v18 }
 0x1eb   : > { %v818_v36 = vadd.f32 1.0, %v3083_v33 }
 0x1ec   : > { %3086 = vpow2.f32 %v814_v35 }
 0x1ed   : > { %v822_v37 = vmul.f32 %v818_v36, %v818_v36 }
 0x1ee   : > { %1027 = vmatpush.bf16.msra.mxu3 %v2821_v19 }
 0x1ef   : > { %v3085_v39 = vpop.eup %3084  ;;  %v834_v40 = vadd.f32 1.0, %v822_v37  ;;  %v2539_v43 = vadd.f32 -1.0, %v822_v37 }
 0x1f0   : > { %v841_v41 = vmul.f32 %v3085_v39, %v829_v38 }
 0x1f1   : > { %3088 = vrcp.f32 %v834_v40  ;;  %v830_v47 = vmul.f32 %v2539_v43, %v800_v15  ;;  %v877_v52 = vld [vmem:[#allocation2 + $0x2] sm:$0xff] }
 0x1f2   : > { %v3087_v42 = vpop.eup %3086  ;;  %866 = vst.msk [vmem:[#allocation2 + $0xa] sm:$0xff] %vm606_vm2, %v841_v41  ;;  %v873_v54 = vld [vmem:[#allocation2 + $0x1] sm:$0xff]  ;;  %1028 = vmatpush.bf16.msra.mxu3 %v2820_v20 }
 0x1f3   : > { %v819_v44 = vadd.f32 1.0, %v3087_v42  ;;  %v869_v29 = vld [vmem:[#allocation2] sm:$0xff]  ;;  %v491_v41 = vld [vmem:[%s484_s20 + $0x8] sm:$0xff]  ;;  %v3274_v42 = vmov 0  }
 0x1f4   : > { %v490_v40 = vld [vmem:[%s484_s20] sm:$0xff]  ;;  %2966 = vset.pattern.permute.xlu0 %v3274_v42  ;;  %2967 = vset.pattern.permute.xlu1 %v3274_v42 }
 0x1f5   : > { %v823_v46 = vmul.f32 %v819_v44, %v819_v44  ;;  %v2354_v43 = vsel %vm2353_vm5, %v490_v40, 0.0  ;;  %v2355_v44 = vsel %vm2353_vm5, %v491_v41, 0.0  ;;  %2968 = vset.pattern.permute.xlu2 %v3274_v42 }
 0x1f6   : > { %1029 = vmatpush.bf16.msra.mxu3 %v2819_v21 }
 0x1f7   : > { %v3089_v49 = vpop.eup %3088  ;;  %v835_v50 = vadd.f32 1.0, %v823_v46  ;;  %v2540_v56 = vadd.f32 -1.0, %v823_v46  ;;  %v2356_v46 = vadd.f32 %v2355_v44, %v2354_v43 }
 0x1f8   : > { %v842_v51 = vmul.f32 %v3089_v49, %v830_v47  ;;  %v493_v47 = vld [vmem:[%s484_s20 + $0x18] sm:$0xff] }
 0x1f9   : > { %3090 = vrcp.f32 %v835_v50  ;;  %v878_v53 = vld [vmem:[#allocation2 + $0xa] sm:$0xff]  ;;  %v831_v59 = vmul.f32 %v2540_v56, %v802_v28  ;;  %v2359_v49 = vsel %vm2353_vm5, %v493_v47, 0.0  ;;  %v2358_v50 = vadd.f32 %v2357_v48, %v2356_v46 }
 0x1fa   : > { %v874_v55 = vld [vmem:[#allocation2 + $0x9] sm:$0xff]  ;;  %867 = vst.msk [vmem:[#allocation2 + $0x12] sm:$0xff] %vm606_vm2, %v842_v51  ;;  %v2941_v57 = vpack.i.bf16 %v878_v53, %v877_v52 }
 0x1fb   : > { %v2936_v58 = vpack.i.bf16 %v874_v55, %v873_v54  ;;  %v885_v62 = vld [vmem:[#allocation2 + $0x4] sm:$0xff]  ;;  %v3521_v56 = vadd.f32 %v2359_v49, %v2358_v50 }
 0x1fc   : > { %2942 = vrot.lane.b32.xlu1 %v2941_v57, %s4023_s2  ;;  %v881_v0 = vld [vmem:[#allocation2 + $0x3] sm:$0xff] }
 0x1fd   : > { %2937 = vrot.lane.b32.xlu0 %v2936_v58, %s4024_s3  ;;  %v870_v30 = vld [vmem:[#allocation2 + $0x8] sm:$0xff] }
 0x1ff   : > { %v3091_v60 = vpop.eup %3090 }
 0x200   : > { %v843_v61 = vmul.f32 %v3091_v60, %v831_v59 }
 0x201   : > { %v886_v63 = vld [vmem:[#allocation2 + $0xc] sm:$0xff] }
 0x202   : > { %v882_v1 = vld [vmem:[#allocation2 + $0xb] sm:$0xff]  ;;  %868 = vst.msk [vmem:[#allocation2 + $0x1a] sm:$0xff] %vm606_vm2, %v843_v61  ;;  %v950_v2 = vpack.c.bf16 %v886_v63, %v885_v62 }
 0x203   : > { %v2946_v3 = vpack.i.bf16 %v882_v1, %v881_v0  ;;  %v879_v4 = vld [vmem:[#allocation2 + $0x12] sm:$0xff] }
 0x204   : > { %2581 = vmatmul.msk.bf16.vlgmr.msrb.gmra.mxu0 %vm606_vm2, %v950_v2  ;;  %v875_v10 = vld [vmem:[#allocation2 + $0x11] sm:$0xff] }
 0x205   : > { %2947 = vrot.lane.b32.xlu2 %v2946_v3, %s4025_s22  ;;  %v871_v59 = vld [vmem:[#allocation2 + $0x10] sm:$0xff] }
 0x209   : > { %v883_v5 = vld [vmem:[#allocation2 + $0x13] sm:$0xff]  ;;  %v884_v6 = vld [vmem:[#allocation2 + $0x1b] sm:$0xff] }
 0x20a   : > { %v880_v7 = vld [vmem:[#allocation2 + $0x1a] sm:$0xff]  ;;  %v2961_v8 = vpack.i.bf16 %v884_v6, %v883_v5 }
 0x20b   : > { %v2956_v9 = vpack.i.bf16 %v880_v7, %v879_v4  ;;  %v876_v11 = vld [vmem:[#allocation2 + $0x19] sm:$0xff] }
 0x20c   : > { %v2951_v12 = vpack.i.bf16 %v876_v11, %v875_v10  ;;  %v887_v13 = vld [vmem:[#allocation2 + $0x14] sm:$0xff]  ;;  %v888_v14 = vld [vmem:[#allocation2 + $0x1c] sm:$0xff] }
 0x20d   : > { %2962 = vrot.lane.b32.xlu2 %v2961_v8, %s4025_s22  ;;  %2957 = vrot.lane.b32.xlu1 %v2956_v9, %s4023_s2  ;;  %v952_v15 = vpack.c.bf16 %v888_v14, %v887_v13  ;;  %v872_v60 = vld [vmem:[#allocation2 + $0x18] sm:$0xff]  ;;  %v3051_v7 = vld [vmem:[%s3994_s7] ss:$0 sm:$0xff] }
 0x20e   : > { %2952 = vrot.lane.b32.xlu0 %v2951_v12, %s4024_s3 }
 0x214   : > { %2582 = vmatmul.msk.bf16.gmra.mxu0 %vm606_vm2, %v952_v15 }
 0x215   : > { %1107 = vperm.xlu1 %2967, %v491_v41   ;;  %1112 = vperm.xlu2 %2968, %v492_v45  }
 0x216   : > { %1102 = vperm.xlu0 %2966, %v490_v40  }
 0x21d   : > { %1117 = vperm.xlu1 %2967, %v493_v47  }
 0x25f   : > { %v2948_v22 = vpop.permute.xlu2 %2947 }
 0x260   : > { %v2950_v31 = vunpack.i.h.bf16 %v2948_v22  ;;  %v2949_v32 = vunpack.i.l.bf16 %v2948_v22 }
 0x267   : > { %v2963_v52 = vpop.permute.xlu2 %2962 }
 0x268   : > { %v2965_v61 = vunpack.i.h.bf16 %v2963_v52  ;;  %v2964_v62 = vunpack.i.l.bf16 %v2963_v52 }
 0x26e   : > { %v2943_v23 = vpop.permute.xlu1 %2942 }
 0x26f   : > { %v2938_v24 = vpop.permute.xlu0 %2937  ;;  %v2945_v25 = vunpack.i.h.bf16 %v2943_v23  ;;  %v2944_v26 = vunpack.i.l.bf16 %v2943_v23 }
 0x270   : > { %v2940_v27 = vunpack.i.h.bf16 %v2938_v24  ;;  %v2939_v28 = vunpack.i.l.bf16 %v2938_v24 }
 0x272   : > { %v937_v33 = vsel %vm606_vm2, %v869_v29, %v2939_v28  ;;  %v938_v34 = vsel %vm606_vm2, %v870_v30, %v2940_v27 }
 0x273   : > { %v941_v35 = vsel %vm683_vm3, %v937_v33, %v2944_v26  ;;  %v942_v36 = vsel %vm683_vm3, %v938_v34, %v2945_v25 }
 0x274   : > { %v945_v37 = vsel %vm688_vm4, %v941_v35, %v2949_v32  ;;  %v946_v38 = vsel %vm688_vm4, %v942_v36, %v2950_v31 }
 0x275   : > { %v949_v39 = vpack.c.bf16 %v946_v38, %v945_v37 }
 0x277   : > { %1030 = vmatmul.bf16.vlgmr.msra.gmra.mxu3 %v949_v39 }
 0x27f   : > { %v2958_v51 = vpop.permute.xlu1 %2957 }
 0x280   : > { %v2960_v53 = vunpack.i.h.bf16 %v2958_v51  ;;  %v2959_v54 = vunpack.i.l.bf16 %v2958_v51  ;;  %v2953_v55 = vpop.permute.xlu0 %2952 }
 0x281   : > { %v2955_v57 = vunpack.i.h.bf16 %v2953_v55  ;;  %v2954_v58 = vunpack.i.l.bf16 %v2953_v55  ;;  %v1050_v6 = vpop.f32.mrf.mxu0 }
 0x283   : > { %v940_v63 = vsel %vm606_vm2, %v872_v60, %v2955_v57  ;;  %v939_v0 = vsel %vm606_vm2, %v871_v59, %v2954_v58 }
 0x284   : > { %v943_v1 = vsel %vm683_vm3, %v939_v0, %v2959_v54  ;;  %v944_v2 = vsel %vm683_vm3, %v940_v63, %v2960_v53  ;;  %v3546_v63 = vpop.permute.xlu2 %1112 }
 0x285   : > { %v947_v3 = vsel %vm688_vm4, %v943_v1, %v2964_v62  ;;  %v948_v4 = vsel %vm688_vm4, %v944_v2, %v2965_v61 }
 0x286   : > { %v951_v5 = vpack.c.bf16 %v948_v4, %v947_v3 }
 0x287   : > { %v3539_v51 = vpop.permute.xlu1 %1107 }
 0x288   : > { %1035 = vmatmul.bf16.gmra.mxu3 %v951_v5  ;;  %v3532_v40 = vpop.permute.xlu0 %1102 }
 0x289   : > { %v1052_v12 = vpop.f32.mrf.mxu0 }
 0x291   : > { %v1055_v21 = vpop.f32.mrf.mxu0 }
 0x299   : > { %v1057_v35 = vpop.f32.mrf.mxu0 }
 0x2fa   : > { %v1031_v8 = vpop.f32.mrf.mxu3 }
 0x2fb   : > { %v1032_v9 = vadd.f32 %v3051_v7, %v1031_v8 }
 0x2fd   : > { %v1051_v10 = vadd.f32 %v1050_v6, %v1032_v9  ;;  %v3554_v9 = vpop.permute.xlu1 %1117 }
 0x2ff   : > { %v1060_v11 = vmin.f32 %v1051_v10, 20.0 }
 0x301   : > { %v1064_v13 = vmul.f32 1.442695, %v1060_v11 }
 0x302   : > { %v1033_v14 = vpop.f32.mrf.mxu3 }
 0x303   : > { %3092 = vpow2.f32 %v1064_v13  ;;  %v1034_v15 = vadd.f32 %v3051_v7, %v1033_v14 }
 0x305   : > { %v1053_v16 = vadd.f32 %v1052_v12, %v1034_v15 }
 0x307   : > { %v1061_v17 = vmin.f32 %v1053_v16, 20.0 }
 0x309   : > { %v3093_v18 = vpop.eup %3092  ;;  %v1066_v19 = vmul.f32 1.442695, %v1061_v17 }
 0x30a   : > { %v1072_v20 = vadd.f32 1.0, %v3093_v18 }
 0x30b   : > { %3094 = vpow2.f32 %v1066_v19  ;;  %v1036_v22 = vpop.f32.mrf.mxu3 }
 0x30c   : > { %v1076_v23 = vmul.f32 %v1072_v20, %v1072_v20  ;;  %v1037_v24 = vadd.f32 %v3051_v7, %v1036_v22  ;;  %v2834_v20 = vld [vmem:[%s3995_s8 + $0x28] sm:$0xff]  ;;  %v2832_v22 = vld [vmem:[%s3995_s8 + $0x18] sm:$0xff] }
 0x30d   : > { %1242 = vmatpush.bf16.msra.mxu2 %v2834_v20 }
 0x30e   : > { %v1088_v25 = vadd.f32 1.0, %v1076_v23  ;;  %v1056_v26 = vadd.f32 %v1055_v21, %v1037_v24  ;;  %v2583_v29 = vadd.f32 -1.0, %v1076_v23  ;;  %v2833_v21 = vld [vmem:[%s3995_s8 + $0x20] sm:$0xff]  ;;  %v2831_v23 = vld [vmem:[%s3995_s8 + $0x10] sm:$0xff]  ;;  %v2830_v24 = vld [vmem:[%s3995_s8 + $0x8] sm:$0xff] }
 0x310   : > { %3096 = vrcp.f32 %v1088_v25  ;;  %v1062_v27 = vmin.f32 %v1056_v26, 20.0  ;;  %v1084_v36 = vmul.f32 %v2583_v29, %v1051_v10  ;;  %v2829_v25 = vld [vmem:[%s3995_s8] sm:$0xff] }
 0x311   : > { %v3095_v28 = vpop.eup %3094  ;;  %1243 = vmatpush.bf16.msra.mxu2 %v2833_v21 }
 0x312   : > { %v1073_v30 = vadd.f32 1.0, %v3095_v28  ;;  %v1068_v31 = vmul.f32 1.442695, %v1062_v27 }
 0x313   : > { %v1038_v32 = vpop.f32.mrf.mxu3 }
 0x314   : > { %v1077_v33 = vmul.f32 %v1073_v30, %v1073_v30  ;;  %3098 = vpow2.f32 %v1068_v31  ;;  %v1039_v34 = vadd.f32 %v3051_v7, %v1038_v32 }
 0x315   : > { %1244 = vmatpush.bf16.msra.mxu2 %v2832_v22 }
 0x316   : > { %v3097_v37 = vpop.eup %3096  ;;  %v1089_v38 = vadd.f32 1.0, %v1077_v33  ;;  %v1058_v39 = vadd.f32 %v1057_v35, %v1039_v34  ;;  %v2584_v43 = vadd.f32 -1.0, %v1077_v33 }
 0x317   : > { %v1096_v41 = vmul.f32 %v3097_v37, %v1084_v36 }
 0x318   : > { %3100 = vrcp.f32 %v1089_v38  ;;  %v1063_v42 = vmin.f32 %v1058_v39, 20.0  ;;  %v1085_v48 = vmul.f32 %v2584_v43, %v1053_v16 }
 0x319   : > { %v3535_v44 = vmul.f32 %v3532_v40, %v1096_v41  ;;  %1245 = vmatpush.bf16.msra.mxu2 %v2831_v23 }
 0x31a   : > { %v3099_v45 = vpop.eup %3098  ;;  %v1070_v46 = vmul.f32 1.442695, %v1063_v42 }
 0x31b   : > { %v1074_v47 = vadd.f32 1.0, %v3099_v45  ;;  %1137 = vst.msk [vmem:[#allocation2 + $0x2] sm:$0xff] %vm606_vm2, %v3535_v44 }
 0x31c   : > { %3102 = vpow2.f32 %v1070_v46 }
 0x31d   : > { %v1078_v49 = vmul.f32 %v1074_v47, %v1074_v47  ;;  %1246 = vmatpush.bf16.msra.mxu2 %v2830_v24 }
 0x31e   : > { %v3101_v50 = vpop.eup %3100 }
 0x31f   : > { %v1097_v52 = vmul.f32 %v3101_v50, %v1085_v48  ;;  %v1090_v53 = vadd.f32 1.0, %v1078_v49  ;;  %v2585_v57 = vadd.f32 -1.0, %v1078_v49 }
 0x321   : > { %3104 = vrcp.f32 %v1090_v53  ;;  %v3542_v54 = vmul.f32 %v3539_v51, %v1097_v52  ;;  %v1086_v60 = vmul.f32 %v2585_v57, %v1056_v26  ;;  %1247 = vmatpush.bf16.msra.mxu2 %v2829_v25  ;;  %v3052_v57 = vld [vmem:[%s3996_s9] ss:$0 sm:$0xff] }
 0x322   : > { %v3103_v55 = vpop.eup %3102  ;;  %v1145_v3 = vld [vmem:[#allocation2 + $0x2] sm:$0xff] }
 0x323   : > { %v1075_v58 = vadd.f32 1.0, %v3103_v55  ;;  %1138 = vst.msk [vmem:[#allocation2 + $0xa] sm:$0xff] %vm606_vm2, %v3542_v54  ;;  %v1141_v30 = vld [vmem:[#allocation2 + $0x1] sm:$0xff] }
 0x325   : > { %v1079_v59 = vmul.f32 %v1075_v58, %v1075_v58 }
 0x327   : > { %v3105_v61 = vpop.eup %3104  ;;  %v1091_v62 = vadd.f32 1.0, %v1079_v59  ;;  %v2586_v1 = vadd.f32 -1.0, %v1079_v59 }
 0x328   : > { %v1098_v0 = vmul.f32 %v3105_v61, %v1086_v60 }
 0x329   : > { %3106 = vrcp.f32 %v1091_v62  ;;  %v1087_v6 = vmul.f32 %v2586_v1, %v1058_v39 }
 0x32a   : > { %v3549_v2 = vmul.f32 %v3546_v63, %v1098_v0  ;;  %v1146_v4 = vld [vmem:[#allocation2 + $0xa] sm:$0xff] }
 0x32b   : > { %v2969_v5 = vpack.i.bf16 %v1146_v4, %v1145_v3  ;;  %v1149_v11 = vld [vmem:[#allocation2 + $0x3] sm:$0xff] }
 0x32c   : > { %1139 = vst.msk [vmem:[#allocation2 + $0x12] sm:$0xff] %vm606_vm2, %v3549_v2  ;;  %v1142_v31 = vld [vmem:[#allocation2 + $0x9] sm:$0xff] }
 0x32d   : > { %2970 = vrot.lane.b32.xlu2 %v2969_v5, %s4024_s3 }
 0x32f   : > { %v3107_v7 = vpop.eup %3106 }
 0x330   : > { %v1099_v8 = vmul.f32 %v3107_v7, %v1087_v6 }
 0x332   : > { %v3557_v10 = vmul.f32 %v3554_v9, %v1099_v8 }
 0x333   : > { %v1150_v12 = vld [vmem:[#allocation2 + $0xb] sm:$0xff] }
 0x334   : > { %1140 = vst.msk [vmem:[#allocation2 + $0x1a] sm:$0xff] %vm606_vm2, %v3557_v10  ;;  %v2974_v13 = vpack.i.bf16 %v1150_v12, %v1149_v11  ;;  %v1147_v14 = vld [vmem:[#allocation2 + $0x12] sm:$0xff] }
 0x335   : > { %v1143_v45 = vld [vmem:[#allocation2 + $0x11] sm:$0xff] }
 0x336   : > { %2975 = vrot.lane.b32.xlu0 %v2974_v13, %s4023_s2 }
 0x33b   : > { %v1148_v15 = vld [vmem:[#allocation2 + $0x1a] sm:$0xff] }
 0x33c   : > { %v1151_v16 = vld [vmem:[#allocation2 + $0x13] sm:$0xff]  ;;  %v1152_v17 = vld [vmem:[#allocation2 + $0x1b] sm:$0xff]  ;;  %v2979_v18 = vpack.i.bf16 %v1148_v15, %v1147_v14  ;;  %v2836_v14 = vld [vmem:[%s3997_s10 + $0x8] sm:$0xff] }
 0x33d   : > { %v2984_v19 = vpack.i.bf16 %v1152_v17, %v1151_v16  ;;  %v1144_v46 = vld [vmem:[#allocation2 + $0x19] sm:$0xff]  ;;  %1393 = vmatpush.bf16.msrb.mxu1 %v2836_v14 }
 0x33e   : > { %2980 = vrot.lane.b32.xlu1 %v2979_v18, %s4024_s3 }
 0x33f   : > { %2985 = vrot.lane.b32.xlu2 %v2984_v19, %s4023_s2 }
 0x387   : > { %v2971_v26 = vpop.permute.xlu2 %2970 }
 0x388   : > { %v2973_v27 = vunpack.i.h.bf16 %v2971_v26  ;;  %v2972_v28 = vunpack.i.l.bf16 %v2971_v26 }
 0x38a   : > { %v1185_v34 = vsel %vm606_vm2, %v1141_v30, %v2972_v28  ;;  %v1186_v35 = vsel %vm606_vm2, %v1142_v31, %v2973_v27 }
 0x399   : > { %v2986_v43 = vpop.permute.xlu2 %2985 }
 0x39a   : > { %v2988_v49 = vunpack.i.h.bf16 %v2986_v43  ;;  %v2987_v50 = vunpack.i.l.bf16 %v2986_v43 }
 0x3a8   : > { %v2976_v29 = vpop.permute.xlu0 %2975 }
 0x3a9   : > { %v2978_v32 = vunpack.i.h.bf16 %v2976_v29  ;;  %v2977_v33 = vunpack.i.l.bf16 %v2976_v29 }
 0x3ab   : > { %v1189_v36 = vsel %vm683_vm3, %v1185_v34, %v2977_v33  ;;  %v1190_v37 = vsel %vm683_vm3, %v1186_v35, %v2978_v32 }
 0x3ac   : > { %v1193_v38 = vpack.c.bf16 %v1190_v37, %v1189_v36 }
 0x3ae   : > { %2611 = vmatmul.msk.bf16.vlgmr.msra.gmra.mxu2 %vm688_vm4, %v1193_v38 }
 0x3b0   : > { %v2981_v39 = vpop.permute.xlu1 %2980 }
 0x3b1   : > { %v2983_v41 = vunpack.i.h.bf16 %v2981_v39  ;;  %v2982_v42 = vunpack.i.l.bf16 %v2981_v39 }
 0x3b3   : > { %v1187_v47 = vsel %vm606_vm2, %v1143_v45, %v2982_v42  ;;  %v1188_v48 = vsel %vm606_vm2, %v1144_v46, %v2983_v41 }
 0x3b4   : > { %v1191_v52 = vsel %vm683_vm3, %v1187_v47, %v2987_v50  ;;  %v1192_v53 = vsel %vm683_vm3, %v1188_v48, %v2988_v49 }
 0x3b5   : > { %v1194_v55 = vpack.c.bf16 %v1192_v53, %v1191_v52 }
 0x3be   : > { %2612 = vmatmul.msk.bf16.gmra.mxu2 %vm688_vm4, %v1194_v55 }
 0x431   : > { %v1249_v58 = vpop.f32.mrf.mxu2 }
 0x432   : > { %v3595_v59 = vadd.f32 %v3052_v57, %v1249_v58 }
 0x434   : > { %v2613_v60 = vmul.f32 -1.442695, %v3595_v59 }
 0x436   : > { %3108 = vpow2.f32 %v2613_v60 }
 0x439   : > { %v1251_v61 = vpop.f32.mrf.mxu2 }
 0x43a   : > { %v3598_v62 = vadd.f32 %v3052_v57, %v1251_v61 }
 0x43c   : > { %v3109_v0 = vpop.eup %3108  ;;  %v2614_v1 = vmul.f32 -1.442695, %v3598_v62 }
 0x43d   : > { %v1275_v3 = vadd.f32 1.0, %v3109_v0 }
 0x43e   : > { %3110 = vpow2.f32 %v2614_v1 }
 0x43f   : > { %3112 = vrcp.f32 %v1275_v3  ;;  %v1290_v16 = vand.u32 2147483648, %v1275_v3  ;;  %v1288_v19 = vand.u32 2147483647, %v1275_v3  ;;  %vm1284_vm7 = vweird.f32 %v1275_v3 }
 0x441   : > { %v1254_v4 = vpop.f32.mrf.mxu2  ;;  %v1291_v25 = vor.u32 1.1754944e-38, %v1290_v16  ;;  %vm1289_vm9 = vcmp.eq.f32.partialorder %v1288_v19, 8.507059e+37 }
 0x442   : > { %v3601_v5 = vadd.f32 %v3052_v57, %v1254_v4  ;;  %v2835_v4 = vld [vmem:[%s3997_s10] sm:$0xff] }
 0x443   : > { %1394 = vmatpush.bf16.msrb.mxu1 %v2835_v4 }
 0x444   : > { %v3111_v6 = vpop.eup %3110  ;;  %v2615_v7 = vmul.f32 -1.442695, %v3601_v5 }
 0x445   : > { %v3113_v8 = vpop.eup %3112  ;;  %v1276_v11 = vadd.f32 1.0, %v3111_v6 }
 0x446   : > { %3114 = vpow2.f32 %v2615_v7  ;;  %v1280_v12 = vmul.f32 %v3113_v8, %v1275_v3  ;;  %vm1285_vm6 = vweird.f32 %v3113_v8 }
 0x447   : > { %3116 = vrcp.f32 %v1276_v11  ;;  %vm1286_vm8 = vmor %vm1284_vm7, %vm1285_vm6  ;;  %v1305_v30 = vand.u32 2147483648, %v1276_v11  ;;  %v1303_v32 = vand.u32 2147483647, %v1276_v11  ;;  %vm1299_vm11 = vweird.f32 %v1276_v11 }
 0x448   : > { %v1281_v13 = vsub.f32 1.0, %v1280_v12 }
 0x449   : > { %v1256_v15 = vpop.f32.mrf.mxu2  ;;  %v1306_v37 = vor.u32 1.1754944e-38, %v1305_v30  ;;  %vm1304_vm13 = vcmp.eq.f32.partialorder %v1303_v32, 8.507059e+37 }
 0x44a   : > { %v3607_v17 = vadd.f32 %v3052_v57, %v1256_v15  ;;  %v1282_v18 = vmul.f32 %v3113_v8, %v1281_v13 }
 0x44c   : > { %v3115_v20 = vpop.eup %3114  ;;  %v2616_v21 = vmul.f32 -1.442695, %v3607_v17  ;;  %v1283_v22 = vadd.f32 %v3113_v8, %v1282_v18 }
 0x44d   : > { %v3117_v23 = vpop.eup %3116  ;;  %v1277_v24 = vadd.f32 1.0, %v3115_v20 }
 0x44e   : > { %3118 = vpow2.f32 %v2616_v21  ;;  %v1287_v26 = vsel %vm1286_vm8, %v3113_v8, %v1283_v22  ;;  %v1295_v27 = vmul.f32 %v3117_v23, %v1276_v11  ;;  %vm1300_vm10 = vweird.f32 %v3117_v23  ;;  %v3053_v21 = vld [vmem:[%s3998_s11] ss:$0 sm:$0xff] }
 0x44f   : > { %3120 = vrcp.f32 %v1277_v24  ;;  %v1292_v28 = vsel %vm1289_vm9, %v1291_v25, %v1287_v26  ;;  %vm1301_vm12 = vmor %vm1299_vm11, %vm1300_vm10  ;;  %v1320_v43 = vand.u32 2147483648, %v1277_v24  ;;  %v1318_v46 = vand.u32 2147483647, %v1277_v24  ;;  %v2842_v26 = vld [vmem:[%s3995_s8 + $0x58] sm:$0xff] }
 0x450   : > { %1343 = vrot.lane.b32.xlu0 %v1292_v28, %s4025_s22  ;;  %v1296_v29 = vsub.f32 1.0, %v1295_v27  ;;  %vm1314_vm15 = vweird.f32 %v1277_v24  ;;  %1538 = vmatpush.bf16.msrb.mxu3 %v2842_v26 }
 0x451   : > { %v1321_v49 = vor.u32 1.1754944e-38, %v1320_v43  ;;  %vm1319_vm1 = vcmp.eq.f32.partialorder %v1318_v46, 8.507059e+37 }
 0x452   : > { %v1297_v31 = vmul.f32 %v3117_v23, %v1296_v29 }
 0x454   : > { %v3119_v33 = vpop.eup %3118  ;;  %v1298_v34 = vadd.f32 %v3117_v23, %v1297_v31 }
 0x455   : > { %v3121_v35 = vpop.eup %3120  ;;  %v1278_v36 = vadd.f32 1.0, %v3119_v33 }
 0x456   : > { %v1302_v38 = vsel %vm1301_vm12, %v3117_v23, %v1298_v34  ;;  %v1310_v39 = vmul.f32 %v3121_v35, %v1277_v24  ;;  %vm1315_vm14 = vweird.f32 %v3121_v35 }
 0x457   : > { %3122 = vrcp.f32 %v1278_v36  ;;  %v1307_v41 = vsel %vm1304_vm13, %v1306_v37, %v1302_v38  ;;  %vm1316_vm0 = vmor %vm1314_vm15, %vm1315_vm14  ;;  %v1335_v57 = vand.u32 2147483648, %v1278_v36  ;;  %v1333_v60 = vand.u32 2147483647, %v1278_v36 }
 0x458   : > { %1345 = vrot.lane.b32.xlu1 %v1307_v41, %s4025_s22  ;;  %v1311_v42 = vsub.f32 1.0, %v1310_v39  ;;  %vm1329_vm6 = vweird.f32 %v1278_v36  ;;  %3124 = vtanh.f32 %v3595_v59 }
 0x459   : > { %v1336_v0 = vor.u32 1.1754944e-38, %v1335_v57  ;;  %vm1334_vm8 = vcmp.eq.f32.partialorder %v1333_v60, 8.507059e+37  ;;  %3126 = vtanh.f32 %v3598_v62 }
 0x45a   : > { %v1312_v45 = vmul.f32 %v3121_v35, %v1311_v42  ;;  %3128 = vtanh.f32 %v3601_v5 }
 0x45b   : > { %3130 = vtanh.f32 %v3607_v17 }
 0x45c   : > { %v1313_v47 = vadd.f32 %v3121_v35, %v1312_v45 }
 0x45d   : > { %v3123_v48 = vpop.eup %3122 }
 0x45e   : > { %v1317_v50 = vsel %vm1316_vm0, %v3121_v35, %v1313_v47  ;;  %v1325_v52 = vmul.f32 %v3123_v48, %v1278_v36  ;;  %vm1330_vm5 = vweird.f32 %v3123_v48  ;;  %v3125_v7 = vpop.eup %3124 }
 0x45f   : > { %v1322_v53 = vsel %vm1319_vm1, %v1321_v49, %v1317_v50  ;;  %vm1331_vm7 = vmor %vm1329_vm6, %vm1330_vm5  ;;  %v3127_v8 = vpop.eup %3126  ;;  %v2839_v49 = vld [vmem:[%s3995_s8 + $0x40] sm:$0xff]  ;;  %v2838_v50 = vld [vmem:[%s3995_s8 + $0x38] sm:$0xff] }
 0x460   : > { %1347 = vrot.lane.b32.xlu2 %v1322_v53, %s4025_s22  ;;  %v1326_v55 = vsub.f32 1.0, %v1325_v52  ;;  %v3129_v16 = vpop.eup %3128  ;;  %v2837_v52 = vld [vmem:[%s3995_s8 + $0x30] sm:$0xff] }
 0x461   : > { %v3131_v18 = vpop.eup %3130 }
 0x462   : > { %v1327_v58 = vmul.f32 %v3123_v48, %v1326_v55 }
 0x464   : > { %v1328_v61 = vadd.f32 %v3123_v48, %v1327_v58 }
 0x466   : > { %v1332_v1 = vsel %vm1331_vm7, %v3123_v48, %v1328_v61 }
 0x467   : > { %v1337_v3 = vsel %vm1334_vm8, %v1336_v0, %v1332_v1 }
 0x468   : > { %1349 = vrot.lane.b32.xlu0 %v1337_v3, %s4025_s22 }
 0x4ba   : > { %v1348_v15 = vpop.permute.xlu2 %1347 }
 0x4bb   : > { %v1357_v59 = vmul.f32 %v3129_v16, %v1348_v15 }
 0x4c2   : > { %v1344_v6 = vpop.permute.xlu0 %1343 }
 0x4c3   : > { %v1355_v12 = vmul.f32 %v3125_v7, %v1344_v6 }
 0x4ca   : > { %v1346_v11 = vpop.permute.xlu1 %1345 }
 0x4cb   : > { %v1356_v13 = vmul.f32 %v3127_v8, %v1346_v11 }
 0x4cd   : > { %v1359_v14 = vpack.c.bf16 %v1356_v13, %v1355_v12 }
 0x4cf   : > { %2625 = vmatmul.msk.bf16.vlgmr.msrb.gmra.mxu1 %vm606_vm2, %v1359_v14 }
 0x4da   : > { %v1350_v19 = vpop.permute.xlu0 %1349 }
 0x4db   : > { %v1358_v20 = vmul.f32 %v3131_v18, %v1350_v19 }
 0x4dd   : > { %v1360_v62 = vpack.c.bf16 %v1358_v20, %v1357_v59 }
 0x4df   : > { %2626 = vmatmul.msk.bf16.gmra.mxu1 %vm606_vm2, %v1360_v62 }
 0x54c   : > { %v1396_v22 = vpop.f32.mrf.mxu1 }
 0x54d   : > { %v3626_v23 = vadd.f32 %v3053_v21, %v1396_v22 }
 0x54f   : > { %v1406_v5 = vadd.f32 %v3626_v23, %v3535_v44  ;;  %v2841_v44 = vld [vmem:[%s3995_s8 + $0x50] sm:$0xff] }
 0x550   : > { %1539 = vmatpush.bf16.msrb.mxu3 %v2841_v44 }
 0x551   : > { %v3631_v17 = vmul.f32 %v1406_v5, %v3532_v40  ;;  %v3054_v5 = vld [vmem:[%s3996_s9 + $0x1] ss:$0 sm:$0xff] }
 0x553   : > { %1433 = vst.msk [vmem:[#allocation2 + $0x2] sm:$0xff] %vm606_vm2, %v3631_v17 }
 0x554   : > { %v1398_v24 = vpop.f32.mrf.mxu1 }
 0x555   : > { %v3635_v25 = vadd.f32 %v3053_v21, %v1398_v24 }
 0x557   : > { %v1407_v27 = vadd.f32 %v3635_v25, %v3542_v54 }
 0x559   : > { %v3646_v28 = vmul.f32 %v1407_v27, %v3539_v51 }
 0x55a   : > { %v1441_v32 = vld [vmem:[#allocation2 + $0x2] sm:$0xff] }
 0x55b   : > { %1434 = vst.msk [vmem:[#allocation2 + $0xa] sm:$0xff] %vm606_vm2, %v3646_v28  ;;  %v1437_v0 = vld [vmem:[#allocation2 + $0x1] sm:$0xff] }
 0x55c   : > { %v1401_v29 = vpop.f32.mrf.mxu1 }
 0x55d   : > { %v3650_v30 = vadd.f32 %v3053_v21, %v1401_v29 }
 0x55f   : > { %v1408_v31 = vadd.f32 %v3650_v30, %v3549_v2 }
 0x561   : > { %v3655_v54 = vmul.f32 %v1408_v31, %v3546_v63 }
 0x562   : > { %v1442_v33 = vld [vmem:[#allocation2 + $0xa] sm:$0xff] }
 0x563   : > { %1435 = vst.msk [vmem:[#allocation2 + $0x12] sm:$0xff] %vm606_vm2, %v3655_v54  ;;  %v2989_v34 = vpack.i.bf16 %v1442_v33, %v1441_v32  ;;  %v1445_v2 = vld [vmem:[#allocation2 + $0x3] sm:$0xff] }
 0x564   : > { %v1403_v35 = vpop.f32.mrf.mxu1  ;;  %v1438_v1 = vld [vmem:[#allocation2 + $0x9] sm:$0xff] }
 0x565   : > { %v3659_v36 = vadd.f32 %v3053_v21, %v1403_v35  ;;  %2990 = vrot.lane.b32.xlu1 %v2989_v34, %s4024_s3 }
 0x567   : > { %v1409_v37 = vadd.f32 %v3659_v36, %v3557_v10  ;;  %v2840_v10 = vld [vmem:[%s3995_s8 + $0x48] sm:$0xff] }
 0x568   : > { %1540 = vmatpush.bf16.msrb.mxu3 %v2840_v10 }
 0x569   : > { %v3665_v38 = vmul.f32 %v1409_v37, %v3554_v9 }
 0x56a   : > { %v1446_v39 = vld [vmem:[#allocation2 + $0xb] sm:$0xff] }
 0x56b   : > { %1436 = vst.msk [vmem:[#allocation2 + $0x1a] sm:$0xff] %vm606_vm2, %v3665_v38  ;;  %v2994_v41 = vpack.i.bf16 %v1446_v39, %v1445_v2  ;;  %v1443_v42 = vld [vmem:[#allocation2 + $0x12] sm:$0xff] }
 0x56c   : > { %1541 = vmatpush.bf16.msrb.mxu3 %v2839_v49  ;;  %v1439_v18 = vld [vmem:[#allocation2 + $0x11] sm:$0xff] }
 0x56d   : > { %2995 = vrot.lane.b32.xlu2 %v2994_v41, %s4023_s2 }
 0x570   : > { %1542 = vmatpush.bf16.msrb.mxu3 %v2838_v50 }
 0x572   : > { %v1444_v43 = vld [vmem:[#allocation2 + $0x1a] sm:$0xff] }
 0x573   : > { %v1447_v45 = vld [vmem:[#allocation2 + $0x13] sm:$0xff]  ;;  %v1448_v46 = vld [vmem:[#allocation2 + $0x1b] sm:$0xff]  ;;  %v2999_v47 = vpack.i.bf16 %v1444_v43, %v1443_v42 }
 0x574   : > { %v3004_v48 = vpack.i.bf16 %v1448_v46, %v1447_v45  ;;  %1543 = vmatpush.bf16.msrb.mxu3 %v2837_v52  ;;  %v1440_v19 = vld [vmem:[#allocation2 + $0x19] sm:$0xff] }
 0x575   : > { %3000 = vrot.lane.b32.xlu0 %v2999_v47, %s4024_s3 }
 0x576   : > { %3005 = vrot.lane.b32.xlu1 %v3004_v48, %s4023_s2 }
 0x5c7   : > { %v2996_v53 = vpop.permute.xlu2 %2995 }
 0x5c8   : > { %v2998_v60 = vunpack.i.h.bf16 %v2996_v53  ;;  %v2997_v61 = vunpack.i.l.bf16 %v2996_v53 }
 0x5d7   : > { %v2991_v55 = vpop.permute.xlu1 %2990 }
 0x5d8   : > { %v2993_v57 = vunpack.i.h.bf16 %v2991_v55  ;;  %v2992_v58 = vunpack.i.l.bf16 %v2991_v55 }
 0x5da   : > { %v1481_v3 = vsel %vm606_vm2, %v1437_v0, %v2992_v58  ;;  %v1482_v4 = vsel %vm606_vm2, %v1438_v1, %v2993_v57 }
 0x5db   : > { %v1485_v6 = vsel %vm683_vm3, %v1481_v3, %v2997_v61  ;;  %v1486_v7 = vsel %vm683_vm3, %v1482_v4, %v2998_v60 }
 0x5dc   : > { %v1489_v8 = vpack.c.bf16 %v1486_v7, %v1485_v6 }
 0x5de   : > { %2664 = vmatmul.msk.bf16.vlgmr.msrb.gmra.mxu3 %vm688_vm4, %v1489_v8 }
 0x5e7   : > { %v3001_v11 = vpop.permute.xlu0 %3000 }
 0x5e8   : > { %v3006_v12 = vpop.permute.xlu1 %3005  ;;  %v3003_v13 = vunpack.i.h.bf16 %v3001_v11  ;;  %v3002_v14 = vunpack.i.l.bf16 %v3001_v11 }
 0x5e9   : > { %v3008_v15 = vunpack.i.h.bf16 %v3006_v12  ;;  %v3007_v16 = vunpack.i.l.bf16 %v3006_v12 }
 0x5ea   : > { %v1483_v59 = vsel %vm606_vm2, %v1439_v18, %v3002_v14  ;;  %v1484_v20 = vsel %vm606_vm2, %v1440_v19, %v3003_v13 }
 0x5eb   : > { %v1487_v62 = vsel %vm683_vm3, %v1483_v59, %v3007_v16  ;;  %v1488_v21 = vsel %vm683_vm3, %v1484_v20, %v3008_v15 }
 0x5ec   : > { %v1490_v22 = vpack.c.bf16 %v1488_v21, %v1487_v62 }
 0x5ee   : > { %2665 = vmatmul.msk.bf16.gmra.mxu3 %vm688_vm4, %v1490_v22 }
 0x661   : > { %v1545_v24 = vpop.f32.mrf.mxu3 }
 0x662   : > { %v3697_v26 = vadd.f32 %v3054_v5, %v1545_v24 }
 0x664   : > { %v2666_v27 = vmul.f32 -1.442695, %v3697_v26 }
 0x666   : > { %3132 = vpow2.f32 %v2666_v27 }
 0x669   : > { %v1547_v44 = vpop.f32.mrf.mxu3 }
 0x66a   : > { %v3700_v29 = vadd.f32 %v3054_v5, %v1547_v44 }
 0x66c   : > { %v3133_v31 = vpop.eup %3132  ;;  %v2667_v32 = vmul.f32 -1.442695, %v3700_v29 }
 0x66d   : > { %v1571_v33 = vadd.f32 1.0, %v3133_v31 }
 0x66e   : > { %3134 = vpow2.f32 %v2667_v32 }
 0x66f   : > { %3136 = vrcp.f32 %v1571_v33  ;;  %v1586_v46 = vand.u32 2147483648, %v1571_v33  ;;  %v1584_v10 = vand.u32 2147483647, %v1571_v33  ;;  %vm1580_vm10 = vweird.f32 %v1571_v33 }
 0x671   : > { %v1550_v34 = vpop.f32.mrf.mxu3  ;;  %v1587_v57 = vor.u32 1.1754944e-38, %v1586_v46  ;;  %vm1585_vm12 = vcmp.eq.f32.partialorder %v1584_v10, 8.507059e+37 }
 0x672   : > { %v3703_v35 = vadd.f32 %v3054_v5, %v1550_v34 }
 0x674   : > { %v3135_v37 = vpop.eup %3134  ;;  %v2668_v2 = vmul.f32 -1.442695, %v3703_v35 }
 0x675   : > { %v3137_v39 = vpop.eup %3136  ;;  %v1572_v41 = vadd.f32 1.0, %v3135_v37 }
 0x676   : > { %3138 = vpow2.f32 %v2668_v2  ;;  %v1576_v42 = vmul.f32 %v3137_v39, %v1571_v33  ;;  %vm1581_vm9 = vweird.f32 %v3137_v39 }
 0x677   : > { %3140 = vrcp.f32 %v1572_v41  ;;  %vm1582_vm11 = vmor %vm1580_vm10, %vm1581_vm9  ;;  %v1601_v1 = vand.u32 2147483648, %v1572_v41  ;;  %v1599_v4 = vand.u32 2147483647, %v1572_v41  ;;  %vm1595_vm14 = vweird.f32 %v1572_v41 }
 0x678   : > { %v1577_v43 = vsub.f32 1.0, %v1576_v42 }
 0x679   : > { %v1552_v45 = vpop.f32.mrf.mxu3  ;;  %v1602_v12 = vor.u32 1.1754944e-38, %v1601_v1  ;;  %vm1600_vm0 = vcmp.eq.f32.partialorder %v1599_v4, 8.507059e+37 }
 0x67a   : > { %v3706_v47 = vadd.f32 %v3054_v5, %v1552_v45  ;;  %v1578_v48 = vmul.f32 %v3137_v39, %v1577_v43 }
 0x67c   : > { %v3139_v49 = vpop.eup %3138  ;;  %v2669_v50 = vmul.f32 -1.442695, %v3706_v47  ;;  %v1579_v52 = vadd.f32 %v3137_v39, %v1578_v48 }
 0x67d   : > { %v3141_v53 = vpop.eup %3140  ;;  %v1573_v55 = vadd.f32 1.0, %v3139_v49 }
 0x67e   : > { %3142 = vpow2.f32 %v2669_v50  ;;  %v1583_v58 = vsel %vm1582_vm11, %v3137_v39, %v1579_v52  ;;  %v1591_v60 = vmul.f32 %v3141_v53, %v1572_v41  ;;  %vm1596_vm13 = vweird.f32 %v3141_v53  ;;  %v2844_v39 = vld [vmem:[%s3997_s10 + $0x18] sm:$0xff]  ;;  %v2843_v41 = vld [vmem:[%s3997_s10 + $0x10] sm:$0xff] }
 0x67f   : > { %3144 = vrcp.f32 %v1573_v55  ;;  %v1588_v61 = vsel %vm1585_vm12, %v1587_v57, %v1583_v58  ;;  %vm1597_vm15 = vmor %vm1595_vm14, %vm1596_vm13  ;;  %v1616_v18 = vand.u32 2147483648, %v1573_v55  ;;  %v1614_v59 = vand.u32 2147483647, %v1573_v55  ;;  %1691 = vmatpush.bf16.msra.mxu0 %v2844_v39 }
 0x680   : > { %1639 = vrot.lane.b32.xlu2 %v1588_v61, %s4025_s22  ;;  %v1592_v0 = vsub.f32 1.0, %v1591_v60  ;;  %vm1610_vm5 = vweird.f32 %v1573_v55 }
 0x681   : > { %v1617_v21 = vor.u32 1.1754944e-38, %v1616_v18  ;;  %vm1615_vm7 = vcmp.eq.f32.partialorder %v1614_v59, 8.507059e+37 }
 0x682   : > { %v1593_v3 = vmul.f32 %v3141_v53, %v1592_v0 }
 0x683   : > { %1692 = vmatpush.bf16.msra.mxu0 %v2843_v41 }
 0x684   : > { %v3143_v6 = vpop.eup %3142  ;;  %v1594_v7 = vadd.f32 %v3141_v53, %v1593_v3  ;;  %v2850_v3 = vld [vmem:[%s3995_s8 + $0x88] sm:$0xff] }
 0x685   : > { %v3145_v8 = vpop.eup %3144  ;;  %v1574_v11 = vadd.f32 1.0, %v3143_v6  ;;  %1836 = vmatpush.bf16.msrb.mxu2 %v2850_v3 }
 0x686   : > { %v1598_v13 = vsel %vm1597_vm15, %v3141_v53, %v1594_v7  ;;  %v1606_v14 = vmul.f32 %v3145_v8, %v1573_v55  ;;  %vm1611_vm1 = vweird.f32 %v3145_v8 }
 0x687   : > { %3146 = vrcp.f32 %v1574_v11  ;;  %v1603_v15 = vsel %vm1600_vm0, %v1602_v12, %v1598_v13  ;;  %vm1612_vm6 = vmor %vm1610_vm5, %vm1611_vm1  ;;  %v1631_v44 = vand.u32 2147483648, %v1574_v11  ;;  %v1629_v32 = vand.u32 2147483647, %v1574_v11 }
 0x688   : > { %1641 = vrot.lane.b32.xlu0 %v1603_v15, %s4025_s22  ;;  %v1607_v16 = vsub.f32 1.0, %v1606_v14  ;;  %vm1625_vm9 = vweird.f32 %v1574_v11  ;;  %3148 = vtanh.f32 %v3697_v26 }
 0x689   : > { %v1632_v34 = vor.u32 1.1754944e-38, %v1631_v44  ;;  %vm1630_vm11 = vcmp.eq.f32.partialorder %v1629_v32, 8.507059e+37  ;;  %3150 = vtanh.f32 %v3700_v29  ;;  %v2847_v44 = vld [vmem:[%s3995_s8 + $0x70] sm:$0xff]  ;;  %v2845_v32 = vld [vmem:[%s3995_s8 + $0x60] sm:$0xff] }
 0x68a   : > { %v1608_v19 = vmul.f32 %v3145_v8, %v1607_v16  ;;  %3152 = vtanh.f32 %v3703_v35  ;;  %v3055_v35 = vld [vmem:[%s3998_s11 + $0x1] ss:$0 sm:$0xff] }
 0x68b   : > { %3154 = vtanh.f32 %v3706_v47 }
 0x68c   : > { %v1609_v20 = vadd.f32 %v3145_v8, %v1608_v19 }
 0x68d   : > { %v3147_v62 = vpop.eup %3146 }
 0x68e   : > { %v1613_v22 = vsel %vm1612_vm6, %v3145_v8, %v1609_v20  ;;  %v1621_v5 = vmul.f32 %v3147_v62, %v1574_v11  ;;  %vm1626_vm8 = vweird.f32 %v3147_v62  ;;  %v3149_v43 = vpop.eup %3148 }
 0x68f   : > { %v1618_v24 = vsel %vm1615_vm7, %v1617_v21, %v1613_v22  ;;  %vm1627_vm10 = vmor %vm1625_vm9, %vm1626_vm8  ;;  %v3151_v45 = vpop.eup %3150 }
 0x690   : > { %1643 = vrot.lane.b32.xlu1 %v1618_v24, %s4025_s22  ;;  %v1622_v27 = vsub.f32 1.0, %v1621_v5  ;;  %v3153_v52 = vpop.eup %3152 }
 0x691   : > { %v3155_v53 = vpop.eup %3154 }
 0x692   : > { %v1623_v31 = vmul.f32 %v3147_v62, %v1622_v27 }
 0x694   : > { %v1624_v33 = vadd.f32 %v3147_v62, %v1623_v31  ;;  %v2846_v31 = vld [vmem:[%s3995_s8 + $0x68] sm:$0xff] }
 0x696   : > { %v1628_v37 = vsel %vm1627_vm10, %v3147_v62, %v1624_v33 }
 0x697   : > { %v1633_v2 = vsel %vm1630_vm11, %v1632_v34, %v1628_v37 }
 0x698   : > { %1645 = vrot.lane.b32.xlu2 %v1633_v2, %s4025_s22 }
 0x6da   : > { %v1640_v42 = vpop.permute.xlu2 %1639 }
 0x6db   : > { %v1651_v48 = vmul.f32 %v3149_v43, %v1640_v42 }
 0x6f2   : > { %v1646_v50 = vpop.permute.xlu2 %1645 }
 0x6f3   : > { %v1654_v26 = vmul.f32 %v3155_v53, %v1646_v50 }
 0x6fa   : > { %v1642_v46 = vpop.permute.xlu0 %1641 }
 0x6fb   : > { %v1652_v10 = vmul.f32 %v3151_v45, %v1642_v46 }
 0x6fd   : > { %v1655_v49 = vpack.c.bf16 %v1652_v10, %v1651_v48 }
 0x6ff   : > { %2683 = vmatmul.msk.bf16.vlgmr.msra.gmra.mxu0 %vm606_vm2, %v1655_v49 }
 0x702   : > { %v1644_v55 = vpop.permute.xlu1 %1643 }
 0x703   : > { %v1653_v57 = vmul.f32 %v3153_v52, %v1644_v55 }
 0x705   : > { %v1656_v29 = vpack.c.bf16 %v1654_v26, %v1653_v57 }
 0x70f   : > { %2684 = vmatmul.msk.bf16.gmra.mxu0 %vm606_vm2, %v1656_v29 }
 0x77c   : > { %v1694_v58 = vpop.f32.mrf.mxu0 }
 0x77d   : > { %v3728_v60 = vadd.f32 %v3055_v35, %v1694_v58 }
 0x77f   : > { %v1704_v47 = vadd.f32 %v3728_v60, %v3631_v17  ;;  %v2849_v17 = vld [vmem:[%s3995_s8 + $0x80] sm:$0xff] }
 0x780   : > { %1837 = vmatpush.bf16.msrb.mxu2 %v2849_v17  ;;  %v3056_v17 = vld [vmem:[%s3996_s9 + $0x2] ss:$0 sm:$0xff] }
 0x781   : > { %v3733_v61 = vmul.f32 %v1704_v47, %v3532_v40 }
 0x783   : > { %1731 = vst.msk [vmem:[#allocation2 + $0x2] sm:$0xff] %vm606_vm2, %v3733_v61 }
 0x784   : > { %v1696_v0 = vpop.f32.mrf.mxu0 }
 0x785   : > { %v3737_v1 = vadd.f32 %v3055_v35, %v1696_v0 }
 0x787   : > { %v1705_v4 = vadd.f32 %v3737_v1, %v3646_v28 }
 0x789   : > { %v3748_v6 = vmul.f32 %v1705_v4, %v3539_v51 }
 0x78a   : > { %v1739_v12 = vld [vmem:[#allocation2 + $0x2] sm:$0xff] }
 0x78b   : > { %1732 = vst.msk [vmem:[#allocation2 + $0xa] sm:$0xff] %vm606_vm2, %v3748_v6  ;;  %v1735_v39 = vld [vmem:[#allocation2 + $0x1] sm:$0xff] }
 0x78c   : > { %v1699_v7 = vpop.f32.mrf.mxu0 }
 0x78d   : > { %v3752_v8 = vadd.f32 %v3055_v35, %v1699_v7 }
 0x78f   : > { %v1706_v11 = vadd.f32 %v3752_v8, %v3655_v54 }
 0x791   : > { %v3757_v28 = vmul.f32 %v1706_v11, %v3546_v63 }
 0x792   : > { %v1740_v13 = vld [vmem:[#allocation2 + $0xa] sm:$0xff] }
 0x793   : > { %1733 = vst.msk [vmem:[#allocation2 + $0x12] sm:$0xff] %vm606_vm2, %v3757_v28  ;;  %v3009_v14 = vpack.i.bf16 %v1740_v13, %v1739_v12  ;;  %v1743_v54 = vld [vmem:[#allocation2 + $0x3] sm:$0xff] }
 0x794   : > { %v1701_v15 = vpop.f32.mrf.mxu0  ;;  %v1736_v41 = vld [vmem:[#allocation2 + $0x9] sm:$0xff] }
 0x795   : > { %v3761_v16 = vadd.f32 %v3055_v35, %v1701_v15  ;;  %3010 = vrot.lane.b32.xlu0 %v3009_v14, %s4024_s3 }
 0x797   : > { %v1707_v18 = vadd.f32 %v3761_v16, %v3665_v38  ;;  %v2848_v38 = vld [vmem:[%s3995_s8 + $0x78] sm:$0xff] }
 0x798   : > { %1838 = vmatpush.bf16.msrb.mxu2 %v2848_v38  ;;  %v2852_v38 = vld [vmem:[%s3997_s10 + $0x28] sm:$0xff] }
 0x799   : > { %v3767_v19 = vmul.f32 %v1707_v18, %v3554_v9  ;;  %1989 = vmatpush.bf16.msra.mxu1 %v2852_v38 }
 0x79a   : > { %v1744_v59 = vld [vmem:[#allocation2 + $0xb] sm:$0xff] }
 0x79b   : > { %1734 = vst.msk [vmem:[#allocation2 + $0x1a] sm:$0xff] %vm606_vm2, %v3767_v19  ;;  %v3014_v20 = vpack.i.bf16 %v1744_v59, %v1743_v54  ;;  %v1741_v62 = vld [vmem:[#allocation2 + $0x12] sm:$0xff] }
 0x79c   : > { %1839 = vmatpush.bf16.msrb.mxu2 %v2847_v44  ;;  %v1737_v29 = vld [vmem:[#allocation2 + $0x11] sm:$0xff] }
 0x79d   : > { %3015 = vrot.lane.b32.xlu1 %v3014_v20, %s4023_s2 }
 0x7a0   : > { %1840 = vmatpush.bf16.msrb.mxu2 %v2846_v31 }
 0x7a2   : > { %v1742_v21 = vld [vmem:[#allocation2 + $0x1a] sm:$0xff] }
 0x7a3   : > { %v1745_v22 = vld [vmem:[#allocation2 + $0x13] sm:$0xff]  ;;  %v1746_v5 = vld [vmem:[#allocation2 + $0x1b] sm:$0xff]  ;;  %v3019_v24 = vpack.i.bf16 %v1742_v21, %v1741_v62 }
 0x7a4   : > { %v3024_v27 = vpack.i.bf16 %v1746_v5, %v1745_v22  ;;  %1841 = vmatpush.bf16.msrb.mxu2 %v2845_v32  ;;  %v1738_v35 = vld [vmem:[#allocation2 + $0x19] sm:$0xff] }
 0x7a5   : > { %3020 = vrot.lane.b32.xlu2 %v3019_v24, %s4024_s3 }
 0x7a6   : > { %3025 = vrot.lane.b32.xlu0 %v3024_v27, %s4023_s2 }
 0x7ff   : > { %v3021_v50 = vpop.permute.xlu2 %3020 }
 0x800   : > { %v3023_v53 = vunpack.i.h.bf16 %v3021_v50  ;;  %v3022_v55 = vunpack.i.l.bf16 %v3021_v50 }
 0x802   : > { %v1781_v58 = vsel %vm606_vm2, %v1737_v29, %v3022_v55  ;;  %v1782_v47 = vsel %vm606_vm2, %v1738_v35, %v3023_v53 }
 0x807   : > { %v3011_v33 = vpop.permute.xlu0 %3010 }
 0x808   : > { %v3013_v34 = vunpack.i.h.bf16 %v3011_v33  ;;  %v3012_v37 = vunpack.i.l.bf16 %v3011_v33 }
 0x80a   : > { %v1779_v45 = vsel %vm606_vm2, %v1735_v39, %v3012_v37  ;;  %v1780_v46 = vsel %vm606_vm2, %v1736_v41, %v3013_v34 }
 0x80f   : > { %v3016_v2 = vpop.permute.xlu1 %3015 }
 0x810   : > { %v3018_v42 = vunpack.i.h.bf16 %v3016_v2  ;;  %v3017_v43 = vunpack.i.l.bf16 %v3016_v2 }
 0x812   : > { %v1783_v48 = vsel %vm683_vm3, %v1779_v45, %v3017_v43  ;;  %v1784_v10 = vsel %vm683_vm3, %v1780_v46, %v3018_v42 }
 0x813   : > { %v1787_v49 = vpack.c.bf16 %v1784_v10, %v1783_v48 }
 0x815   : > { %2722 = vmatmul.msk.bf16.vlgmr.msrb.gmra.mxu2 %vm688_vm4, %v1787_v49 }
 0x818   : > { %v3026_v52 = vpop.permute.xlu0 %3025 }
 0x819   : > { %v3028_v26 = vunpack.i.h.bf16 %v3026_v52  ;;  %v3027_v57 = vunpack.i.l.bf16 %v3026_v52 }
 0x81b   : > { %v1785_v0 = vsel %vm683_vm3, %v1781_v58, %v3027_v57  ;;  %v1786_v3 = vsel %vm683_vm3, %v1782_v47, %v3028_v26 }
 0x81c   : > { %v1788_v4 = vpack.c.bf16 %v1786_v3, %v1785_v0 }
 0x825   : > { %2723 = vmatmul.msk.bf16.gmra.mxu2 %vm688_vm4, %v1788_v4 }
 0x898   : > { %v1843_v7 = vpop.f32.mrf.mxu2 }
 0x899   : > { %v3799_v11 = vadd.f32 %v3056_v17, %v1843_v7 }
 0x89b   : > { %v2724_v12 = vmul.f32 -1.442695, %v3799_v11 }
 0x89d   : > { %3156 = vpow2.f32 %v2724_v12 }
 0x8a0   : > { %v1845_v13 = vpop.f32.mrf.mxu2 }
 0x8a1   : > { %v3802_v14 = vadd.f32 %v3056_v17, %v1845_v13 }
 0x8a3   : > { %v3157_v15 = vpop.eup %3156  ;;  %v2725_v18 = vmul.f32 -1.442695, %v3802_v14 }
 0x8a4   : > { %v1869_v54 = vadd.f32 1.0, %v3157_v15 }
 0x8a5   : > { %3158 = vpow2.f32 %v2725_v18 }
 0x8a6   : > { %3160 = vrcp.f32 %v1869_v54  ;;  %v1884_v31 = vand.u32 2147483648, %v1869_v54  ;;  %v1882_v34 = vand.u32 2147483647, %v1869_v54  ;;  %vm1878_vm13 = vweird.f32 %v1869_v54 }
 0x8a8   : > { %v1848_v59 = vpop.f32.mrf.mxu2  ;;  %v1885_v43 = vor.u32 1.1754944e-38, %v1884_v31  ;;  %vm1883_vm15 = vcmp.eq.f32.partialorder %v1882_v34, 8.507059e+37 }
 0x8a9   : > { %v3805_v20 = vadd.f32 %v3056_v17, %v1848_v59 }
 0x8ab   : > { %v3159_v62 = vpop.eup %3158  ;;  %v2726_v21 = vmul.f32 -1.442695, %v3805_v20 }
 0x8ac   : > { %v3161_v22 = vpop.eup %3160  ;;  %v1870_v5 = vadd.f32 1.0, %v3159_v62 }
 0x8ad   : > { %3162 = vpow2.f32 %v2726_v21  ;;  %v1874_v24 = vmul.f32 %v3161_v22, %v1869_v54  ;;  %vm1879_vm12 = vweird.f32 %v3161_v22 }
 0x8ae   : > { %3164 = vrcp.f32 %v1870_v5  ;;  %vm1880_vm14 = vmor %vm1878_vm13, %vm1879_vm12  ;;  %v1899_v49 = vand.u32 2147483648, %v1870_v5  ;;  %v1897_v52 = vand.u32 2147483647, %v1870_v5  ;;  %vm1893_vm1 = vweird.f32 %v1870_v5 }
 0x8af   : > { %v1875_v27 = vsub.f32 1.0, %v1874_v24 }
 0x8b0   : > { %v1850_v44 = vpop.f32.mrf.mxu2  ;;  %v1900_v29 = vor.u32 1.1754944e-38, %v1899_v49  ;;  %vm1898_vm6 = vcmp.eq.f32.partialorder %v1897_v52, 8.507059e+37 }
 0x8b1   : > { %v3811_v32 = vadd.f32 %v3056_v17, %v1850_v44  ;;  %v1876_v33 = vmul.f32 %v3161_v22, %v1875_v27  ;;  %v2851_v44 = vld [vmem:[%s3997_s10 + $0x20] sm:$0xff] }
 0x8b2   : > { %1990 = vmatpush.bf16.msra.mxu1 %v2851_v44 }
 0x8b3   : > { %v3163_v37 = vpop.eup %3162  ;;  %v2727_v2 = vmul.f32 -1.442695, %v3811_v32  ;;  %v1877_v39 = vadd.f32 %v3161_v22, %v1876_v33 }
 0x8b4   : > { %v3165_v41 = vpop.eup %3164  ;;  %v1871_v42 = vadd.f32 1.0, %v3163_v37 }
 0x8b5   : > { %3166 = vpow2.f32 %v2727_v2  ;;  %v1881_v45 = vsel %vm1880_vm14, %v3161_v22, %v1877_v39  ;;  %v1889_v46 = vmul.f32 %v3165_v41, %v1870_v5  ;;  %vm1894_vm0 = vweird.f32 %v3165_v41 }
 0x8b6   : > { %3168 = vrcp.f32 %v1871_v42  ;;  %v1886_v48 = vsel %vm1883_vm15, %v1885_v43, %v1881_v45  ;;  %vm1895_vm5 = vmor %vm1893_vm1, %vm1894_vm0  ;;  %v1914_v3 = vand.u32 2147483648, %v1871_v42  ;;  %v1912_v17 = vand.u32 2147483647, %v1871_v42 }
 0x8b7   : > { %1937 = vrot.lane.b32.xlu1 %v1886_v48, %s4025_s22  ;;  %v1890_v10 = vsub.f32 1.0, %v1889_v46  ;;  %vm1908_vm8 = vweird.f32 %v1871_v42 }
 0x8b8   : > { %v1915_v13 = vor.u32 1.1754944e-38, %v1914_v3  ;;  %vm1913_vm10 = vcmp.eq.f32.partialorder %v1912_v17, 8.507059e+37  ;;  %v1715_v17 = vadd.f32 %v3761_v16, %v3659_v36  ;;  %v2858_v16 = vld [vmem:[%s3995_s8 + $0xb8] sm:$0xff] }
 0x8b9   : > { %v1891_v50 = vmul.f32 %v3165_v41, %v1890_v10  ;;  %v3057_v10 = vld [vmem:[%s3998_s11 + $0x2] ss:$0 sm:$0xff]  ;;  %2134 = vmatpush.bf16.msra.mxu3 %v2858_v16 }
 0x8bb   : > { %v3167_v53 = vpop.eup %3166  ;;  %v1892_v55 = vadd.f32 %v3165_v41, %v1891_v50  ;;  %v1712_v50 = vadd.f32 %v3728_v60, %v3626_v23 }
 0x8bc   : > { %v3169_v26 = vpop.eup %3168  ;;  %v1872_v57 = vadd.f32 1.0, %v3167_v53 }
 0x8bd   : > { %v1896_v35 = vsel %vm1895_vm5, %v3165_v41, %v1892_v55  ;;  %v1904_v58 = vmul.f32 %v3169_v26, %v1871_v42  ;;  %vm1909_vm7 = vweird.f32 %v3169_v26 }
 0x8be   : > { %3170 = vrcp.f32 %v1872_v57  ;;  %v1901_v47 = vsel %vm1898_vm6, %v1900_v29, %v1896_v35  ;;  %vm1910_vm9 = vmor %vm1908_vm8, %vm1909_vm7  ;;  %v1929_v62 = vand.u32 2147483648, %v1872_v57  ;;  %v1927_v22 = vand.u32 2147483647, %v1872_v57 }
 0x8bf   : > { %1939 = vrot.lane.b32.xlu2 %v1901_v47, %s4025_s22  ;;  %v1905_v0 = vsub.f32 1.0, %v1904_v58  ;;  %vm1923_vm12 = vweird.f32 %v1872_v57  ;;  %3172 = vtanh.f32 %v3799_v11 }
 0x8c0   : > { %v1930_v24 = vor.u32 1.1754944e-38, %v1929_v62  ;;  %vm1928_vm14 = vcmp.eq.f32.partialorder %v1927_v22, 8.507059e+37  ;;  %3174 = vtanh.f32 %v3802_v14  ;;  %v2856_v22 = vld [vmem:[%s3995_s8 + $0xa8] sm:$0xff] }
 0x8c1   : > { %v1906_v4 = vmul.f32 %v3169_v26, %v1905_v0  ;;  %3176 = vtanh.f32 %v3805_v20  ;;  %v1714_v0 = vadd.f32 %v3752_v8, %v3650_v30 }
 0x8c2   : > { %3178 = vtanh.f32 %v3811_v32 }
 0x8c3   : > { %v1907_v7 = vadd.f32 %v3169_v26, %v1906_v4 }
 0x8c4   : > { %v3171_v12 = vpop.eup %3170 }
 0x8c5   : > { %v1911_v15 = vsel %vm1910_vm9, %v3169_v26, %v1907_v7  ;;  %v1919_v18 = vmul.f32 %v3171_v12, %v1872_v57  ;;  %vm1924_vm11 = vweird.f32 %v3171_v12  ;;  %v3173_v33 = vpop.eup %3172  ;;  %v1713_v26 = vadd.f32 %v3737_v1, %v3635_v25 }
 0x8c6   : > { %v1916_v54 = vsel %vm1913_vm10, %v1915_v13, %v1911_v15  ;;  %vm1925_vm13 = vmor %vm1923_vm12, %vm1924_vm11  ;;  %v3175_v34 = vpop.eup %3174 }
 0x8c7   : > { %1941 = vrot.lane.b32.xlu0 %v1916_v54, %s4025_s22  ;;  %v1920_v59 = vsub.f32 1.0, %v1919_v18  ;;  %v3177_v43 = vpop.eup %3176 }
 0x8c8   : > { %v3179_v45 = vpop.eup %3178 }
 0x8c9   : > { %v1921_v21 = vmul.f32 %v3171_v12, %v1920_v59 }
 0x8cb   : > { %v1922_v5 = vadd.f32 %v3171_v12, %v1921_v21 }
 0x8cd   : > { %v1926_v27 = vsel %vm1925_vm13, %v3171_v12, %v1922_v5  ;;  %v2855_v5 = vld [vmem:[%s3995_s8 + $0xa0] sm:$0xff] }
 0x8ce   : > { %v1931_v38 = vsel %vm1928_vm14, %v1930_v24, %v1926_v27  ;;  %v2854_v24 = vld [vmem:[%s3995_s8 + $0x98] sm:$0xff]  ;;  %v2853_v27 = vld [vmem:[%s3995_s8 + $0x90] sm:$0xff] }
 0x8cf   : > { %1943 = vrot.lane.b32.xlu1 %v1931_v38, %s4025_s22 }
 0x919   : > { %v1940_v31 = vpop.permute.xlu2 %1939 }
 0x91a   : > { %v1950_v2 = vmul.f32 %v3175_v34, %v1940_v31 }
 0x929   : > { %v1938_v37 = vpop.permute.xlu1 %1937 }
 0x92a   : > { %v1949_v39 = vmul.f32 %v3173_v33, %v1938_v37 }
 0x92c   : > { %v1953_v41 = vpack.c.bf16 %v1950_v2, %v1949_v39 }
 0x92e   : > { %2741 = vmatmul.msk.bf16.vlgmr.msra.gmra.mxu1 %vm606_vm2, %v1953_v41 }
 0x939   : > { %v1942_v42 = vpop.permute.xlu0 %1941 }
 0x93a   : > { %v1951_v11 = vmul.f32 %v3177_v43, %v1942_v42 }
 0x941   : > { %v1944_v46 = vpop.permute.xlu1 %1943 }
 0x942   : > { %v1952_v48 = vmul.f32 %v3179_v45, %v1944_v46 }
 0x944   : > { %v1954_v14 = vpack.c.bf16 %v1952_v48, %v1951_v11 }
 0x946   : > { %2742 = vmatmul.msk.bf16.gmra.mxu1 %vm606_vm2, %v1954_v14 }
 0x9ab   : > { %v1992_v49 = vpop.f32.mrf.mxu1 }
 0x9ac   : > { %v1993_v20 = vadd.f32 %v3057_v10, %v1992_v49 }
 0x9ae   : > { %v2002_v32 = vadd.f32 %v1993_v20, %v3733_v61  ;;  %v3833_v52 = vadd.f32 %v1993_v20, %v1712_v50 }
 0x9b0   : > { %v2006_v53 = vmul.f32 %v2002_v32, %v3532_v40 }
 0x9b2   : > { %2029 = vst.msk [vmem:[#allocation2 + $0x2] sm:$0xff] %vm606_vm2, %v2006_v53 }
 0x9b3   : > { %v1994_v55 = vpop.f32.mrf.mxu1 }
 0x9b4   : > { %v1995_v57 = vadd.f32 %v3057_v10, %v1994_v55 }
 0x9b6   : > { %v2003_v29 = vadd.f32 %v1995_v57, %v3748_v6  ;;  %v3840_v35 = vadd.f32 %v1995_v57, %v1713_v26 }
 0x9b8   : > { %v2007_v23 = vmul.f32 %v2003_v29, %v3539_v51 }
 0x9b9   : > { %v2037_v60 = vld [vmem:[#allocation2 + $0x2] sm:$0xff] }
 0x9ba   : > { %2030 = vst.msk [vmem:[#allocation2 + $0xa] sm:$0xff] %vm606_vm2, %v2007_v23  ;;  %v2033_v34 = vld [vmem:[#allocation2 + $0x1] sm:$0xff] }
 0x9bb   : > { %v3058_v23 = vld [vmem:[%s3996_s9 + $0x3] ss:$0 sm:$0xff] }
 0x9c1   : > { %v2038_v61 = vld [vmem:[#allocation2 + $0xa] sm:$0xff] }
 0x9c2   : > { %v3029_v58 = vpack.i.bf16 %v2038_v61, %v2037_v60  ;;  %v2041_v8 = vld [vmem:[#allocation2 + $0x3] sm:$0xff] }
 0x9c3   : > { %v1997_v47 = vpop.f32.mrf.mxu1  ;;  %v2034_v37 = vld [vmem:[#allocation2 + $0x9] sm:$0xff] }
 0x9c4   : > { %v1998_v3 = vadd.f32 %v3057_v10, %v1997_v47  ;;  %3030 = vrot.lane.b32.xlu2 %v3029_v58, %s4024_s3 }
 0x9c6   : > { %v2004_v25 = vadd.f32 %v1998_v3, %v3757_v28  ;;  %v3848_v1 = vadd.f32 %v1998_v3, %v1714_v0 }
 0x9c8   : > { %v2008_v6 = vmul.f32 %v2004_v25, %v3546_v63 }
 0x9ca   : > { %2031 = vst.msk [vmem:[#allocation2 + $0x12] sm:$0xff] %vm606_vm2, %v2008_v6 }
 0x9cb   : > { %v1999_v4 = vpop.f32.mrf.mxu1 }
 0x9cc   : > { %v2000_v7 = vadd.f32 %v3057_v10, %v1999_v4 }
 0x9ce   : > { %v2005_v12 = vadd.f32 %v2000_v7, %v3767_v19  ;;  %v3855_v13 = vadd.f32 %v2000_v7, %v1715_v17  ;;  %v2857_v19 = vld [vmem:[%s3995_s8 + $0xb0] sm:$0xff] }
 0x9cf   : > { %2135 = vmatpush.bf16.msra.mxu3 %v2857_v19  ;;  %v2361_v19 = vrot.slane %v3521_v56, 4 }
 0x9d0   : > { %v2009_v30 = vmul.f32 %v2005_v12, %v3554_v9 }
 0x9d1   : > { %v2042_v15 = vld [vmem:[#allocation2 + $0xb] sm:$0xff] }
 0x9d2   : > { %2032 = vst.msk [vmem:[#allocation2 + $0x1a] sm:$0xff] %vm606_vm2, %v2009_v30  ;;  %v3034_v28 = vpack.i.bf16 %v2042_v15, %v2041_v8  ;;  %v2039_v18 = vld [vmem:[#allocation2 + $0x12] sm:$0xff] }
 0x9d3   : > { %2136 = vmatpush.bf16.msra.mxu3 %v2856_v22  ;;  %v2035_v49 = vld [vmem:[#allocation2 + $0x11] sm:$0xff] }
 0x9d4   : > { %3035 = vrot.lane.b32.xlu0 %v3034_v28, %s4023_s2 }
 0x9d7   : > { %2137 = vmatpush.bf16.msra.mxu3 %v2855_v5 }
 0x9d9   : > { %v2040_v54 = vld [vmem:[#allocation2 + $0x1a] sm:$0xff] }
 0x9da   : > { %v2043_v59 = vld [vmem:[#allocation2 + $0x13] sm:$0xff]  ;;  %v2044_v62 = vld [vmem:[#allocation2 + $0x1b] sm:$0xff]  ;;  %v3039_v21 = vpack.i.bf16 %v2040_v54, %v2039_v18 }
 0x9db   : > { %v3044_v36 = vpack.i.bf16 %v2044_v62, %v2043_v59  ;;  %2138 = vmatpush.bf16.msra.mxu3 %v2854_v24  ;;  %v2036_v50 = vld [vmem:[#allocation2 + $0x19] sm:$0xff] }
 0x9dc   : > { %3040 = vrot.lane.b32.xlu1 %v3039_v21, %s4024_s3  ;;  %v2860_v18 = vld [vmem:[%s3997_s10 + $0x38] sm:$0xff]  ;;  %s2402_s3 = sshll.u32 %s2398_s21, 4  ;;  %s2403_s3 = int_to_ptr.hbm [resolvable:$true] %s2402_s3 }
 0x9dd   : > { %3045 = vrot.lane.b32.xlu2 %v3044_v36, %s4023_s2  ;;  %2287 = vmatpush.bf16.msrb.mxu0 %v2860_v18  ;;  %s2400_s2 = sshll.u32 %s474_s26, 4  ;;  %s3220_s25 = sshra.s32 %s2403_s3, 4  ;;  %s2401_s2 = int_to_ptr.vmem [resolvable:$true] %s2400_s2  ;;  %s3221_s25 = int_to_ptr.hbm [resolvable:$true] %s3220_s25 }
 0x9de   : > { %s3222_s28 = scalar_lea.hbm %s3221_s25, 1  ;;  %p3227_p0 = scmp.lt.s32.totalorder %s3221_s25, %s4001_s14 }
 0x9df   : > { %2139 = vmatpush.bf16.msra.mxu3 %v2853_v27  ;;  %p3223_p11 = scmp.ne.s32.totalorder %s3221_s25, %s3222_s28  ;;  %p3228_p1 = scmp.lt.s32.totalorder %s3226_s5, %s3222_s28 }
 0x9e1   : > { %p3224_p12 = pnand %p3223_p11, %p3388_p5  ;;  %p3229_p2 = por %p3228_p1, %p3227_p0 }
 0x9e3   : > { %p3225_p13 = pneg %p3224_p12 }
 0x9e5   : > { %p3230_p3 = pnand %p3229_p2, %p3225_p13 }
 0xa1e   : > { %v3031_v38 = vpop.permute.xlu2 %3030 }
 0xa1f   : > { %v3033_v44 = vunpack.i.h.bf16 %v3031_v38  ;;  %v3032_v31 = vunpack.i.l.bf16 %v3031_v38 }
 0xa21   : > { %v2077_v41 = vsel %vm606_vm2, %v2033_v34, %v3032_v31  ;;  %v2078_v42 = vsel %vm606_vm2, %v2034_v37, %v3033_v44  ;;  %v2362_v34 = vadd.f32 %v2361_v19, %v3521_v56 }
 0xa37   : > { %v3046_v10 = vpop.permute.xlu2 %3045 }
 0xa38   : > { %v3048_v53 = vunpack.i.h.bf16 %v3046_v10  ;;  %v3047_v55 = vunpack.i.l.bf16 %v3046_v10 }
 0xa46   : > { %v3036_v33 = vpop.permute.xlu0 %3035 }
 0xa47   : > { %v3038_v2 = vunpack.i.h.bf16 %v3036_v33  ;;  %v3037_v39 = vunpack.i.l.bf16 %v3036_v33 }
 0xa49   : > { %v2081_v43 = vsel %vm683_vm3, %v2077_v41, %v3037_v39  ;;  %v2082_v45 = vsel %vm683_vm3, %v2078_v42, %v3038_v2 }
 0xa4a   : > { %v2085_v46 = vpack.c.bf16 %v2082_v45, %v2081_v43  ;;  %v2363_v45 = vrot.slane %v2362_v34, 2 }
 0xa4c   : > { %2780 = vmatmul.msk.bf16.vlgmr.msra.gmra.mxu3 %vm688_vm4, %v2085_v46 }
 0xa4e   : > { %v3041_v11 = vpop.permute.xlu1 %3040 }
 0xa4f   : > { %v3043_v48 = vunpack.i.h.bf16 %v3041_v11  ;;  %v3042_v14 = vunpack.i.l.bf16 %v3041_v11 }
 0xa51   : > { %v2079_v20 = vsel %vm606_vm2, %v2035_v49, %v3042_v14  ;;  %v2080_v32 = vsel %vm606_vm2, %v2036_v50, %v3043_v48  ;;  %v2364_v50 = vadd.f32 %v2363_v45, %v2362_v34 }
 0xa52   : > { %v2083_v26 = vsel %vm683_vm3, %v2079_v20, %v3047_v55  ;;  %v2084_v57 = vsel %vm683_vm3, %v2080_v32, %v3048_v53 }
 0xa53   : > { %v2086_v29 = vpack.c.bf16 %v2084_v57, %v2083_v26  ;;  %v2365_v26 = vrot.slane %v2364_v50, 1 }
 0xa5c   : > { %2781 = vmatmul.msk.bf16.gmra.mxu3 %vm688_vm4, %v2086_v29 }
 0xacf   : > { %v2141_v60 = vpop.f32.mrf.mxu3 }
 0xad0   : > { %v3893_v61 = vadd.f32 %v3058_v23, %v2141_v60 }
 0xad2   : > { %v2782_v58 = vmul.f32 -1.442695, %v3893_v61 }
 0xad4   : > { %3180 = vpow2.f32 %v2782_v58 }
 0xad7   : > { %v2143_v47 = vpop.f32.mrf.mxu3 }
 0xad8   : > { %v3896_v0 = vadd.f32 %v3058_v23, %v2143_v47  ;;  %v2366_v47 = vadd.f32 %v2365_v26, %v2364_v50 }
 0xada   : > { %v3181_v3 = vpop.eup %3180  ;;  %v2783_v25 = vmul.f32 -1.442695, %v3896_v0 }
 0xadb   : > { %v2167_v6 = vadd.f32 1.0, %v3181_v3 }
 0xadc   : > { %3182 = vpow2.f32 %v2783_v25 }
 0xadd   : > { %3184 = vrcp.f32 %v2167_v6  ;;  %v2182_v59 = vand.u32 2147483648, %v2167_v6  ;;  %v2180_v36 = vand.u32 2147483647, %v2167_v6  ;;  %vm2176_vm4 = vweird.f32 %v2167_v6 }
 0xadf   : > { %v2146_v4 = vpop.f32.mrf.mxu3  ;;  %v2183_v38 = vor.u32 1.1754944e-38, %v2182_v59  ;;  %vm2181_vm0 = vcmp.eq.f32.partialorder %v2180_v36, 8.507059e+37 }
 0xae0   : > { %v3899_v17 = vadd.f32 %v3058_v23, %v2146_v4 }
 0xae2   : > { %v3183_v7 = vpop.eup %3182  ;;  %v2784_v12 = vmul.f32 -1.442695, %v3899_v17 }
 0xae3   : > { %v3185_v30 = vpop.eup %3184  ;;  %v2168_v8 = vadd.f32 1.0, %v3183_v7  ;;  %v2367_v7 = vmax.f32 %v2366_v47, 1.0 }
 0xae4   : > { %3186 = vpow2.f32 %v2784_v12  ;;  %v2172_v15 = vmul.f32 %v3185_v30, %v2167_v6  ;;  %vm2177_vm3 = vweird.f32 %v3185_v30 }
 0xae5   : > { %3188 = vrcp.f32 %v2168_v8  ;;  %vm2178_vm15 = vmor %vm2176_vm4, %vm2177_vm3  ;;  %v2197_v2 = vand.u32 2147483648, %v2168_v8  ;;  %v2195_v41 = vand.u32 2147483647, %v2168_v8  ;;  %vm2191_vm5 = vweird.f32 %v2168_v8 }
 0xae6   : > { %v2173_v28 = vsub.f32 1.0, %v2172_v15  ;;  %vm2308_vm4 = vcmask 523520  }
 0xae7   : > { %v2148_v54 = vpop.f32.mrf.mxu3  ;;  %v2198_v48 = vor.u32 1.1754944e-38, %v2197_v2  ;;  %vm2196_vm7 = vcmp.eq.f32.partialorder %v2195_v41, 8.507059e+37  ;;  %v2325_v41 = vld [vmem:[%s3999_s12 + $0x18] sm:$0xff] }
 0xae8   : > { %v3905_v62 = vadd.f32 %v3058_v23, %v2148_v54  ;;  %v2174_v21 = vmul.f32 %v3185_v30, %v2173_v28  ;;  %v2859_v28 = vld [vmem:[%s3997_s10 + $0x30] sm:$0xff]  ;;  %2345 = vmatpush.msra.mxu2 %v2325_v41 }
 0xae9   : > { %2288 = vmatpush.bf16.msrb.mxu0 %v2859_v28 }
 0xaea   : > { %v3187_v16 = vpop.eup %3186  ;;  %v2785_v22 = vmul.f32 -1.442695, %v3905_v62  ;;  %v2175_v5 = vadd.f32 %v3185_v30, %v2174_v21 }
 0xaeb   : > { %v3189_v24 = vpop.eup %3188  ;;  %v2169_v27 = vadd.f32 1.0, %v3187_v16 }
 0xaec   : > { %3190 = vpow2.f32 %v2785_v22  ;;  %v2179_v44 = vsel %vm2178_vm15, %v3185_v30, %v2175_v5  ;;  %v2187_v31 = vmul.f32 %v3189_v24, %v2168_v8  ;;  %vm2192_vm1 = vweird.f32 %v3189_v24 }
 0xaed   : > { %3192 = vrcp.f32 %v2169_v27  ;;  %v2184_v33 = vsel %vm2181_vm0, %v2183_v38, %v2179_v44  ;;  %vm2193_vm6 = vmor %vm2191_vm5, %vm2192_vm1  ;;  %v2212_v20 = vand.u32 2147483648, %v2169_v27  ;;  %v2210_v53 = vand.u32 2147483647, %v2169_v27  ;;  %v3059_v44 = vld [vmem:[%s3998_s11 + $0x3] ss:$0 sm:$0xff] }
 0xaee   : > { %2235 = vrot.lane.b32.xlu0 %v2184_v33, %s4025_s22  ;;  %v2188_v37 = vsub.f32 1.0, %v2187_v31  ;;  %vm2206_vm9 = vweird.f32 %v2169_v27 }
 0xaef   : > { %v2213_v29 = vor.u32 1.1754944e-38, %v2212_v20  ;;  %vm2211_vm11 = vcmp.eq.f32.partialorder %v2210_v53, 8.507059e+37 }
 0xaf0   : > { %v2189_v39 = vmul.f32 %v3189_v24, %v2188_v37 }
 0xaf2   : > { %v3191_v42 = vpop.eup %3190  ;;  %v2190_v43 = vadd.f32 %v3189_v24, %v2189_v39 }
 0xaf3   : > { %v3193_v46 = vpop.eup %3192  ;;  %v2170_v11 = vadd.f32 1.0, %v3191_v42  ;;  %v2324_v42 = vld [vmem:[%s3999_s12 + $0x10] sm:$0xff] }
 0xaf4   : > { %v2194_v14 = vsel %vm2193_vm6, %v3189_v24, %v2190_v43  ;;  %v2202_v10 = vmul.f32 %v3193_v46, %v2169_v27  ;;  %vm2207_vm8 = vweird.f32 %v3193_v46  ;;  %2346 = vmatpush.msra.mxu2 %v2324_v42 }
 0xaf5   : > { %3194 = vrcp.f32 %v2170_v11  ;;  %v2199_v56 = vsel %vm2196_vm7, %v2198_v48, %v2194_v14  ;;  %vm2208_vm10 = vmor %vm2206_vm9, %vm2207_vm8  ;;  %v2227_v25 = vand.u32 2147483648, %v2170_v11  ;;  %v2225_v4 = vand.u32 2147483647, %v2170_v11 }
 0xaf6   : > { %2237 = vrot.lane.b32.xlu1 %v2199_v56, %s4025_s22  ;;  %v2203_v49 = vsub.f32 1.0, %v2202_v10  ;;  %vm2221_vm13 = vweird.f32 %v2170_v11  ;;  %3196 = vtanh.f32 %v3893_v61 }
 0xaf7   : > { %v2228_v30 = vor.u32 1.1754944e-38, %v2227_v25  ;;  %vm2226_vm3 = vcmp.eq.f32.partialorder %v2225_v4, 8.507059e+37  ;;  %3198 = vtanh.f32 %v3896_v0 }
 0xaf8   : > { %v2204_v32 = vmul.f32 %v3193_v46, %v2203_v49  ;;  %3200 = vtanh.f32 %v3899_v17 }
 0xaf9   : > { %3202 = vtanh.f32 %v3905_v62 }
 0xafa   : > { %v2205_v55 = vadd.f32 %v3193_v46, %v2204_v32 }
 0xafb   : > { %v3195_v57 = vpop.eup %3194 }
 0xafc   : > { %v2209_v23 = vsel %vm2208_vm10, %v3193_v46, %v2205_v55  ;;  %v2217_v60 = vmul.f32 %v3195_v57, %v2170_v11  ;;  %vm2222_vm12 = vweird.f32 %v3195_v57  ;;  %v3197_v54 = vpop.eup %3196  ;;  %v2322_v46 = vld [vmem:[%s3999_s12] sm:$0xff] }
 0xafd   : > { %v2214_v58 = vsel %vm2211_vm11, %v2213_v29, %v2209_v23  ;;  %vm2223_vm14 = vmor %vm2221_vm13, %vm2222_vm12  ;;  %v3199_v59 = vpop.eup %3198 }
 0xafe   : > { %2239 = vrot.lane.b32.xlu2 %v2214_v58, %s4025_s22  ;;  %v2218_v3 = vsub.f32 1.0, %v2217_v60  ;;  %v3201_v5 = vpop.eup %3200 }
 0xaff   : > { %v3203_v24 = vpop.eup %3202 }
 0xb00   : > { %v2219_v6 = vmul.f32 %v3195_v57, %v2218_v3  ;;  %v2326_v3 = vld [vmem:[%s4000_s13] sm:$0x1] }
 0xb02   : > { %v2220_v12 = vadd.f32 %v3195_v57, %v2219_v6 }
 0xb04   : > { %v2224_v8 = vsel %vm2223_vm14, %v3195_v57, %v2220_v12 }
 0xb05   : > { %v2229_v15 = vsel %vm2226_vm3, %v2228_v30, %v2224_v8 }
 0xb06   : > { %2370 = vperm.xlu2 %2968, %v2367_v7   ;;  %2241 = vrot.lane.b32.xlu0 %v2229_v15, %s4025_s22  ;;  %v2327_v7 = vmul.f32 32.0, %v2326_v3 }
 0xb58   : > { %v2240_v22 = vpop.permute.xlu2 %2239 }
 0xb59   : > { %v2249_v61 = vmul.f32 %v3201_v5, %v2240_v22 }
 0xb60   : > { %v2236_v18 = vpop.permute.xlu0 %2235  ;;  %v2371_v60 = vpop.permute.xlu2 %2370 }
 0xb61   : > { %v2247_v36 = vmul.f32 %v3197_v54, %v2236_v18  ;;  %3204 = vrcp.f32 %v2371_v60  ;;  %v2384_v6 = vand.u32 2147483648, %v2371_v60  ;;  %vm2378_vm0 = vweird.f32 %v2371_v60 }
 0xb62   : > { %v2382_v4 = vand.u32 2147483647, %v2371_v60 }
 0xb63   : > { %v2385_v30 = vor.u32 1.1754944e-38, %v2384_v6 }
 0xb64   : > { %vm2383_vm1 = vcmp.eq.f32.partialorder %v2382_v4, 8.507059e+37 }
 0xb68   : > { %v2238_v21 = vpop.permute.xlu1 %2237 }
 0xb69   : > { %v2248_v16 = vmul.f32 %v3199_v59, %v2238_v21 }
 0xb6b   : > { %v2251_v19 = vpack.c.bf16 %v2248_v16, %v2247_v36 }
 0xb6d   : > { %2799 = vmatmul.msk.bf16.vlgmr.msrb.gmra.mxu0 %vm606_vm2, %v2251_v19 }
 0xb78   : > { %v2242_v27 = vpop.permute.xlu0 %2241 }
 0xb79   : > { %v2250_v38 = vmul.f32 %v3203_v24, %v2242_v27 }
 0xb7b   : > { %v2252_v0 = vpack.c.bf16 %v2250_v38, %v2249_v61 }
 0xb7d   : > { %2800 = vmatmul.msk.bf16.gmra.mxu0 %vm606_vm2, %v2252_v0 }
 0xbea   : > { %v2290_v31 = vpop.f32.mrf.mxu0 }
 0xbeb   : > { %v2291_v33 = vadd.f32 %v3059_v44, %v2290_v31 }
 0xbed   : > { %v2300_v34 = vadd.f32 %v2291_v33, %v3833_v52 }
 0xbef   : > { %v2304_v62 = vmul.f32 %v2300_v34, %v3532_v40 }
 0xbf1   : > { %v2309_v43 = vsel %vm2308_vm4, %v2304_v62, 0.0 }
 0xbf2   : > { %v2292_v17 = vpop.f32.mrf.mxu0 }
 0xbf3   : > { %v2293_v37 = vadd.f32 %v3059_v44, %v2292_v17 }
 0xbf5   : > { %v2301_v2 = vadd.f32 %v2293_v37, %v3840_v35  ;;  %v2323_v35 = vld [vmem:[%s3999_s12 + $0x8] sm:$0xff] }
 0xbf6   : > { %2347 = vmatpush.msra.mxu2 %v2323_v35 }
 0xbf7   : > { %v2305_v39 = vmul.f32 %v2301_v2, %v3539_v51 }
 0xbf8   : > { %2348 = vmatpush.msra.mxu2 %v2322_v46 }
 0xbf9   : > { %v2310_v52 = vsel %vm2308_vm4, %v2305_v39, 0.0 }
 0xbfa   : > { %v2311_v45 = vadd.f32 %v2310_v52, %v2309_v43  ;;  %v2295_v40 = vpop.f32.mrf.mxu0 }
 0xbfb   : > { %v2296_v51 = vadd.f32 %v3059_v44, %v2295_v40 }
 0xbfd   : > { %v2302_v11 = vadd.f32 %v2296_v51, %v3848_v1 }
 0xbff   : > { %v2306_v48 = vmul.f32 %v2302_v11, %v3546_v63 }
 0xc01   : > { %v2312_v14 = vsel %vm2308_vm4, %v2306_v48, 0.0 }
 0xc02   : > { %v2313_v10 = vadd.f32 %v2312_v14, %v2311_v45  ;;  %v2297_v56 = vpop.f32.mrf.mxu0 }
 0xc03   : > { %v2298_v49 = vadd.f32 %v3059_v44, %v2297_v56 }
 0xc05   : > { %v2303_v50 = vadd.f32 %v2298_v49, %v3855_v13  ;;  %v3205_v13 = vpop.eup %3204 }
 0xc06   : > { %vm2379_vm15 = vweird.f32 %v3205_v13 }
 0xc07   : > { %v2307_v20 = vmul.f32 %v2303_v50, %v3554_v9  ;;  %v2374_v9 = vmul.f32 %v3205_v13, %v2371_v60 }
 0xc09   : > { %v2314_v32 = vsel %vm2308_vm4, %v2307_v20, 0.0  ;;  %v2375_v58 = vsub.f32 1.0, %v2374_v9 }
 0xc0a   : > { %v2315_v53 = vadd.f32 %v2314_v32, %v2313_v10 }
 0xc0b   : > { %v2376_v47 = vmul.f32 %v3205_v13, %v2375_v58 }
 0xc0c   : > { %v2316_v55 = vrot.slane %v2315_v53, 4 }
 0xc0d   : > { %v2377_v25 = vadd.f32 %v3205_v13, %v2376_v47 }
 0xc0e   : > { %v2317_v26 = vadd.f32 %v2316_v55, %v2315_v53 }
 0xc10   : > { %v2318_v1 = vrot.slane %v2317_v26, 2 }
 0xc12   : > { %v2319_v57 = vadd.f32 %v2318_v1, %v2317_v26 }
 0xc14   : > { %v2320_v29 = vrot.slane %v2319_v57, 1 }
 0xc16   : > { %v2321_v63 = vadd.f32 %v2320_v29, %v2319_v57 }
 0xc18   : > { %2329 = vrot.lane.b32.xlu1 %v2321_v63, %s4025_s22 }
 0xc8a   : > { %v2330_v23 = vpop.permute.xlu1 %2329 }
 0xc8b   : > { %2801 = vmatmul.msk.f32.vlgmr.msra.gmra.mxu2 %vm606_vm2, %v2330_v23  ;;  %vm2380_vm2 = vmor %vm2378_vm0, %vm2379_vm15 }
 0xc8c   : > { %v2381_v12 = vsel %vm2380_vm2, %v3205_v13, %v2377_v25 }
 0xc8d   : > { %v2386_v28 = vsel %vm2383_vm1, %v2385_v30, %v2381_v12 }
 0xd0e   : > { %v2350_v8 = vpop.f32.mrf.mxu2 }
 0xd0f   : > { %v2351_v15 = vadd.f32 %v2350_v8, %v2327_v7 }
 0xd11   : > { %v2387_v18 = vmul.f32 %v2386_v28, %v2351_v15 }
 0xd13   : > { %2388 = vst [vmem:[%s474_s26] sm:$0x1] %v2387_v18 }
 0xd14   : > { %3233 = shalt.err (!%p3230_p3)
}
 0xd15   : > { %2862 = dma.vmem_to_hbm [thread:$0]  (%p3388_p5), %s2401_s2, 16, %s2403_s3, %s2390_s18  }
 0xd16 PF: > { %p2868_p4 = scmp.ge.s32.totalorder %s3268_s16, 2  ;;  %s2414_s27 = sand.u32 1, %s3256_s29  }
 0xd17   : > { %s2415_s22 = scalar_lea.sflag [#allocation4], %s2414_s27 }
 0xd18   : > { %p2865_p7 = pnand %p2868_p4, %p3392_p6 }
 0xd1a   : > { %p2866_p8 = pneg %p2865_p7 }
 0xd1c   : > { %3251 = dma.done.wait (%p2866_p8), %s2415_s22, 16  }
 0xd1d   : > { %3253 = vsyncadd (%p2866_p8), %s2415_s22, 4294967280  ;;  %s4026_s0 = sld [smem:[#allocation6_spill]]  ;;  %p24_p9 = scmp.ge.s32.totalorder %s3375_s19, 4  }
 0xd1e   : > { %s4027_s15 = sld [smem:[#allocation7_spill]]  ;;  %s4028_s29 = smov %s3260_s30 }
 0xd1f   : > { %s4030_s16 = smov %s3375_s19  ;;  %26 = sbr.rel (!%p24_p9) target bundleno = 9 (0x9), region = 126 }
 0xd23   : > { %s4029_s30 = smov %s4026_s0 }
 0xd24   :  { %2420 = vsyncpa [#allocation4], 1 }
 0xd25   :  { %2422 = vsyncpa [#allocation4 + $0x1], 1 }

</bundles_post_ra>
